<compile_context>
chip_gen: v6e
topology: v6e:2x2x1
jax: 0.10.0
libtpu: 0.0.40
codegen_flags: <defaults>
</compile_context>

<pallas_src>
import functools

import jax
import jax.numpy as jnp
from jax.experimental import pallas as pl
from jax.experimental.pallas import tpu as pltpu


# ----------------------------------------------------------------------------
# Generation-aware VMEM budgeting
# ----------------------------------------------------------------------------
def _vmem_capacity_bytes():
    try:
        return int(pltpu.get_tpu_info().vmem_capacity_bytes)
    except Exception:
        return 64 * 1024 * 1024          # conservative (v7x per-TensorCore)


_VMEM_PHYS = _vmem_capacity_bytes()
# 48 MiB limit / 32 MiB budget on v7x (64 MiB VMEM); 96 / 64 MiB on v5e/v6e.
_VMEM_LIMIT = min(3 * _VMEM_PHYS // 4, 96 * 1024 * 1024)
_VMEM_BUDGET = min(_VMEM_PHYS // 2, 64 * 1024 * 1024)


# ----------------------------------------------------------------------------
# Single-buffering support probe (pipeline_mode=pl.Buffered(1))
# ----------------------------------------------------------------------------
@functools.lru_cache(maxsize=None)
def _single_buffer_ok():
    """True iff pipeline_mode=pl.Buffered(1) compiles & runs on this JAX/TPU."""
    try:
        def _k(x_ref, o_ref):
            o_ref[...] = x_ref[...] + 1.0

        f = pl.pallas_call(
            _k,
            out_shape=jax.ShapeDtypeStruct((16, 128), jnp.float32),
            grid=(2,),
            in_specs=[pl.BlockSpec((8, 128), lambda i: (i, 0),
                                   pipeline_mode=pl.Buffered(1))],
            out_specs=pl.BlockSpec((8, 128), lambda i: (i, 0)),
        )
        y = jax.block_until_ready(f(jnp.zeros((16, 128), jnp.float32)))
        return bool(jnp.all(y == 1.0))
    except Exception:
        return False


def _const_spec(block_shape, index_map):
    """BlockSpec for operands whose block index is (nearly) constant: single-
    buffer them (double-buffering a constant block is pure VMEM waste)."""
    if _single_buffer_ok():
        return pl.BlockSpec(block_shape, index_map, pipeline_mode=pl.Buffered(1))
    return pl.BlockSpec(block_shape, index_map)


# ----------------------------------------------------------------------------
# Pallas kernels
# ----------------------------------------------------------------------------
def _gemm_stats_kernel(a_ref, b_ref, o_ref, stats_ref):
    """o = bf16(A@B); merged stats block: row0 = col sums, row1 = col sum-sq.

    The matmul accumulates in f32; the stats are reduced from the f32
    accumulator *before* the bf16 store, so BN statistics keep f32 quality.
    """
    acc = jnp.dot(a_ref[...], b_ref[...], preferred_element_type=jnp.float32)
    o_ref[...] = acc.astype(o_ref.dtype)
    stats_ref[...] = jnp.zeros_like(stats_ref)
    stats_ref[0:1, :] = jnp.sum(acc, axis=0, keepdims=True)
    stats_ref[1:2, :] = jnp.sum(acc * acc, axis=0, keepdims=True)


def _gemm_bias_tanh_kernel(a_ref, b_ref, bias_ref, o_ref):
    """o = tanh(A@B + bias); f32 epilogue (tanh rides the EUP slot)."""
    acc = jnp.dot(a_ref[...], b_ref[...], preferred_element_type=jnp.float32)
    acc = acc + bias_ref[...]
    o_ref[...] = jnp.tanh(acc).astype(o_ref.dtype)


def _scale_shift_relu_kernel(x_ref, scale_ref, shift_ref, o_ref):
    """BatchNorm apply + ReLU: o = max(x*scale + shift, 0). bf16 in / bf16 out."""
    y = x_ref[...].astype(jnp.float32) * scale_ref[...] + shift_ref[...]
    o_ref[...] = jnp.maximum(y, 0.0).astype(o_ref.dtype)


# ----------------------------------------------------------------------------
# Tiling helpers
# ----------------------------------------------------------------------------
def _round_up(x, m):
    return (x + m - 1) // m * m


def _pad_last(x, size):
    n = x.shape[-1]
    if n == size:
        return x
    return jnp.pad(x, [(0, 0)] * (x.ndim - 1) + [(0, size - n)])


def _pad2(x, rows, cols):
    r, c = x.shape
    if r == rows and c == cols:
        return x
    return jnp.pad(x, ((0, rows - r), (0, cols - c)))


def _choose_tile_n(Co):
    # Co is always a multiple of 128 here; 256-wide tiles fill the v6e/v7x MXU.
    return 256 if Co % 256 == 0 else 128


def _choose_tile_m(M, per_row_bytes, budget_bytes, cap=1024):
    """Largest tm (multiple of 8, divides M, <=cap) whose streaming tiles fit
    the VMEM budget (per_row_bytes already includes double-buffer factors);
    prefers >=2 grid steps so both v7x TensorCores get work."""
    if M <= 8:
        return M
    cands = [t for t in range(8, min(M, cap) + 1, 8)
             if M % t == 0 and t * per_row_bytes <= budget_bytes]
    if not cands:
        return 8 if M % 8 == 0 else M
    multi = [t for t in cands if M // t >= 2]
    return max(multi) if multi else max(cands)


# ----------------------------------------------------------------------------
# Pallas wrappers
# ----------------------------------------------------------------------------
def pallas_gemm_stats(A, B):
    """C(bf16) = A@B; merged per-tile stats (row0=sum, row1=sum-of-squares)."""
    M, Kd = A.shape
    Co = B.shape[1]
    tn = _choose_tile_n(Co)
    n_co = Co // tn
    b_bufs = 1 if _single_buffer_ok() else 2
    fixed = b_bufs * Kd * tn * B.dtype.itemsize + 2 * 8 * tn * 4
    per_row = 2 * Kd * A.dtype.itemsize + 2 * tn * 2        # A bf16 + C bf16, 2-buf
    tm = _choose_tile_m(M, per_row, max(_VMEM_BUDGET - fixed, 8 * per_row))
    n_m = M // tm
    C, stats = pl.pallas_call(
        _gemm_stats_kernel,
        out_shape=(
            jax.ShapeDtypeStruct((M, Co), jnp.bfloat16),
            jax.ShapeDtypeStruct((n_m * 8, Co), jnp.float32),
        ),
        grid=(n_co, n_m),            # Co outer so the weight tile stays resident
        in_specs=[
            pl.BlockSpec((tm, Kd), lambda j, i: (i, 0)),
            _const_spec((Kd, tn), lambda j, i: (0, j)),
        ],
        out_specs=(
            pl.BlockSpec((tm, tn), lambda j, i: (i, j)),
            pl.BlockSpec((8, tn), lambda j, i: (i, j)),
        ),
        compiler_params=pltpu.CompilerParams(
            dimension_semantics=("parallel", "parallel"),
            vmem_limit_bytes=_VMEM_LIMIT),
    )(A, B)
    return C, stats


def pallas_gemm_bias_tanh(A, B, bias, out_dtype=jnp.float32):
    M, Kd = A.shape
    Co = B.shape[1]
    tn = _choose_tile_n(Co)
    n_co = Co // tn
    b_bufs = 1 if _single_buffer_ok() else 2
    fixed = b_bufs * (Kd * tn * B.dtype.itemsize + tn * 4)
    per_row = 2 * Kd * A.dtype.itemsize + 2 * tn * jnp.dtype(out_dtype).itemsize
    tm = _choose_tile_m(M, per_row, max(_VMEM_BUDGET - fixed, 8 * per_row))
    return pl.pallas_call(
        _gemm_bias_tanh_kernel,
        out_shape=jax.ShapeDtypeStruct((M, Co), out_dtype),
        grid=(n_co, M // tm),
        in_specs=[
            pl.BlockSpec((tm, Kd), lambda j, i: (i, 0)),
            _const_spec((Kd, tn), lambda j, i: (0, j)),
            _const_spec((1, tn), lambda j, i: (0, j)),
        ],
        out_specs=pl.BlockSpec((tm, tn), lambda j, i: (i, j)),
        compiler_params=pltpu.CompilerParams(
            dimension_semantics=("parallel", "parallel"),
            vmem_limit_bytes=_VMEM_LIMIT),
    )(A, B, bias.reshape(1, Co))


def pallas_scale_shift_relu(x, scale, shift, out_dtype=jnp.bfloat16):
    M, Co = x.shape
    per_row = 2 * Co * (x.dtype.itemsize + jnp.dtype(out_dtype).itemsize)
    tm = _choose_tile_m(M, per_row, _VMEM_BUDGET)
    return pl.pallas_call(
        _scale_shift_relu_kernel,
        out_shape=jax.ShapeDtypeStruct((M, Co), out_dtype),
        grid=(M // tm,),
        in_specs=[
            pl.BlockSpec((tm, Co), lambda i: (i, 0)),
            _const_spec((1, Co), lambda i: (0, 0)),
            _const_spec((1, Co), lambda i: (0, 0)),
        ],
        out_specs=pl.BlockSpec((tm, Co), lambda i: (i, 0)),
        compiler_params=pltpu.CompilerParams(
            dimension_semantics=("parallel",),
            vmem_limit_bytes=_VMEM_LIMIT),
    )(x, scale.reshape(1, Co), shift.reshape(1, Co))


# ----------------------------------------------------------------------------
# ConvTranspose2d lowering (plain-JAX glue, NHWC, no zero-stuffing)
# ----------------------------------------------------------------------------
def _phase_weights_s2(w_t):
    """PyTorch weight (Cin,Cout,4,4) -> B (9*Cin, 4*Cout) for the stride-2/pad-1
    phase GEMM.  Output column = phase*Cout + co, phase = rh*2 + rw."""
    Cin, Cout = w_t.shape[0], w_t.shape[1]
    B = jnp.zeros((9, Cin, 4, Cout), w_t.dtype)
    for rh in range(2):
        for dr in range(3):
            kh = rh - 2 * dr + 3
            if not 0 <= kh <= 3:
                continue
            for rw in range(2):
                for dc in range(3):
                    kw = rw - 2 * dc + 3
                    if not 0 <= kw <= 3:
                        continue
                    B = B.at[dr * 3 + dc, :, rh * 2 + rw, :].set(w_t[:, :, kh, kw])
    return B.reshape(9 * Cin, 4 * Cout)


def _convt_lower(h, w_t, stride, padding):
    """NHWC input -> (A, B, G, Cout, unshuffle).  A:(M, Kd) patches, B:(Kd, G*Cout);
    GEMM output columns are grouped (g, co); `unshuffle` maps (M, G*Cout) -> NHWC."""
    N, H, W, Cin = h.shape
    Cout, K = w_t.shape[1], w_t.shape[2]

    if stride == 2 and padding == 1 and K == 4:
        hp = jnp.pad(h, ((0, 0), (1, 1), (1, 1), (0, 0)))
        taps = [hp[:, dr:dr + H, dc:dc + W, :] for dr in range(3) for dc in range(3)]
        A = jnp.stack(taps, axis=3).reshape(N * H * W, 9 * Cin)
        B = _phase_weights_s2(w_t)
        G = 4

        def unshuffle(C):  # (N*H*W, 4*Cout) -> (N, 2H, 2W, Cout) pixel shuffle
            C = C.reshape(N, H, W, 2, 2, Cout)
            return C.transpose(0, 1, 3, 2, 4, 5).reshape(N, 2 * H, 2 * W, Cout)

        return A, B, G, Cout, unshuffle

    if stride == 1:
        pad = K - 1 - padding
        Ho, Wo = H + 2 * pad - K + 1, W + 2 * pad - K + 1
        hp = jnp.pad(h, ((0, 0), (pad, pad), (pad, pad), (0, 0)))
        taps = [hp[:, dh:dh + Ho, dw:dw + Wo, :] for dh in range(K) for dw in range(K)]
        A = jnp.stack(taps, axis=3).reshape(N * Ho * Wo, K * K * Cin)
        B = jnp.flip(w_t, (2, 3)).transpose(2, 3, 0, 1).reshape(K * K * Cin, Cout)
        G = 1

        def unshuffle(C):
            return C.reshape(N, Ho, Wo, Cout)

        return A, B, G, Cout, unshuffle

    raise NotImplementedError("unsupported ConvTranspose2d config")


# ----------------------------------------------------------------------------
# Layers
# ----------------------------------------------------------------------------
def _convt_bn_relu(h, w_t, gamma, beta, stride, padding, eps=1e-5):
    # NB: the ConvTranspose bias is cancelled exactly by BatchNorm's mean
    # subtraction, so it is not applied here (saves a stream + add).
    A, B, G, Cout, unshuffle = _convt_lower(h, w_t, stride, padding)
    M, Kd = A.shape
    Co = G * Cout
    Kd_pad = _round_up(Kd, 128)
    Co_pad = _round_up(max(Co, 128), 128)

    Ap = _pad_last(A.astype(jnp.bfloat16), Kd_pad)
    Bp = _pad2(B.astype(jnp.bfloat16), Kd_pad, Co_pad)

    C, stats = pallas_gemm_stats(Ap, Bp)

    # Finalize batch-norm statistics per channel (training-mode, biased variance).
    n_m = stats.shape[0] // 8
    st = stats.reshape(n_m, 8, Co_pad)
    col_sum = st[:, 0, :Co].sum(axis=0)
    col_ssq = st[:, 1, :Co].sum(axis=0)
    n = M * G                              # == N*Ho*Wo samples per channel
    ch_sum = col_sum.reshape(G, Cout).sum(axis=0)
    ch_ssq = col_ssq.reshape(G, Cout).sum(axis=0)
    mean = ch_sum / n
    var = jnp.maximum(ch_ssq / n - mean * mean, 0.0)
    scale = gamma * jax.lax.rsqrt(var + eps)
    shift = beta - mean * scale

    scale_p = _pad_last(jnp.tile(scale, G), Co_pad)
    shift_p = _pad_last(jnp.tile(shift, G), Co_pad)
    Y = pallas_scale_shift_relu(C, scale_p, shift_p, out_dtype=jnp.bfloat16)
    return unshuffle(Y[:, :Co])


def _convt_tanh(h, w_t, b, stride, padding):
    A, B, G, Cout, unshuffle = _convt_lower(h, w_t, stride, padding)
    Kd = A.shape[1]
    Co = G * Cout
    Kd_pad = _round_up(Kd, 128)
    Co_pad = _round_up(max(Co, 128), 128)
    Ap = _pad_last(A.astype(jnp.bfloat16), Kd_pad)
    Bp = _pad2(B.astype(jnp.bfloat16), Kd_pad, Co_pad)
    bias_p = _pad_last(jnp.tile(b, G), Co_pad)
    Y = pallas_gemm_bias_tanh(Ap, Bp, bias_p, out_dtype=jnp.float32)
    return unshuffle(Y[:, :Co])


def dcgenerator_forward(x, params):
    """x: (N, input_dim, H, W) NCHW f32 -> (N, num_channel, Hout, Wout) NCHW f32."""
    h = jnp.transpose(x, (0, 2, 3, 1))  # NHWC; stays channels-last between layers
    cfgs = [(1, 0), (2, 1), (2, 1), (2, 1)]  # (stride, padding); K=4 everywhere
    for li, (s, p) in enumerate(cfgs):
        w, _b, gamma, beta = params[f"layer{li + 1}"]  # conv bias cancelled by BN
        h = _convt_bn_relu(h, w, gamma, beta, s, p)
    w, b = params["last"]
    out = _convt_tanh(h, w, b, 2, 1)
    return jnp.transpose(out, (0, 3, 1, 2))


# ----------------------------------------------------------------------------
# Pure-JAX f32 reference (independent code path: conv_general_dilated)
# ----------------------------------------------------------------------------
def _convt_ref(x, w_t, b, stride, padding):
    K = w_t.shape[2]
    w_conv = jnp.flip(w_t, (2, 3)).transpose(1, 0, 2, 3)  # OIHW
    pad = K - 1 - padding
    y = jax.lax.conv_general_dilated(
        x, w_conv, window_strides=(1, 1),
        padding=((pad, pad), (pad, pad)),
        lhs_dilation=(stride, stride),
        dimension_numbers=("NCHW", "OIHW", "NCHW"))
    return y + b[None, :, None, None]


def dcgenerator_reference(x, params):
    h = x
    cfgs = [(1, 0), (2, 1), (2, 1), (2, 1)]
    for li, (s, p) in enumerate(cfgs):
        w, b, gamma, beta = params[f"layer{li + 1}"]
        h = _convt_ref(h, w, b, s, p)
        mean = jnp.mean(h, axis=(0, 2, 3), keepdims=True)
        var = jnp.mean(jnp.square(h - mean), axis=(0, 2, 3), keepdims=True)
        h = jnp.maximum(
            (h - mean) * jax.lax.rsqrt(var + 1e-5) * gamma[None, :, None, None]
            + beta[None, :, None, None], 0.0)
    w, b = params["last"]
    return jnp.tanh(_convt_ref(h, w, b, 2, 1))


# ----------------------------------------------------------------------------
# Deterministic parameter init (DCGAN-style N(0, 0.02) conv weights)
# ----------------------------------------------------------------------------
def init_params(key, num_channel, input_dim, image_size):
    chs = [input_dim, image_size * 8, image_size * 4, image_size * 2,
           image_size, num_channel]
    params = {}
    keys = jax.random.split(key, 16)
    ki = 0
    for i in range(4):
        cin, cout = chs[i], chs[i + 1]
        w = 0.02 * jax.random.normal(keys[ki], (cin, cout, 4, 4), jnp.float32); ki += 1
        b = 0.01 * jax.random.normal(keys[ki], (cout,), jnp.float32); ki += 1
        gamma = 1.0 + 0.1 * jax.random.normal(keys[ki], (cout,), jnp.float32); ki += 1
        beta = 0.1 * jax.random.normal(keys[ki], (cout,), jnp.float32); ki += 1
        params[f"layer{i + 1}"] = (w, b, gamma, beta)
    cin, cout = chs[4], chs[5]
    w = 0.02 * jax.random.normal(keys[ki], (cin, cout, 4, 4), jnp.float32); ki += 1
    b = 0.01 * jax.random.normal(keys[ki], (cout,), jnp.float32)
    params["last"] = (w, b)
    return params


if __name__ == "__main__":
    # Small config: DCGenerator(num_channel=1, input_dim=8, image_size=16)
    num_channel, input_dim, image_size = 1, 8, 16
    batch = 2

    root = jax.random.PRNGKey(0)
    kp, kx = jax.random.split(root)
    params = init_params(kp, num_channel, input_dim, image_size)
    x = jax.random.normal(kx, (batch, input_dim, 1, 1), jnp.float32)

    out = jax.block_until_ready(jax.jit(dcgenerator_forward)(x, params))
    ref = jax.block_until_ready(jax.jit(dcgenerator_reference)(x, params))

    assert out.shape == (batch, num_channel, 64, 64), out.shape
    assert bool(jnp.all(jnp.isfinite(out)))
    max_err = float(jnp.max(jnp.abs(out - ref)))
    mean_err = float(jnp.mean(jnp.abs(out - ref)))
    # bf16 MXU operands + bf16 conv-output intermediate vs the all-f32 reference:
    # expect ~1e-2-scale worst-case error on the tanh output.
    assert max_err < 5e-2 and mean_err < 1e-2, (max_err, mean_err)
    print("KERNEL_OK")
</pallas_src>

<mosaic_0001>
module attributes {stable_mosaic.version = 11 : i64} {
  func.func @_gemm_stats_kernel(%arg0: i32, %arg1: i32, %arg2: memref<16x128xbf16, #tpu.memory_space<vmem>>, %arg3: memref<128x128xbf16, #tpu.memory_space<vmem>>, %arg4: memref<16x128xbf16, #tpu.memory_space<vmem>>, %arg5: memref<8x128xf32, #tpu.memory_space<vmem>>) attributes {dimension_semantics = [#tpu.dimension_semantics<parallel>, #tpu.dimension_semantics<parallel>], iteration_bounds = array<i64: 1, 2>, scalar_prefetch = 0 : i64, scratch_operands = 0 : i64, tpu.core_type = #tpu.core_type<tc>, window_params = [{transform_indices = @transform_0, window_bounds = array<i64: 16, 128>}, {transform_indices = @transform_1, window_bounds = array<i64: 128, 128>}, {transform_indices = @transform_2, window_bounds = array<i64: 16, 128>}, {transform_indices = @transform_3, window_bounds = array<i64: 8, 128>}]} {
    %c0 = arith.constant 0 : index
    %c0_0 = arith.constant 0 : index
    %0 = vector.load %arg2[%c0, %c0_0] : memref<16x128xbf16, #tpu.memory_space<vmem>>, vector<16x128xbf16>
    %c0_1 = arith.constant 0 : index
    %c0_2 = arith.constant 0 : index
    %1 = vector.load %arg3[%c0_1, %c0_2] : memref<128x128xbf16, #tpu.memory_space<vmem>>, vector<128x128xbf16>
    %cst = arith.constant dense<0.000000e+00> : vector<16x128xf32>
    %2 = tpu.matmul %0, %1, %cst {dimension_numbers = #tpu.dot_dimension_numbers<[1], [0], [0], [1], [0, 0, 1, 1], [], []>} : vector<16x128xbf16>, vector<128x128xbf16>, vector<16x128xf32> -> vector<16x128xf32>
    %3 = arith.truncf %2 : vector<16x128xf32> to vector<16x128xbf16>
    %c0_3 = arith.constant 0 : index
    %c0_4 = arith.constant 0 : index
    %4 = vector.load %arg4[%c0_3, %c0_4] : memref<16x128xbf16, #tpu.memory_space<vmem>>, vector<16x128xbf16>
    tpu.vector_store %arg4[%c0_3, %c0_4], %3 {strides = array<i32>} : memref<16x128xbf16, #tpu.memory_space<vmem>>, vector<16x128xbf16>,
    %cst_5 = arith.constant 0.000000e+00 : f32
    %5 = vector.broadcast %cst_5 : f32 to vector<8x128xf32>
    %c0_6 = arith.constant 0 : index
    %c0_7 = arith.constant 0 : index
    %6 = vector.load %arg5[%c0_6, %c0_7] : memref<8x128xf32, #tpu.memory_space<vmem>>, vector<8x128xf32>
    tpu.vector_store %arg5[%c0_6, %c0_7], %5 {strides = array<i32>} : memref<8x128xf32, #tpu.memory_space<vmem>>, vector<8x128xf32>,
    %cst_8 = arith.constant dense<0.000000e+00> : vector<128xf32>
    %7 = vector.multi_reduction <add>, %2, %cst_8 [0] : vector<16x128xf32> to vector<128xf32>
    %8 = vector.shape_cast %7 : vector<128xf32> to vector<1x128xf32>
    %c0_9 = arith.constant 0 : index
    %c0_10 = arith.constant 0 : index
    %9 = vector.load %arg5[%c0_9, %c0_10] : memref<8x128xf32, #tpu.memory_space<vmem>>, vector<1x128xf32>
    tpu.vector_store %arg5[%c0_9, %c0_10], %8 {strides = array<i32>} : memref<8x128xf32, #tpu.memory_space<vmem>>, vector<1x128xf32>,
    %10 = arith.mulf %2, %2 : vector<16x128xf32>
    %cst_11 = arith.constant dense<0.000000e+00> : vector<128xf32>
    %11 = vector.multi_reduction <add>, %10, %cst_11 [0] : vector<16x128xf32> to vector<128xf32>
    %12 = vector.shape_cast %11 : vector<128xf32> to vector<1x128xf32>
    %c1 = arith.constant 1 : index
    %c0_12 = arith.constant 0 : index
    %13 = vector.load %arg5[%c1, %c0_12] : memref<8x128xf32, #tpu.memory_space<vmem>>, vector<1x128xf32>
    tpu.vector_store %arg5[%c1, %c0_12], %12 {strides = array<i32>} : memref<8x128xf32, #tpu.memory_space<vmem>>, vector<1x128xf32>,
    return
  }
  func.func @transform_0(%arg0: i32, %arg1: i32) -> (i32, i32) {
    %c0_i32 = arith.constant 0 : i32
    %c0_i32_0 = arith.constant 0 : i32
    return %arg1, %c0_i32 : i32, i32
  }
  func.func @transform_1(%arg0: i32, %arg1: i32) -> (i32, i32) {
    %c0_i32 = arith.constant 0 : i32
    %c0_i32_0 = arith.constant 0 : i32
    return %c0_i32, %arg0 : i32, i32
  }
  func.func @transform_2(%arg0: i32, %arg1: i32) -> (i32, i32) {
    %c0_i32 = arith.constant 0 : i32
    return %arg1, %arg0 : i32, i32
  }
  func.func @transform_3(%arg0: i32, %arg1: i32) -> (i32, i32) {
    %c0_i32 = arith.constant 0 : i32
    return %arg1, %arg0 : i32, i32
  }
}

module attributes {stable_mosaic.version = 11 : i64} {
  func.func @_scale_shift_relu_kernel(%arg0: i32, %arg1: memref<16x128xbf16, #tpu.memory_space<vmem>>, %arg2: memref<1x128xf32, #tpu.memory_space<vmem>>, %arg3: memref<1x128xf32, #tpu.memory_space<vmem>>, %arg4: memref<16x128xbf16, #tpu.memory_space<vmem>>) attributes {dimension_semantics = [#tpu.dimension_semantics<parallel>], iteration_bounds = array<i64: 2>, scalar_prefetch = 0 : i64, scratch_operands = 0 : i64, tpu.core_type = #tpu.core_type<tc>, window_params = [{transform_indices = @transform_0, window_bounds = array<i64: 16, 128>}, {pipeline_mode = #tpu.pipeline_mode<synchronous>, transform_indices = @transform_1, window_bounds = array<i64: 1, 128>}, {pipeline_mode = #tpu.pipeline_mode<synchronous>, transform_indices = @transform_2, window_bounds = array<i64: 1, 128>}, {transform_indices = @transform_3, window_bounds = array<i64: 16, 128>}]} {
    %c0 = arith.constant 0 : index
    %c0_0 = arith.constant 0 : index
    %0 = vector.load %arg1[%c0, %c0_0] : memref<16x128xbf16, #tpu.memory_space<vmem>>, vector<16x128xbf16>
    %1 = arith.extf %0 : vector<16x128xbf16> to vector<16x128xf32>
    %c0_1 = arith.constant 0 : index
    %c0_2 = arith.constant 0 : index
    %2 = vector.load %arg2[%c0_1, %c0_2] : memref<1x128xf32, #tpu.memory_space<vmem>>, vector<1x128xf32>
    %3 = vector.broadcast %2 : vector<1x128xf32> to vector<16x128xf32>
    %4 = arith.mulf %1, %3 : vector<16x128xf32>
    %c0_3 = arith.constant 0 : index
    %c0_4 = arith.constant 0 : index
    %5 = vector.load %arg3[%c0_3, %c0_4] : memref<1x128xf32, #tpu.memory_space<vmem>>, vector<1x128xf32>
    %6 = vector.broadcast %5 : vector<1x128xf32> to vector<16x128xf32>
    %7 = arith.addf %4, %6 : vector<16x128xf32>
    %cst = arith.constant 0.000000e+00 : f32
    %8 = vector.broadcast %cst : f32 to vector<16x128xf32>
    %9 = arith.maximumf %7, %8 : vector<16x128xf32>
    %10 = arith.truncf %9 : vector<16x128xf32> to vector<16x128xbf16>
    %c0_5 = arith.constant 0 : index
    %c0_6 = arith.constant 0 : index
    %11 = vector.load %arg4[%c0_5, %c0_6] : memref<16x128xbf16, #tpu.memory_space<vmem>>, vector<16x128xbf16>
    tpu.vector_store %arg4[%c0_5, %c0_6], %10 {strides = array<i32>} : memref<16x128xbf16, #tpu.memory_space<vmem>>, vector<16x128xbf16>,
    return
  }
  func.func @transform_0(%arg0: i32) -> (i32, i32) {
    %c0_i32 = arith.constant 0 : i32
    %c0_i32_0 = arith.constant 0 : i32
    return %arg0, %c0_i32 : i32, i32
  }
  func.func @transform_1(%arg0: i32) -> (i32, i32) {
    %c0_i32 = arith.constant 0 : i32
    %c0_i32_0 = arith.constant 0 : i32
    %c0_i32_1 = arith.constant 0 : i32
    return %c0_i32, %c0_i32_0 : i32, i32
  }
  func.func @transform_2(%arg0: i32) -> (i32, i32) {
    %c0_i32 = arith.constant 0 : i32
    %c0_i32_0 = arith.constant 0 : i32
    %c0_i32_1 = arith.constant 0 : i32
    return %c0_i32, %c0_i32_0 : i32, i32
  }
  func.func @transform_3(%arg0: i32) -> (i32, i32) {
    %c0_i32 = arith.constant 0 : i32
    %c0_i32_0 = arith.constant 0 : i32
    return %arg0, %c0_i32 : i32, i32
  }
}

module attributes {stable_mosaic.version = 11 : i64} {
  func.func @_gemm_stats_kernel(%arg0: i32, %arg1: i32, %arg2: memref<16x1152xbf16, #tpu.memory_space<vmem>>, %arg3: memref<1152x256xbf16, #tpu.memory_space<vmem>>, %arg4: memref<16x256xbf16, #tpu.memory_space<vmem>>, %arg5: memref<8x256xf32, #tpu.memory_space<vmem>>) attributes {dimension_semantics = [#tpu.dimension_semantics<parallel>, #tpu.dimension_semantics<parallel>], iteration_bounds = array<i64: 1, 2>, scalar_prefetch = 0 : i64, scratch_operands = 0 : i64, tpu.core_type = #tpu.core_type<tc>, window_params = [{transform_indices = @transform_0, window_bounds = array<i64: 16, 1152>}, {transform_indices = @transform_1, window_bounds = array<i64: 1152, 256>}, {transform_indices = @transform_2, window_bounds = array<i64: 16, 256>}, {transform_indices = @transform_3, window_bounds = array<i64: 8, 256>}]} {
    %c0 = arith.constant 0 : index
    %c0_0 = arith.constant 0 : index
    %0 = vector.load %arg2[%c0, %c0_0] : memref<16x1152xbf16, #tpu.memory_space<vmem>>, vector<16x1152xbf16>
    %c0_1 = arith.constant 0 : index
    %c0_2 = arith.constant 0 : index
    %1 = vector.load %arg3[%c0_1, %c0_2] : memref<1152x256xbf16, #tpu.memory_space<vmem>>, vector<1152x256xbf16>
    %cst = arith.constant dense<0.000000e+00> : vector<16x256xf32>
    %2 = tpu.matmul %0, %1, %cst {dimension_numbers = #tpu.dot_dimension_numbers<[1], [0], [0], [1], [0, 0, 1, 1], [], []>} : vector<16x1152xbf16>, vector<1152x256xbf16>, vector<16x256xf32> -> vector<16x256xf32>
    %3 = arith.truncf %2 : vector<16x256xf32> to vector<16x256xbf16>
    %c0_3 = arith.constant 0 : index
    %c0_4 = arith.constant 0 : index
    %4 = vector.load %arg4[%c0_3, %c0_4] : memref<16x256xbf16, #tpu.memory_space<vmem>>, vector<16x256xbf16>
    tpu.vector_store %arg4[%c0_3, %c0_4], %3 {strides = array<i32>} : memref<16x256xbf16, #tpu.memory_space<vmem>>, vector<16x256xbf16>,
    %cst_5 = arith.constant 0.000000e+00 : f32
    %5 = vector.broadcast %cst_5 : f32 to vector<8x256xf32>
    %c0_6 = arith.constant 0 : index
    %c0_7 = arith.constant 0 : index
    %6 = vector.load %arg5[%c0_6, %c0_7] : memref<8x256xf32, #tpu.memory_space<vmem>>, vector<8x256xf32>
    tpu.vector_store %arg5[%c0_6, %c0_7], %5 {strides = array<i32>} : memref<8x256xf32, #tpu.memory_space<vmem>>, vector<8x256xf32>,
    %cst_8 = arith.constant dense<0.000000e+00> : vector<256xf32>
    %7 = vector.multi_reduction <add>, %2, %cst_8 [0] : vector<16x256xf32> to vector<256xf32>
    %8 = vector.shape_cast %7 : vector<256xf32> to vector<1x256xf32>
    %c0_9 = arith.constant 0 : index
    %c0_10 = arith.constant 0 : index
    %9 = vector.load %arg5[%c0_9, %c0_10] : memref<8x256xf32, #tpu.memory_space<vmem>>, vector<1x256xf32>
    tpu.vector_store %arg5[%c0_9, %c0_10], %8 {strides = array<i32>} : memref<8x256xf32, #tpu.memory_space<vmem>>, vector<1x256xf32>,
    %10 = arith.mulf %2, %2 : vector<16x256xf32>
    %cst_11 = arith.constant dense<0.000000e+00> : vector<256xf32>
    %11 = vector.multi_reduction <add>, %10, %cst_11 [0] : vector<16x256xf32> to vector<256xf32>
    %12 = vector.shape_cast %11 : vector<256xf32> to vector<1x256xf32>
    %c1 = arith.constant 1 : index
    %c0_12 = arith.constant 0 : index
    %13 = vector.load %arg5[%c1, %c0_12] : memref<8x256xf32, #tpu.memory_space<vmem>>, vector<1x256xf32>
    tpu.vector_store %arg5[%c1, %c0_12], %12 {strides = array<i32>} : memref<8x256xf32, #tpu.memory_space<vmem>>, vector<1x256xf32>,
    return
  }
  func.func @transform_0(%arg0: i32, %arg1: i32) -> (i32, i32) {
    %c0_i32 = arith.constant 0 : i32
    %c0_i32_0 = arith.constant 0 : i32
    return %arg1, %c0_i32 : i32, i32
  }
  func.func @transform_1(%arg0: i32, %arg1: i32) -> (i32, i32) {
    %c0_i32 = arith.constant 0 : i32
    %c0_i32_0 = arith.constant 0 : i32
    return %c0_i32, %arg0 : i32, i32
  }
  func.func @transform_2(%arg0: i32, %arg1: i32) -> (i32, i32) {
    %c0_i32 = arith.constant 0 : i32
    return %arg1, %arg0 : i32, i32
  }
  func.func @transform_3(%arg0: i32, %arg1: i32) -> (i32, i32) {
    %c0_i32 = arith.constant 0 : i32
    return %arg1, %arg0 : i32, i32
  }
}

module attributes {stable_mosaic.version = 11 : i64} {
  func.func @_scale_shift_relu_kernel(%arg0: i32, %arg1: memref<16x256xbf16, #tpu.memory_space<vmem>>, %arg2: memref<1x256xf32, #tpu.memory_space<vmem>>, %arg3: memref<1x256xf32, #tpu.memory_space<vmem>>, %arg4: memref<16x256xbf16, #tpu.memory_space<vmem>>) attributes {dimension_semantics = [#tpu.dimension_semantics<parallel>], iteration_bounds = array<i64: 2>, scalar_prefetch = 0 : i64, scratch_operands = 0 : i64, tpu.core_type = #tpu.core_type<tc>, window_params = [{transform_indices = @transform_0, window_bounds = array<i64: 16, 256>}, {pipeline_mode = #tpu.pipeline_mode<synchronous>, transform_indices = @transform_1, window_bounds = array<i64: 1, 256>}, {pipeline_mode = #tpu.pipeline_mode<synchronous>, transform_indices = @transform_2, window_bounds = array<i64: 1, 256>}, {transform_indices = @transform_3, window_bounds = array<i64: 16, 256>}]} {
    %c0 = arith.constant 0 : index
    %c0_0 = arith.constant 0 : index
    %0 = vector.load %arg1[%c0, %c0_0] : memref<16x256xbf16, #tpu.memory_space<vmem>>, vector<16x256xbf16>
    %1 = arith.extf %0 : vector<16x256xbf16> to vector<16x256xf32>
    %c0_1 = arith.constant 0 : index
    %c0_2 = arith.constant 0 : index
    %2 = vector.load %arg2[%c0_1, %c0_2] : memref<1x256xf32, #tpu.memory_space<vmem>>, vector<1x256xf32>
    %3 = vector.broadcast %2 : vector<1x256xf32> to vector<16x256xf32>
    %4 = arith.mulf %1, %3 : vector<16x256xf32>
    %c0_3 = arith.constant 0 : index
    %c0_4 = arith.constant 0 : index
    %5 = vector.load %arg3[%c0_3, %c0_4] : memref<1x256xf32, #tpu.memory_space<vmem>>, vector<1x256xf32>
    %6 = vector.broadcast %5 : vector<1x256xf32> to vector<16x256xf32>
    %7 = arith.addf %4, %6 : vector<16x256xf32>
    %cst = arith.constant 0.000000e+00 : f32
    %8 = vector.broadcast %cst : f32 to vector<16x256xf32>
    %9 = arith.maximumf %7, %8 : vector<16x256xf32>
    %10 = arith.truncf %9 : vector<16x256xf32> to vector<16x256xbf16>
    %c0_5 = arith.constant 0 : index
    %c0_6 = arith.constant 0 : index
    %11 = vector.load %arg4[%c0_5, %c0_6] : memref<16x256xbf16, #tpu.memory_space<vmem>>, vector<16x256xbf16>
    tpu.vector_store %arg4[%c0_5, %c0_6], %10 {strides = array<i32>} : memref<16x256xbf16, #tpu.memory_space<vmem>>, vector<16x256xbf16>,
    return
  }
  func.func @transform_0(%arg0: i32) -> (i32, i32) {
    %c0_i32 = arith.constant 0 : i32
    %c0_i32_0 = arith.constant 0 : i32
    return %arg0, %c0_i32 : i32, i32
  }
  func.func @transform_1(%arg0: i32) -> (i32, i32) {
    %c0_i32 = arith.constant 0 : i32
    %c0_i32_0 = arith.constant 0 : i32
    %c0_i32_1 = arith.constant 0 : i32
    return %c0_i32, %c0_i32_0 : i32, i32
  }
  func.func @transform_2(%arg0: i32) -> (i32, i32) {
    %c0_i32 = arith.constant 0 : i32
    %c0_i32_0 = arith.constant 0 : i32
    %c0_i32_1 = arith.constant 0 : i32
    return %c0_i32, %c0_i32_0 : i32, i32
  }
  func.func @transform_3(%arg0: i32) -> (i32, i32) {
    %c0_i32 = arith.constant 0 : i32
    %c0_i32_0 = arith.constant 0 : i32
    return %arg0, %c0_i32 : i32, i32
  }
}

module attributes {stable_mosaic.version = 11 : i64} {
  func.func @_gemm_stats_kernel(%arg0: i32, %arg1: i32, %arg2: memref<64x640xbf16, #tpu.memory_space<vmem>>, %arg3: memref<640x128xbf16, #tpu.memory_space<vmem>>, %arg4: memref<64x128xbf16, #tpu.memory_space<vmem>>, %arg5: memref<8x128xf32, #tpu.memory_space<vmem>>) attributes {dimension_semantics = [#tpu.dimension_semantics<parallel>, #tpu.dimension_semantics<parallel>], iteration_bounds = array<i64: 1, 2>, scalar_prefetch = 0 : i64, scratch_operands = 0 : i64, tpu.core_type = #tpu.core_type<tc>, window_params = [{transform_indices = @transform_0, window_bounds = array<i64: 64, 640>}, {transform_indices = @transform_1, window_bounds = array<i64: 640, 128>}, {transform_indices = @transform_2, window_bounds = array<i64: 64, 128>}, {transform_indices = @transform_3, window_bounds = array<i64: 8, 128>}]} {
    %c0 = arith.constant 0 : index
    %c0_0 = arith.constant 0 : index
    %0 = vector.load %arg2[%c0, %c0_0] : memref<64x640xbf16, #tpu.memory_space<vmem>>, vector<64x640xbf16>
    %c0_1 = arith.constant 0 : index
    %c0_2 = arith.constant 0 : index
    %1 = vector.load %arg3[%c0_1, %c0_2] : memref<640x128xbf16, #tpu.memory_space<vmem>>, vector<640x128xbf16>
    %cst = arith.constant dense<0.000000e+00> : vector<64x128xf32>
    %2 = tpu.matmul %0, %1, %cst {dimension_numbers = #tpu.dot_dimension_numbers<[1], [0], [0], [1], [0, 0, 1, 1], [], []>} : vector<64x640xbf16>, vector<640x128xbf16>, vector<64x128xf32> -> vector<64x128xf32>
    %3 = arith.truncf %2 : vector<64x128xf32> to vector<64x128xbf16>
    %c0_3 = arith.constant 0 : index
    %c0_4 = arith.constant 0 : index
    %4 = vector.load %arg4[%c0_3, %c0_4] : memref<64x128xbf16, #tpu.memory_space<vmem>>, vector<64x128xbf16>
    tpu.vector_store %arg4[%c0_3, %c0_4], %3 {strides = array<i32>} : memref<64x128xbf16, #tpu.memory_space<vmem>>, vector<64x128xbf16>,
    %cst_5 = arith.constant 0.000000e+00 : f32
    %5 = vector.broadcast %cst_5 : f32 to vector<8x128xf32>
    %c0_6 = arith.constant 0 : index
    %c0_7 = arith.constant 0 : index
    %6 = vector.load %arg5[%c0_6, %c0_7] : memref<8x128xf32, #tpu.memory_space<vmem>>, vector<8x128xf32>
    tpu.vector_store %arg5[%c0_6, %c0_7], %5 {strides = array<i32>} : memref<8x128xf32, #tpu.memory_space<vmem>>, vector<8x128xf32>,
    %cst_8 = arith.constant dense<0.000000e+00> : vector<128xf32>
    %7 = vector.multi_reduction <add>, %2, %cst_8 [0] : vector<64x128xf32> to vector<128xf32>
    %8 = vector.shape_cast %7 : vector<128xf32> to vector<1x128xf32>
    %c0_9 = arith.constant 0 : index
    %c0_10 = arith.constant 0 : index
    %9 = vector.load %arg5[%c0_9, %c0_10] : memref<8x128xf32, #tpu.memory_space<vmem>>, vector<1x128xf32>
    tpu.vector_store %arg5[%c0_9, %c0_10], %8 {strides = array<i32>} : memref<8x128xf32, #tpu.memory_space<vmem>>, vector<1x128xf32>,
    %10 = arith.mulf %2, %2 : vector<64x128xf32>
    %cst_11 = arith.constant dense<0.000000e+00> : vector<128xf32>
    %11 = vector.multi_reduction <add>, %10, %cst_11 [0] : vector<64x128xf32> to vector<128xf32>
    %12 = vector.shape_cast %11 : vector<128xf32> to vector<1x128xf32>
    %c1 = arith.constant 1 : index
    %c0_12 = arith.constant 0 : index
    %13 = vector.load %arg5[%c1, %c0_12] : memref<8x128xf32, #tpu.memory_space<vmem>>, vector<1x128xf32>
    tpu.vector_store %arg5[%c1, %c0_12], %12 {strides = array<i32>} : memref<8x128xf32, #tpu.memory_space<vmem>>, vector<1x128xf32>,
    return
  }
  func.func @transform_0(%arg0: i32, %arg1: i32) -> (i32, i32) {
    %c0_i32 = arith.constant 0 : i32
    %c0_i32_0 = arith.constant 0 : i32
    return %arg1, %c0_i32 : i32, i32
  }
  func.func @transform_1(%arg0: i32, %arg1: i32) -> (i32, i32) {
    %c0_i32 = arith.constant 0 : i32
    %c0_i32_0 = arith.constant 0 : i32
    return %c0_i32, %arg0 : i32, i32
  }
  func.func @transform_2(%arg0: i32, %arg1: i32) -> (i32, i32) {
    %c0_i32 = arith.constant 0 : i32
    return %arg1, %arg0 : i32, i32
  }
  func.func @transform_3(%arg0: i32, %arg1: i32) -> (i32, i32) {
    %c0_i32 = arith.constant 0 : i32
    return %arg1, %arg0 : i32, i32
  }
}

module attributes {stable_mosaic.version = 11 : i64} {
  func.func @_scale_shift_relu_kernel(%arg0: i32, %arg1: memref<64x128xbf16, #tpu.memory_space<vmem>>, %arg2: memref<1x128xf32, #tpu.memory_space<vmem>>, %arg3: memref<1x128xf32, #tpu.memory_space<vmem>>, %arg4: memref<64x128xbf16, #tpu.memory_space<vmem>>) attributes {dimension_semantics = [#tpu.dimension_semantics<parallel>], iteration_bounds = array<i64: 2>, scalar_prefetch = 0 : i64, scratch_operands = 0 : i64, tpu.core_type = #tpu.core_type<tc>, window_params = [{transform_indices = @transform_0, window_bounds = array<i64: 64, 128>}, {pipeline_mode = #tpu.pipeline_mode<synchronous>, transform_indices = @transform_1, window_bounds = array<i64: 1, 128>}, {pipeline_mode = #tpu.pipeline_mode<synchronous>, transform_indices = @transform_2, window_bounds = array<i64: 1, 128>}, {transform_indices = @transform_3, window_bounds = array<i64: 64, 128>}]} {
    %c0 = arith.constant 0 : index
    %c0_0 = arith.constant 0 : index
    %0 = vector.load %arg1[%c0, %c0_0] : memref<64x128xbf16, #tpu.memory_space<vmem>>, vector<64x128xbf16>
    %1 = arith.extf %0 : vector<64x128xbf16> to vector<64x128xf32>
    %c0_1 = arith.constant 0 : index
    %c0_2 = arith.constant 0 : index
    %2 = vector.load %arg2[%c0_1, %c0_2] : memref<1x128xf32, #tpu.memory_space<vmem>>, vector<1x128xf32>
    %3 = vector.broadcast %2 : vector<1x128xf32> to vector<64x128xf32>
    %4 = arith.mulf %1, %3 : vector<64x128xf32>
    %c0_3 = arith.constant 0 : index
    %c0_4 = arith.constant 0 : index
    %5 = vector.load %arg3[%c0_3, %c0_4] : memref<1x128xf32, #tpu.memory_space<vmem>>, vector<1x128xf32>
    %6 = vector.broadcast %5 : vector<1x128xf32> to vector<64x128xf32>
    %7 = arith.addf %4, %6 : vector<64x128xf32>
    %cst = arith.constant 0.000000e+00 : f32
    %8 = vector.broadcast %cst : f32 to vector<64x128xf32>
    %9 = arith.maximumf %7, %8 : vector<64x128xf32>
    %10 = arith.truncf %9 : vector<64x128xf32> to vector<64x128xbf16>
    %c0_5 = arith.constant 0 : index
    %c0_6 = arith.constant 0 : index
    %11 = vector.load %arg4[%c0_5, %c0_6] : memref<64x128xbf16, #tpu.memory_space<vmem>>, vector<64x128xbf16>
    tpu.vector_store %arg4[%c0_5, %c0_6], %10 {strides = array<i32>} : memref<64x128xbf16, #tpu.memory_space<vmem>>, vector<64x128xbf16>,
    return
  }
  func.func @transform_0(%arg0: i32) -> (i32, i32) {
    %c0_i32 = arith.constant 0 : i32
    %c0_i32_0 = arith.constant 0 : i32
    return %arg0, %c0_i32 : i32, i32
  }
  func.func @transform_1(%arg0: i32) -> (i32, i32) {
    %c0_i32 = arith.constant 0 : i32
    %c0_i32_0 = arith.constant 0 : i32
    %c0_i32_1 = arith.constant 0 : i32
    return %c0_i32, %c0_i32_0 : i32, i32
  }
  func.func @transform_2(%arg0: i32) -> (i32, i32) {
    %c0_i32 = arith.constant 0 : i32
    %c0_i32_0 = arith.constant 0 : i32
    %c0_i32_1 = arith.constant 0 : i32
    return %c0_i32, %c0_i32_0 : i32, i32
  }
  func.func @transform_3(%arg0: i32) -> (i32, i32) {
    %c0_i32 = arith.constant 0 : i32
    %c0_i32_0 = arith.constant 0 : i32
    return %arg0, %c0_i32 : i32, i32
  }
}

module attributes {stable_mosaic.version = 11 : i64} {
  func.func @_gemm_stats_kernel(%arg0: i32, %arg1: i32, %arg2: memref<256x384xbf16, #tpu.memory_space<vmem>>, %arg3: memref<384x128xbf16, #tpu.memory_space<vmem>>, %arg4: memref<256x128xbf16, #tpu.memory_space<vmem>>, %arg5: memref<8x128xf32, #tpu.memory_space<vmem>>) attributes {dimension_semantics = [#tpu.dimension_semantics<parallel>, #tpu.dimension_semantics<parallel>], iteration_bounds = array<i64: 1, 2>, scalar_prefetch = 0 : i64, scratch_operands = 0 : i64, tpu.core_type = #tpu.core_type<tc>, window_params = [{transform_indices = @transform_0, window_bounds = array<i64: 256, 384>}, {transform_indices = @transform_1, window_bounds = array<i64: 384, 128>}, {transform_indices = @transform_2, window_bounds = array<i64: 256, 128>}, {transform_indices = @transform_3, window_bounds = array<i64: 8, 128>}]} {
    %c0 = arith.constant 0 : index
    %c0_0 = arith.constant 0 : index
    %0 = vector.load %arg2[%c0, %c0_0] : memref<256x384xbf16, #tpu.memory_space<vmem>>, vector<256x384xbf16>
    %c0_1 = arith.constant 0 : index
    %c0_2 = arith.constant 0 : index
    %1 = vector.load %arg3[%c0_1, %c0_2] : memref<384x128xbf16, #tpu.memory_space<vmem>>, vector<384x128xbf16>
    %cst = arith.constant dense<0.000000e+00> : vector<256x128xf32>
    %2 = tpu.matmul %0, %1, %cst {dimension_numbers = #tpu.dot_dimension_numbers<[1], [0], [0], [1], [0, 0, 1, 1], [], []>} : vector<256x384xbf16>, vector<384x128xbf16>, vector<256x128xf32> -> vector<256x128xf32>
    %3 = arith.truncf %2 : vector<256x128xf32> to vector<256x128xbf16>
    %c0_3 = arith.constant 0 : index
    %c0_4 = arith.constant 0 : index
    %4 = vector.load %arg4[%c0_3, %c0_4] : memref<256x128xbf16, #tpu.memory_space<vmem>>, vector<256x128xbf16>
    tpu.vector_store %arg4[%c0_3, %c0_4], %3 {strides = array<i32>} : memref<256x128xbf16, #tpu.memory_space<vmem>>, vector<256x128xbf16>,
    %cst_5 = arith.constant 0.000000e+00 : f32
    %5 = vector.broadcast %cst_5 : f32 to vector<8x128xf32>
    %c0_6 = arith.constant 0 : index
    %c0_7 = arith.constant 0 : index
    %6 = vector.load %arg5[%c0_6, %c0_7] : memref<8x128xf32, #tpu.memory_space<vmem>>, vector<8x128xf32>
    tpu.vector_store %arg5[%c0_6, %c0_7], %5 {strides = array<i32>} : memref<8x128xf32, #tpu.memory_space<vmem>>, vector<8x128xf32>,
    %cst_8 = arith.constant dense<0.000000e+00> : vector<128xf32>
    %7 = vector.multi_reduction <add>, %2, %cst_8 [0] : vector<256x128xf32> to vector<128xf32>
    %8 = vector.shape_cast %7 : vector<128xf32> to vector<1x128xf32>
    %c0_9 = arith.constant 0 : index
    %c0_10 = arith.constant 0 : index
    %9 = vector.load %arg5[%c0_9, %c0_10] : memref<8x128xf32, #tpu.memory_space<vmem>>, vector<1x128xf32>
    tpu.vector_store %arg5[%c0_9, %c0_10], %8 {strides = array<i32>} : memref<8x128xf32, #tpu.memory_space<vmem>>, vector<1x128xf32>,
    %10 = arith.mulf %2, %2 : vector<256x128xf32>
    %cst_11 = arith.constant dense<0.000000e+00> : vector<128xf32>
    %11 = vector.multi_reduction <add>, %10, %cst_11 [0] : vector<256x128xf32> to vector<128xf32>
    %12 = vector.shape_cast %11 : vector<128xf32> to vector<1x128xf32>
    %c1 = arith.constant 1 : index
    %c0_12 = arith.constant 0 : index
    %13 = vector.load %arg5[%c1, %c0_12] : memref<8x128xf32, #tpu.memory_space<vmem>>, vector<1x128xf32>
    tpu.vector_store %arg5[%c1, %c0_12], %12 {strides = array<i32>} : memref<8x128xf32, #tpu.memory_space<vmem>>, vector<1x128xf32>,
    return
  }
  func.func @transform_0(%arg0: i32, %arg1: i32) -> (i32, i32) {
    %c0_i32 = arith.constant 0 : i32
    %c0_i32_0 = arith.constant 0 : i32
    return %arg1, %c0_i32 : i32, i32
  }
  func.func @transform_1(%arg0: i32, %arg1: i32) -> (i32, i32) {
    %c0_i32 = arith.constant 0 : i32
    %c0_i32_0 = arith.constant 0 : i32
    return %c0_i32, %arg0 : i32, i32
  }
  func.func @transform_2(%arg0: i32, %arg1: i32) -> (i32, i32) {
    %c0_i32 = arith.constant 0 : i32
    return %arg1, %arg0 : i32, i32
  }
  func.func @transform_3(%arg0: i32, %arg1: i32) -> (i32, i32) {
    %c0_i32 = arith.constant 0 : i32
    return %arg1, %arg0 : i32, i32
  }
}

module attributes {stable_mosaic.version = 11 : i64} {
  func.func @_scale_shift_relu_kernel(%arg0: i32, %arg1: memref<256x128xbf16, #tpu.memory_space<vmem>>, %arg2: memref<1x128xf32, #tpu.memory_space<vmem>>, %arg3: memref<1x128xf32, #tpu.memory_space<vmem>>, %arg4: memref<256x128xbf16, #tpu.memory_space<vmem>>) attributes {dimension_semantics = [#tpu.dimension_semantics<parallel>], iteration_bounds = array<i64: 2>, scalar_prefetch = 0 : i64, scratch_operands = 0 : i64, tpu.core_type = #tpu.core_type<tc>, window_params = [{transform_indices = @transform_0, window_bounds = array<i64: 256, 128>}, {pipeline_mode = #tpu.pipeline_mode<synchronous>, transform_indices = @transform_1, window_bounds = array<i64: 1, 128>}, {pipeline_mode = #tpu.pipeline_mode<synchronous>, transform_indices = @transform_2, window_bounds = array<i64: 1, 128>}, {transform_indices = @transform_3, window_bounds = array<i64: 256, 128>}]} {
    %c0 = arith.constant 0 : index
    %c0_0 = arith.constant 0 : index
    %0 = vector.load %arg1[%c0, %c0_0] : memref<256x128xbf16, #tpu.memory_space<vmem>>, vector<256x128xbf16>
    %1 = arith.extf %0 : vector<256x128xbf16> to vector<256x128xf32>
    %c0_1 = arith.constant 0 : index
    %c0_2 = arith.constant 0 : index
    %2 = vector.load %arg2[%c0_1, %c0_2] : memref<1x128xf32, #tpu.memory_space<vmem>>, vector<1x128xf32>
    %3 = vector.broadcast %2 : vector<1x128xf32> to vector<256x128xf32>
    %4 = arith.mulf %1, %3 : vector<256x128xf32>
    %c0_3 = arith.constant 0 : index
    %c0_4 = arith.constant 0 : index
    %5 = vector.load %arg3[%c0_3, %c0_4] : memref<1x128xf32, #tpu.memory_space<vmem>>, vector<1x128xf32>
    %6 = vector.broadcast %5 : vector<1x128xf32> to vector<256x128xf32>
    %7 = arith.addf %4, %6 : vector<256x128xf32>
    %cst = arith.constant 0.000000e+00 : f32
    %8 = vector.broadcast %cst : f32 to vector<256x128xf32>
    %9 = arith.maximumf %7, %8 : vector<256x128xf32>
    %10 = arith.truncf %9 : vector<256x128xf32> to vector<256x128xbf16>
    %c0_5 = arith.constant 0 : index
    %c0_6 = arith.constant 0 : index
    %11 = vector.load %arg4[%c0_5, %c0_6] : memref<256x128xbf16, #tpu.memory_space<vmem>>, vector<256x128xbf16>
    tpu.vector_store %arg4[%c0_5, %c0_6], %10 {strides = array<i32>} : memref<256x128xbf16, #tpu.memory_space<vmem>>, vector<256x128xbf16>,
    return
  }
  func.func @transform_0(%arg0: i32) -> (i32, i32) {
    %c0_i32 = arith.constant 0 : i32
    %c0_i32_0 = arith.constant 0 : i32
    return %arg0, %c0_i32 : i32, i32
  }
  func.func @transform_1(%arg0: i32) -> (i32, i32) {
    %c0_i32 = arith.constant 0 : i32
    %c0_i32_0 = arith.constant 0 : i32
    %c0_i32_1 = arith.constant 0 : i32
    return %c0_i32, %c0_i32_0 : i32, i32
  }
  func.func @transform_2(%arg0: i32) -> (i32, i32) {
    %c0_i32 = arith.constant 0 : i32
    %c0_i32_0 = arith.constant 0 : i32
    %c0_i32_1 = arith.constant 0 : i32
    return %c0_i32, %c0_i32_0 : i32, i32
  }
  func.func @transform_3(%arg0: i32) -> (i32, i32) {
    %c0_i32 = arith.constant 0 : i32
    %c0_i32_0 = arith.constant 0 : i32
    return %arg0, %c0_i32 : i32, i32
  }
}

module attributes {stable_mosaic.version = 11 : i64} {
  func.func @_gemm_bias_tanh_kernel(%arg0: i32, %arg1: i32, %arg2: memref<1024x256xbf16, #tpu.memory_space<vmem>>, %arg3: memref<256x128xbf16, #tpu.memory_space<vmem>>, %arg4: memref<1x128xf32, #tpu.memory_space<vmem>>, %arg5: memref<1024x128xf32, #tpu.memory_space<vmem>>) attributes {dimension_semantics = [#tpu.dimension_semantics<parallel>, #tpu.dimension_semantics<parallel>], iteration_bounds = array<i64: 1, 2>, scalar_prefetch = 0 : i64, scratch_operands = 0 : i64, tpu.core_type = #tpu.core_type<tc>, window_params = [{transform_indices = @transform_0, window_bounds = array<i64: 1024, 256>}, {transform_indices = @transform_1, window_bounds = array<i64: 256, 128>}, {transform_indices = @transform_2, window_bounds = array<i64: 1, 128>}, {transform_indices = @transform_3, window_bounds = array<i64: 1024, 128>}]} {
    %c0 = arith.constant 0 : index
    %c0_0 = arith.constant 0 : index
    %0 = vector.load %arg2[%c0, %c0_0] : memref<1024x256xbf16, #tpu.memory_space<vmem>>, vector<1024x256xbf16>
    %c0_1 = arith.constant 0 : index
    %c0_2 = arith.constant 0 : index
    %1 = vector.load %arg3[%c0_1, %c0_2] : memref<256x128xbf16, #tpu.memory_space<vmem>>, vector<256x128xbf16>
    %cst = arith.constant dense<0.000000e+00> : vector<1024x128xf32>
    %2 = tpu.matmul %0, %1, %cst {dimension_numbers = #tpu.dot_dimension_numbers<[1], [0], [0], [1], [0, 0, 1, 1], [], []>} : vector<1024x256xbf16>, vector<256x128xbf16>, vector<1024x128xf32> -> vector<1024x128xf32>
    %c0_3 = arith.constant 0 : index
    %c0_4 = arith.constant 0 : index
    %3 = vector.load %arg4[%c0_3, %c0_4] : memref<1x128xf32, #tpu.memory_space<vmem>>, vector<1x128xf32>
    %4 = vector.broadcast %3 : vector<1x128xf32> to vector<1024x128xf32>
    %5 = arith.addf %2, %4 : vector<1024x128xf32>
    %6 = math.tanh %5 : vector<1024x128xf32>
    %c0_5 = arith.constant 0 : index
    %c0_6 = arith.constant 0 : index
    %7 = vector.load %arg5[%c0_5, %c0_6] : memref<1024x128xf32, #tpu.memory_space<vmem>>, vector<1024x128xf32>
    tpu.vector_store %arg5[%c0_5, %c0_6], %6 {strides = array<i32>} : memref<1024x128xf32, #tpu.memory_space<vmem>>, vector<1024x128xf32>,
    return
  }
  func.func @transform_0(%arg0: i32, %arg1: i32) -> (i32, i32) {
    %c0_i32 = arith.constant 0 : i32
    %c0_i32_0 = arith.constant 0 : i32
    return %arg1, %c0_i32 : i32, i32
  }
  func.func @transform_1(%arg0: i32, %arg1: i32) -> (i32, i32) {
    %c0_i32 = arith.constant 0 : i32
    %c0_i32_0 = arith.constant 0 : i32
    return %c0_i32, %arg0 : i32, i32
  }
  func.func @transform_2(%arg0: i32, %arg1: i32) -> (i32, i32) {
    %c0_i32 = arith.constant 0 : i32
    %c0_i32_0 = arith.constant 0 : i32
    return %c0_i32, %arg0 : i32, i32
  }
  func.func @transform_3(%arg0: i32, %arg1: i32) -> (i32, i32) {
    %c0_i32 = arith.constant 0 : i32
    return %arg1, %arg0 : i32, i32
  }
}

</mosaic_0001>

<bundles_post_ra>
// kernel: dcgenerator_forward.10
= control target key start
LH: loop header
LB: loop body
LE: loop exit
PB: predicated region body
PF: predicated region fallthrough
CT: control target
= control target key end

     0   :  { %s326_s12 = smov 0   ;;  %s343_s0 = inlined_call_operand.vmem [shape: bf16[32,128], index: 0, kind: input, shape index: {}]   ;;  %s344_s1 = inlined_call_operand.vmem [shape: f32[1,128], index: 1, kind: input, shape index: {}]   ;;  %s345_s2 = inlined_call_operand.vmem [shape: f32[1,128], index: 2, kind: input, shape index: {}]   ;;  %s346_s3 = inlined_call_operand.vmem [shape: bf16[32,128], index: 3, kind: output, shape index: {}]  }
   0x1 LB: > { %s264_s13 = sadd.s32 4294967295, %s304_s12   ;;  %p268_p0 = scmp.ge.s32.totalorder %s304_s12, 1  ;;  %s304_s12 = sphi %s326_s12, %s13_s12  }
   0x2   : > { %p138_p1 = scmp.lt.s32.totalorder %s304_s12, 3 }
   0x4   : > { %p139_p2 = pnand %p268_p0, %p138_p1 }
   0x5   : > { %s269_s14 = sshll.u32 (!%p139_p2), %s264_s13, 1 }
   0x6   : > { %142 = sbr.rel (%p139_p2) target bundleno = 26 (0x1a), region = 32  ;;  %p163_p3 = scmp.lt.s32.totalorder (!%p139_p2), %s269_s14, 3 }
   0xb   : > { %s348_s14 = smov (!%p163_p3, %s269_s14), 3  ;;  %v273_v1 = vld [vmem:[%s344_s1] ss:$0 sm:$0xff] }
   0xc   : > { %s270_s15 = sshll.u32 %s348_s14, 2  ;;  %v274_v4 = vld [vmem:[%s345_s2] ss:$0 sm:$0xff] }
   0xd   : > { %s166_s18 = scalar_lea.vmem %s343_s0, %s270_s15  ;;  %s172_s25 = scalar_lea.vmem %s346_s3, %s270_s15 }
   0xe   : > { %v282_v0 = vld [vmem:[%s166_s18] sm:$0xff]  }
   0xf   : > { %v283_v2 = vunpack.c.l.bf16 %v282_v0  ;;  %v284_v3 = vunpack.c.h.bf16 %v282_v0 }
  0x11   : > { %v185_v5 = vmul.f32 %v283_v2, %v273_v1  ;;  %v186_v6 = vmul.f32 %v284_v3, %v273_v1 }
  0x13   : > { %v194_v7 = vadd.f32 %v274_v4, %v185_v5  ;;  %v195_v8 = vadd.f32 %v274_v4, %v186_v6 }
  0x15   : > { %v196_v9 = vmax.f32 %v194_v7, 0.0  ;;  %v197_v10 = vmax.f32 %v195_v8, 0.0 }
  0x17   : > { %v288_v11 = vpack.c.bf16 %v197_v10, %v196_v9 }
  0x19   : > { %289 = vst [vmem:[%s172_s25] sm:$0xff] %v288_v11  }
  0x1a PF: > { %s13_s12 = sadd.s32 1, %s304_s12  }
  0x1b   : > { %p10_p4 = scmp.ge.s32.totalorder %s13_s12, 4  }
  0x1d   :  { %12 = sbr.rel (!%p10_p4) target bundleno = 1 (0x1), region = 62 }

// kernel: dcgenerator_forward.9
= control target key start
LH: loop header
LB: loop body
LE: loop exit
PB: predicated region body
PF: predicated region fallthrough
CT: control target
= control target key end

     0   :  { %s645_s12 = smov 0   ;;  %s647_s13 = smov 0   ;;  %s713_s0 = inlined_call_operand.vmem [shape: bf16[32,128], index: 0, kind: input, shape index: {}]   ;;  %s714_s1 = inlined_call_operand.vmem [shape: bf16[128,128], index: 1, kind: input, shape index: {}]   ;;  %s715_s2 = inlined_call_operand.vmem [shape: bf16[32,128], index: 2, kind: output, shape index: {0}]   ;;  %s716_s3 = inlined_call_operand.vmem [shape: f32[16,128], index: 3, kind: output, shape index: {1}]  }
   0x1   :  { %s649_s14 = smov 0  }
   0x2 LB: > { %s23_s15 = sadd.s32 1, %s617_s13  ;;  %p509_p0 = scmp.ge.s32.totalorder %s621_s14, 1  ;;  %s621_s14 = sphi %s649_s14, %s14_s14   ;;  %s617_s13 = sphi %s647_s13, %s718_s13   ;;  %s613_s12 = sphi %s645_s12, %s717_s12  }
   0x3   : > { %p24_p1 = scmp.ge.s32.totalorder %s23_s15, 2  ;;  %p166_p2 = scmp.lt.s32.totalorder %s621_s14, 3 }
   0x5   : > { %s720_s15 = smov (%p24_p1, %s23_s15), 0  ;;  %p167_p3 = pnand %p509_p0, %p166_p2 }
   0x6   : > { %s510_s20 = sshll.u32 (!%p167_p3), %s613_s12, 1  ;;  %p223_p5 = scmp.lt.s32.totalorder (!%p167_p3), %s613_s12, 1 }
   0x7   : > { %170 = sbr.rel (%p167_p3) target bundleno = 259 (0x103), region = 28  ;;  %p205_p4 = scmp.lt.s32.totalorder (!%p167_p3), %s510_s20, 3 }
   0xc   : > { %v590_v0 = vld [vmem:[%s714_s1 + $0x38] sm:$0xff]   ;;  %v623_v1 = vmov 0.0   ;;  %v591_v2 = vld [vmem:[%s714_s1 + $0x30] sm:$0xff]   ;;  %vm624_vm0 = vmmov 0   ;;  %s722_s20 = smov (!%p205_p4, %s510_s20), 3  ;;  %v592_v3 = vld [vmem:[%s714_s1 + $0x28] sm:$0xff]  }
   0xd   : > { %544 = vmatprep.subr.bf16.mxu0 %v623_v1  ;;  %560 = vmatprep.mubr.msk.bf16.mxu0 %vm624_vm0, %v623_v1  ;;  %s511_s23 = sshll.u32 %s722_s20, 2  ;;  %v593_v4 = vld [vmem:[%s714_s1 + $0x20] sm:$0xff]   ;;  %v594_v5 = vld [vmem:[%s714_s1 + $0x18] sm:$0xff]   ;;  %v595_v6 = vld [vmem:[%s714_s1 + $0x10] sm:$0xff]   ;;  %s724_s12 = smov (!%p223_p5, %s613_s12), 1 }
   0xe   : > { %545 = vmatpush3.bf16.msra.mxu0 %v590_v0  ;;  %s208_s26 = scalar_lea.vmem %s713_s0, %s511_s23  ;;  %v596_v7 = vld [vmem:[%s714_s1 + $0x8] sm:$0xff]   ;;  %v597_v8 = vld [vmem:[%s714_s1] sm:$0xff]   ;;  %s514_s10 = sshll.u32 %s724_s12, 3 }
   0xf   : > { %546 = vmatprep.subr.bf16.mxu0 %v623_v1  ;;  %v598_v9 = vld [vmem:[%s208_s26] sm:$0xff]   ;;  %s229_s17 = scalar_lea.vmem %s716_s3, %s514_s10  ;;  %s221_s20 = scalar_lea.vmem %s715_s2, %s511_s23 }
  0x10   : > { %354 = vst [vmem:[%s229_s17] sm:$0xff] %v623_v1 }
  0x12   : > { %547 = vmatpush3.bf16.msra.mxu0 %v591_v2 }
  0x13   : > { %548 = vmatprep.subr.bf16.mxu0 %v623_v1 }
  0x16   : > { %549 = vmatpush3.bf16.msra.mxu0 %v592_v3 }
  0x17   : > { %550 = vmatprep.subr.bf16.mxu0 %v623_v1 }
  0x1a   : > { %551 = vmatpush3.bf16.msra.mxu0 %v593_v4 }
  0x1b   : > { %552 = vmatprep.subr.bf16.mxu0 %v623_v1 }
  0x1e   : > { %553 = vmatpush3.bf16.msra.mxu0 %v594_v5 }
  0x1f   : > { %554 = vmatprep.subr.bf16.mxu0 %v623_v1 }
  0x22   : > { %555 = vmatpush3.bf16.msra.mxu0 %v595_v6 }
  0x23   : > { %556 = vmatprep.subr.bf16.mxu0 %v623_v1 }
  0x26   : > { %557 = vmatpush3.bf16.msra.mxu0 %v596_v7 }
  0x27   : > { %558 = vmatprep.subr.bf16.mxu0 %v623_v1 }
  0x2a   : > { %559 = vmatpush3.bf16.msra.mxu0 %v597_v8 }
  0x2d   : > { %561 = vmatmul.mubr.bf16.vlgmr.msra.gmra.mxu0 %v598_v9 }
  0xed   : > { %v337_v10 = vpop.f32.mrf.mxu0 }
  0xee   : > { %v363_v13 = vmul.f32 %v337_v10, %v337_v10 }
  0xef   : > { %v562_v11 = vpop.f32.mrf.mxu0 }
  0xf1   : > { %v340_v12 = vpop.f32.mrf.mxu0 }
  0xf2   : > { %v533_v14 = vpack.c.bf16 %v340_v12, %v337_v10  ;;  %v355_v15 = vadd.f32 %v340_v12, %v337_v10  ;;  %v364_v16 = vmul.f32 %v340_v12, %v340_v12 }
  0xf3   : > { %v563_v17 = vpop.f32.mrf.mxu0 }
  0xf4   : > { %534 = vst [vmem:[%s221_s20] sm:$0xff] %v533_v14   ;;  %v356_v18 = vrot.slane %v355_v15, 4  ;;  %v365_v19 = vadd.f32 %v364_v16, %v363_v13 }
  0xf6   : > { %v357_v20 = vadd.f32 %v356_v18, %v355_v15  ;;  %v366_v21 = vrot.slane %v365_v19, 4 }
  0xf8   : > { %v358_v22 = vrot.slane %v357_v20, 2  ;;  %v367_v23 = vadd.f32 %v366_v21, %v365_v19 }
  0xfa   : > { %v359_v24 = vadd.f32 %v358_v22, %v357_v20  ;;  %v368_v25 = vrot.slane %v367_v23, 2 }
  0xfc   : > { %v360_v26 = vrot.slane %v359_v24, 1  ;;  %v369_v27 = vadd.f32 %v368_v25, %v367_v23 }
  0xfe   : > { %v361_v28 = vadd.f32 %v360_v26, %v359_v24  ;;  %v370_v29 = vrot.slane %v369_v27, 1 }
 0x100   : > { %362 = vst [vmem:[%s229_s17] sm:$0x1] %v361_v28  ;;  %v371_v30 = vadd.f32 %v370_v29, %v369_v27 }
 0x102   : > { %372 = vst [vmem:[%s229_s17 + $0x1] sm:$0x1] %v371_v30 }
 0x103 PF: > { %s14_s14 = sadd.s32 1, %s621_s14   ;;  %s717_s12 = smov %s617_s13 }
 0x104   : > { %p11_p6 = scmp.ge.s32.totalorder %s14_s14, 4   ;;  %s718_s13 = smov %s720_s15 }
 0x106   :  { %13 = sbr.rel (!%p11_p6) target bundleno = 2 (0x2), region = 73 }

// kernel: dcgenerator_forward.11
= control target key start
LH: loop header
LB: loop body
LE: loop exit
PB: predicated region body
PF: predicated region fallthrough
CT: control target
= control target key end

     0   :  { %s2105_s12 = smov 0   ;;  %s2107_s13 = smov 0   ;;  %s2599_s0 = inlined_call_operand.vmem [shape: bf16[32,1152], index: 0, kind: input, shape index: {}]   ;;  %s2600_s1 = inlined_call_operand.vmem [shape: bf16[1152,256], index: 1, kind: input, shape index: {}]   ;;  %s2601_s2 = inlined_call_operand.vmem [shape: bf16[32,256], index: 2, kind: output, shape index: {0}]   ;;  %s2602_s3 = inlined_call_operand.vmem [shape: f32[16,256], index: 3, kind: output, shape index: {1}]  }
   0x1   :  { %s2109_s14 = smov 0  }
   0x2 LB: > { %s23_s15 = sadd.s32 1, %s2076_s13  ;;  %p1631_p0 = scmp.ge.s32.totalorder %s2080_s14, 1  ;;  %s2080_s14 = sphi %s2109_s14, %s14_s14   ;;  %s2076_s13 = sphi %s2107_s13, %s2604_s13   ;;  %s2072_s12 = sphi %s2105_s12, %s2603_s12  }
   0x3   : > { %p24_p1 = scmp.ge.s32.totalorder %s23_s15, 2  ;;  %p169_p2 = scmp.lt.s32.totalorder %s2080_s14, 3 }
   0x5   : > { %s2606_s15 = smov (%p24_p1, %s23_s15), 0  ;;  %p170_p3 = pnand %p1631_p0, %p169_p2 }
   0x6   : > { %s1632_s30 = sshll.u32 (!%p170_p3), %s2072_s12, 1  ;;  %p239_p5 = scmp.lt.s32.totalorder (!%p170_p3), %s2072_s12, 1 }
   0x7   : > { %173 = sbr.rel (%p170_p3) target bundleno = 398 (0x18e), region = 28  ;;  %p214_p4 = scmp.lt.s32.totalorder (!%p170_p3), %s1632_s30, 3 }
   0xc   : > { %v1829_v0 = vld [vmem:[%s2600_s1 + $0x74] ss:$8 sps:$4 sm:$0xff]   ;;  %v1833_v2 = vld [vmem:[%s2600_s1 + $0x70] ss:$8 sps:$4 sm:$0xff]   ;;  %v1835_v4 = vld [vmem:[%s2600_s1 + $0x64] ss:$8 sps:$4 sm:$0xff]  }
   0xd   : > { %v1831_v1 = vld [vmem:[%s2600_s1 + $0x174] ss:$8 sps:$4 sm:$0xff]   ;;  %1169 = vmatprep.subr.bf16.mxu0 %v1829_v0  ;;  %v1834_v3 = vld [vmem:[%s2600_s1 + $0x170] ss:$8 sps:$4 sm:$0xff]   ;;  %v1837_v5 = vld [vmem:[%s2600_s1 + $0x164] ss:$8 sps:$4 sm:$0xff]  }
   0xe   : > { %1212 = vmatprep.subr.bf16.mxu1 %v1831_v1  ;;  %1170 = vmatpush1.bf16.msra.mxu0 %v1833_v2  ;;  %v1839_v6 = vld [vmem:[%s2600_s1 + $0x60] ss:$8 sps:$4 sm:$0xff]   ;;  %v1841_v8 = vld [vmem:[%s2600_s1 + $0x54] ss:$8 sps:$4 sm:$0xff]   ;;  %v1845_v10 = vld [vmem:[%s2600_s1 + $0x50] ss:$8 sps:$4 sm:$0xff]  }
   0xf   : > { %1213 = vmatpush1.bf16.msra.mxu1 %v1834_v3  ;;  %1171 = vmatprep.subr.bf16.mxu0 %v1835_v4  ;;  %v1840_v7 = vld [vmem:[%s2600_s1 + $0x160] ss:$8 sps:$4 sm:$0xff]   ;;  %v1843_v9 = vld [vmem:[%s2600_s1 + $0x154] ss:$8 sps:$4 sm:$0xff]   ;;  %v1846_v11 = vld [vmem:[%s2600_s1 + $0x150] ss:$8 sps:$4 sm:$0xff]  }
  0x10   : > { %1214 = vmatprep.subr.bf16.mxu1 %v1837_v5  ;;  %v1847_v12 = vld [vmem:[%s2600_s1 + $0x44] ss:$8 sps:$4 sm:$0xff]   ;;  %v1851_v14 = vld [vmem:[%s2600_s1 + $0x40] ss:$8 sps:$4 sm:$0xff]   ;;  %v1853_v16 = vld [vmem:[%s2600_s1 + $0x34] ss:$8 sps:$4 sm:$0xff]  }
  0x11   : > { %v1849_v13 = vld [vmem:[%s2600_s1 + $0x144] ss:$8 sps:$4 sm:$0xff]   ;;  %v1852_v15 = vld [vmem:[%s2600_s1 + $0x140] ss:$8 sps:$4 sm:$0xff]   ;;  %v1855_v17 = vld [vmem:[%s2600_s1 + $0x134] ss:$8 sps:$4 sm:$0xff]  }
  0x12   : > { %1172 = vmatpush1.bf16.msra.mxu0 %v1839_v6  ;;  %v1857_v18 = vld [vmem:[%s2600_s1 + $0x30] ss:$8 sps:$4 sm:$0xff]   ;;  %v1859_v20 = vld [vmem:[%s2600_s1 + $0x24] ss:$8 sps:$4 sm:$0xff]   ;;  %v1863_v22 = vld [vmem:[%s2600_s1 + $0x20] ss:$8 sps:$4 sm:$0xff]  }
  0x13   : > { %1215 = vmatpush1.bf16.msra.mxu1 %v1840_v7  ;;  %1173 = vmatprep.subr.bf16.mxu0 %v1841_v8  ;;  %v1858_v19 = vld [vmem:[%s2600_s1 + $0x130] ss:$8 sps:$4 sm:$0xff]   ;;  %v1861_v21 = vld [vmem:[%s2600_s1 + $0x124] ss:$8 sps:$4 sm:$0xff]   ;;  %v1864_v23 = vld [vmem:[%s2600_s1 + $0x120] ss:$8 sps:$4 sm:$0xff]  }
  0x14   : > { %1216 = vmatprep.subr.bf16.mxu1 %v1843_v9  ;;  %v1865_v24 = vld [vmem:[%s2600_s1 + $0x14] ss:$8 sps:$4 sm:$0xff]   ;;  %v1869_v26 = vld [vmem:[%s2600_s1 + $0x10] ss:$8 sps:$4 sm:$0xff]   ;;  %v1871_v28 = vld [vmem:[%s2600_s1 + $0x4] ss:$8 sps:$4 sm:$0xff]  }
  0x15   : > { %v1867_v25 = vld [vmem:[%s2600_s1 + $0x114] ss:$8 sps:$4 sm:$0xff]   ;;  %v1870_v27 = vld [vmem:[%s2600_s1 + $0x110] ss:$8 sps:$4 sm:$0xff]   ;;  %v1873_v29 = vld [vmem:[%s2600_s1 + $0x104] ss:$8 sps:$4 sm:$0xff]  }
  0x16   : > { %1174 = vmatpush1.bf16.msra.mxu0 %v1845_v10  ;;  %v1875_v30 = vld [vmem:[%s2600_s1] ss:$8 sps:$4 sm:$0xff]   ;;  %v1877_v32 = vld [vmem:[%s2600_s1 + $0xf4] ss:$8 sps:$4 sm:$0xff]   ;;  %v1881_v34 = vld [vmem:[%s2600_s1 + $0xf0] ss:$8 sps:$4 sm:$0xff]  }
  0x17   : > { %1217 = vmatpush1.bf16.msra.mxu1 %v1846_v11  ;;  %1175 = vmatprep.subr.bf16.mxu0 %v1847_v12  ;;  %v1876_v31 = vld [vmem:[%s2600_s1 + $0x100] ss:$8 sps:$4 sm:$0xff]   ;;  %v1879_v33 = vld [vmem:[%s2600_s1 + $0x1f4] ss:$8 sps:$4 sm:$0xff]   ;;  %v1882_v35 = vld [vmem:[%s2600_s1 + $0x1f0] ss:$8 sps:$4 sm:$0xff]  }
  0x18   : > { %1218 = vmatprep.subr.bf16.mxu1 %v1849_v13  ;;  %v1883_v36 = vld [vmem:[%s2600_s1 + $0xe4] ss:$8 sps:$4 sm:$0xff]   ;;  %s2608_s30 = smov (!%p214_p4, %s1632_s30), 3  ;;  %v1887_v38 = vld [vmem:[%s2600_s1 + $0xe0] ss:$8 sps:$4 sm:$0xff]   ;;  %s2610_s12 = smov (!%p239_p5, %s2072_s12), 1 }
  0x19   : > { %v1885_v37 = vld [vmem:[%s2600_s1 + $0x1e4] ss:$8 sps:$4 sm:$0xff]   ;;  %v1888_v39 = vld [vmem:[%s2600_s1 + $0x1e0] ss:$8 sps:$4 sm:$0xff]   ;;  %v1889_v40 = vld [vmem:[%s2600_s1 + $0xd4] ss:$8 sps:$4 sm:$0xff]  }
  0x1a   : > { %1176 = vmatpush1.bf16.msra.mxu0 %v1851_v14  ;;  %s1801_s4 = smul.u32 36, %s2608_s30  ;;  %v1891_v41 = vld [vmem:[%s2600_s1 + $0x1d4] ss:$8 sps:$4 sm:$0xff]   ;;  %v1893_v42 = vld [vmem:[%s2600_s1 + $0xd0] ss:$8 sps:$4 sm:$0xff]   ;;  %s1798_s29 = sshll.u32 %s2610_s12, 4 }
  0x1b   : > { %1219 = vmatpush1.bf16.msra.mxu1 %v1852_v15  ;;  %1177 = vmatprep.subr.bf16.mxu0 %v1853_v16  ;;  %v1894_v43 = vld [vmem:[%s2600_s1 + $0x1d0] ss:$8 sps:$4 sm:$0xff]   ;;  %v1895_v44 = vld [vmem:[%s2600_s1 + $0xc4] ss:$8 sps:$4 sm:$0xff]   ;;  %v1899_v46 = vld [vmem:[%s2600_s1 + $0xc0] ss:$8 sps:$4 sm:$0xff]   ;;  %s2580_s6 = scalar_lea.vmem %s2602_s3, %s1798_s29 }
  0x1c   : > { %1220 = vmatprep.subr.bf16.mxu1 %v1855_v17  ;;  %s2267_s19 = scalar_lea.vmem %s2599_s0, %s1801_s4  ;;  %v1897_v45 = vld [vmem:[%s2600_s1 + $0x1c4] ss:$8 sps:$4 sm:$0xff]   ;;  %v1900_v47 = vld [vmem:[%s2600_s1 + $0x1c0] ss:$8 sps:$4 sm:$0xff]   ;;  %v1901_v48 = vld [vmem:[%s2600_s1 + $0xb4] ss:$8 sps:$4 sm:$0xff]  }
  0x1d   : > { %v1927_v49 = vld [vmem:[%s2267_s19 + $0x4] ss:$36 sps:$4 sm:$0xff]   ;;  %v1903_v50 = vld [vmem:[%s2600_s1 + $0x1b4] ss:$8 sps:$4 sm:$0xff]   ;;  %v1930_v51 = vld [vmem:[%s2267_s19 + $0xc] ss:$36 sps:$4 sm:$0xff]  }
  0x1e   : > { %1178 = vmatpush1.bf16.msra.mxu0 %v1857_v18  ;;  %1201 = vmatprep.mubr.bf16.mxu0 %v1927_v49  ;;  %v1905_v52 = vld [vmem:[%s2600_s1 + $0xb0] ss:$8 sps:$4 sm:$0xff]   ;;  %v1907_v54 = vld [vmem:[%s2600_s1 + $0xa4] ss:$8 sps:$4 sm:$0xff]   ;;  %v1911_v56 = vld [vmem:[%s2600_s1 + $0xa0] ss:$8 sps:$4 sm:$0xff]  }
  0x1f   : > { %1221 = vmatpush1.bf16.msra.mxu1 %v1858_v19  ;;  %1179 = vmatprep.subr.bf16.mxu0 %v1859_v20  ;;  %v1906_v53 = vld [vmem:[%s2600_s1 + $0x1b0] ss:$8 sps:$4 sm:$0xff]   ;;  %v1909_v55 = vld [vmem:[%s2600_s1 + $0x1a4] ss:$8 sps:$4 sm:$0xff]   ;;  %v1912_v57 = vld [vmem:[%s2600_s1 + $0x1a0] ss:$8 sps:$4 sm:$0xff]  }
  0x20   : > { %1222 = vmatprep.subr.bf16.mxu1 %v1861_v21  ;;  %1244 = vmatprep.mubr.bf16.mxu1 %v1930_v51  ;;  %v1913_v58 = vld [vmem:[%s2600_s1 + $0x94] ss:$8 sps:$4 sm:$0xff]   ;;  %v1917_v60 = vld [vmem:[%s2600_s1 + $0x90] ss:$8 sps:$4 sm:$0xff]   ;;  %v1919_v62 = vld [vmem:[%s2600_s1 + $0x84] ss:$8 sps:$4 sm:$0xff]  }
  0x21   : > { %v1915_v59 = vld [vmem:[%s2600_s1 + $0x194] ss:$8 sps:$4 sm:$0xff]   ;;  %v1918_v61 = vld [vmem:[%s2600_s1 + $0x190] ss:$8 sps:$4 sm:$0xff]   ;;  %v1921_v63 = vld [vmem:[%s2600_s1 + $0x184] ss:$8 sps:$4 sm:$0xff]  }
  0x22   : > { %1180 = vmatpush1.bf16.msra.mxu0 %v1863_v22  ;;  %v1923_v0 = vld [vmem:[%s2600_s1 + $0x80] ss:$8 sps:$4 sm:$0xff]   ;;  %v1933_v2 = vld [vmem:[%s2600_s1 + $0x274] ss:$8 sps:$4 sm:$0xff]   ;;  %v1931_v6 = vld [vmem:[%s2600_s1 + $0x270] ss:$8 sps:$4 sm:$0xff]  }
  0x23   : > { %1223 = vmatpush1.bf16.msra.mxu1 %v1864_v23  ;;  %1181 = vmatprep.subr.bf16.mxu0 %v1865_v24  ;;  %v1924_v1 = vld [vmem:[%s2600_s1 + $0x180] ss:$8 sps:$4 sm:$0xff]   ;;  %v1936_v3 = vld [vmem:[%s2600_s1 + $0x374] ss:$8 sps:$4 sm:$0xff]   ;;  %v1934_v7 = vld [vmem:[%s2600_s1 + $0x370] ss:$8 sps:$4 sm:$0xff]  }
  0x24   : > { %1224 = vmatprep.subr.bf16.mxu1 %v1867_v25  ;;  %v1925_v4 = vld [vmem:[%s2267_s19] ss:$36 sps:$4 sm:$0xff]   ;;  %v1928_v5 = vld [vmem:[%s2267_s19 + $0x8] ss:$36 sps:$4 sm:$0xff]   ;;  %v1945_v12 = vld [vmem:[%s2600_s1 + $0x254] ss:$8 sps:$4 sm:$0xff]  }
  0x25   : > { %v1939_v8 = vld [vmem:[%s2600_s1 + $0x264] ss:$8 sps:$4 sm:$0xff]   ;;  %v1937_v10 = vld [vmem:[%s2600_s1 + $0x260] ss:$8 sps:$4 sm:$0xff]   ;;  %v1948_v13 = vld [vmem:[%s2600_s1 + $0x354] ss:$8 sps:$4 sm:$0xff]  }
  0x26   : > { %1182 = vmatpush1.bf16.msra.mxu0 %v1869_v26  ;;  %v1942_v9 = vld [vmem:[%s2600_s1 + $0x364] ss:$8 sps:$4 sm:$0xff]   ;;  %v1940_v11 = vld [vmem:[%s2600_s1 + $0x360] ss:$8 sps:$4 sm:$0xff]   ;;  %v1943_v14 = vld [vmem:[%s2600_s1 + $0x250] ss:$8 sps:$4 sm:$0xff]  }
  0x27   : > { %1225 = vmatpush1.bf16.msra.mxu1 %v1870_v27  ;;  %1183 = vmatprep.subr.bf16.mxu0 %v1871_v28  ;;  %v1946_v15 = vld [vmem:[%s2600_s1 + $0x350] ss:$8 sps:$4 sm:$0xff]   ;;  %v1951_v16 = vld [vmem:[%s2600_s1 + $0x244] ss:$8 sps:$4 sm:$0xff]   ;;  %v1949_v18 = vld [vmem:[%s2600_s1 + $0x240] ss:$8 sps:$4 sm:$0xff]  }
  0x28   : > { %1226 = vmatprep.subr.bf16.mxu1 %v1873_v29  ;;  %v1954_v17 = vld [vmem:[%s2600_s1 + $0x344] ss:$8 sps:$4 sm:$0xff]   ;;  %v1952_v19 = vld [vmem:[%s2600_s1 + $0x340] ss:$8 sps:$4 sm:$0xff]   ;;  %v1957_v20 = vld [vmem:[%s2600_s1 + $0x234] ss:$8 sps:$4 sm:$0xff]  }
  0x29   : > { %v1960_v21 = vld [vmem:[%s2600_s1 + $0x334] ss:$8 sps:$4 sm:$0xff]   ;;  %v1955_v22 = vld [vmem:[%s2600_s1 + $0x230] ss:$8 sps:$4 sm:$0xff]   ;;  %v1963_v24 = vld [vmem:[%s2600_s1 + $0x224] ss:$8 sps:$4 sm:$0xff]  }
  0x2a   : > { %1184 = vmatpush1.bf16.msra.mxu0 %v1875_v30  ;;  %v1958_v23 = vld [vmem:[%s2600_s1 + $0x330] ss:$8 sps:$4 sm:$0xff]   ;;  %v1966_v25 = vld [vmem:[%s2600_s1 + $0x324] ss:$8 sps:$4 sm:$0xff]   ;;  %v1961_v26 = vld [vmem:[%s2600_s1 + $0x220] ss:$8 sps:$4 sm:$0xff]  }
  0x2b   : > { %1227 = vmatpush1.bf16.msra.mxu1 %v1876_v31  ;;  %1185 = vmatprep.subr.bf16.mxu0 %v1877_v32  ;;  %v1964_v27 = vld [vmem:[%s2600_s1 + $0x320] ss:$8 sps:$4 sm:$0xff]   ;;  %v1969_v28 = vld [vmem:[%s2600_s1 + $0x214] ss:$8 sps:$4 sm:$0xff]   ;;  %v1967_v30 = vld [vmem:[%s2600_s1 + $0x210] ss:$8 sps:$4 sm:$0xff]  }
  0x2c   : > { %1228 = vmatprep.subr.bf16.mxu1 %v1879_v33  ;;  %v1972_v29 = vld [vmem:[%s2600_s1 + $0x314] ss:$8 sps:$4 sm:$0xff]   ;;  %v1970_v31 = vld [vmem:[%s2600_s1 + $0x310] ss:$8 sps:$4 sm:$0xff]   ;;  %v1975_v32 = vld [vmem:[%s2600_s1 + $0x204] ss:$8 sps:$4 sm:$0xff]  }
  0x2d   : > { %v1978_v33 = vld [vmem:[%s2600_s1 + $0x304] ss:$8 sps:$4 sm:$0xff]   ;;  %v1994_v49 = vld [vmem:[%s2600_s1 + $0x3d0] ss:$8 sps:$4 sm:$0xff]   ;;  %s1797_s12 = sshll.u32 %s2608_s30, 3 }
  0x2e   : > { %1186 = vmatpush2.bf16.msra.mxu0 %v1881_v34  ;;  %v2029_v34 = vld [vmem:[%s2267_s19 + $0x14] ss:$36 sps:$4 sm:$0xff]   ;;  %v2002_v51 = vld [vmem:[%s2600_s1 + $0x3c4] ss:$8 sps:$4 sm:$0xff]   ;;  %s235_s8 = scalar_lea.vmem %s2601_s2, %s1797_s12 }
  0x2f   : > { %1229 = vmatpush2.bf16.msra.mxu1 %v1882_v35  ;;  %1187 = vmatprep.subr.bf16.mxu0 %v1883_v36  ;;  %v1973_v35 = vld [vmem:[%s2600_s1 + $0x200] ss:$8 sps:$4 sm:$0xff]  }
  0x30   : > { %1230 = vmatprep.subr.bf16.mxu1 %v1885_v37  ;;  %v1976_v36 = vld [vmem:[%s2600_s1 + $0x300] ss:$8 sps:$4 sm:$0xff]  }
  0x31   : > { %v2035_v37 = vld [vmem:[%s2267_s19 + $0x1c] ss:$36 sps:$4 sm:$0xff]  }
  0x32   : > { %1188 = vmatpush2.bf16.msra.mxu0 %v1887_v38  ;;  %v1981_v38 = vld [vmem:[%s2600_s1 + $0x2f4] ss:$8 sps:$4 sm:$0xff]  }
  0x33   : > { %1231 = vmatpush2.bf16.msra.mxu1 %v1888_v39  ;;  %1189 = vmatprep.subr.bf16.mxu0 %v1889_v40  ;;  %v1984_v39 = vld [vmem:[%s2600_s1 + $0x3f4] ss:$8 sps:$4 sm:$0xff]   ;;  %v1979_v40 = vld [vmem:[%s2600_s1 + $0x2f0] ss:$8 sps:$4 sm:$0xff]  }
  0x34   : > { %1232 = vmatprep.subr.bf16.mxu1 %v1891_v41  ;;  %v1982_v41 = vld [vmem:[%s2600_s1 + $0x3f0] ss:$8 sps:$4 sm:$0xff]  }
  0x36   : > { %1190 = vmatpush2.bf16.msra.mxu0 %v1893_v42  ;;  %v1987_v42 = vld [vmem:[%s2600_s1 + $0x2e4] ss:$8 sps:$4 sm:$0xff]  }
  0x37   : > { %1233 = vmatpush2.bf16.msra.mxu1 %v1894_v43  ;;  %1191 = vmatprep.subr.bf16.mxu0 %v1895_v44  ;;  %v1990_v43 = vld [vmem:[%s2600_s1 + $0x3e4] ss:$8 sps:$4 sm:$0xff]   ;;  %v1985_v44 = vld [vmem:[%s2600_s1 + $0x2e0] ss:$8 sps:$4 sm:$0xff]  }
  0x38   : > { %1234 = vmatprep.subr.bf16.mxu1 %v1897_v45  ;;  %v1988_v45 = vld [vmem:[%s2600_s1 + $0x3e0] ss:$8 sps:$4 sm:$0xff]  }
  0x3a   : > { %1192 = vmatpush2.bf16.msra.mxu0 %v1899_v46  ;;  %v1993_v46 = vld [vmem:[%s2600_s1 + $0x2d4] ss:$8 sps:$4 sm:$0xff]  }
  0x3b   : > { %1235 = vmatpush2.bf16.msra.mxu1 %v1900_v47  ;;  %1193 = vmatprep.subr.bf16.mxu0 %v1901_v48  ;;  %v1996_v47 = vld [vmem:[%s2600_s1 + $0x3d4] ss:$8 sps:$4 sm:$0xff]   ;;  %v1991_v48 = vld [vmem:[%s2600_s1 + $0x2d0] ss:$8 sps:$4 sm:$0xff]  }
  0x3c   : > { %1236 = vmatprep.subr.bf16.mxu1 %v1903_v50  ;;  %v1999_v50 = vld [vmem:[%s2600_s1 + $0x2c4] ss:$8 sps:$4 sm:$0xff]  }
  0x3e   : > { %1194 = vmatpush2.bf16.msra.mxu0 %v1905_v52  ;;  %v1997_v52 = vld [vmem:[%s2600_s1 + $0x2c0] ss:$8 sps:$4 sm:$0xff]  }
  0x3f   : > { %1237 = vmatpush2.bf16.msra.mxu1 %v1906_v53  ;;  %1195 = vmatprep.subr.bf16.mxu0 %v1907_v54  ;;  %v2000_v53 = vld [vmem:[%s2600_s1 + $0x3c0] ss:$8 sps:$4 sm:$0xff]   ;;  %v2005_v54 = vld [vmem:[%s2600_s1 + $0x2b4] ss:$8 sps:$4 sm:$0xff]  }
  0x40   : > { %1238 = vmatprep.subr.bf16.mxu1 %v1909_v55  ;;  %v2008_v55 = vld [vmem:[%s2600_s1 + $0x3b4] ss:$8 sps:$4 sm:$0xff]  }
  0x42   : > { %1196 = vmatpush2.bf16.msra.mxu0 %v1911_v56  ;;  %v2003_v56 = vld [vmem:[%s2600_s1 + $0x2b0] ss:$8 sps:$4 sm:$0xff]  }
  0x43   : > { %1239 = vmatpush2.bf16.msra.mxu1 %v1912_v57  ;;  %1197 = vmatprep.subr.bf16.mxu0 %v1913_v58  ;;  %v2006_v57 = vld [vmem:[%s2600_s1 + $0x3b0] ss:$8 sps:$4 sm:$0xff]   ;;  %v2011_v58 = vld [vmem:[%s2600_s1 + $0x2a4] ss:$8 sps:$4 sm:$0xff]  }
  0x44   : > { %1240 = vmatprep.subr.bf16.mxu1 %v1915_v59  ;;  %v2014_v59 = vld [vmem:[%s2600_s1 + $0x3a4] ss:$8 sps:$4 sm:$0xff]  }
  0x46   : > { %1198 = vmatpush2.bf16.msra.mxu0 %v1917_v60  ;;  %v2009_v60 = vld [vmem:[%s2600_s1 + $0x2a0] ss:$8 sps:$4 sm:$0xff]  }
  0x47   : > { %1241 = vmatpush2.bf16.msra.mxu1 %v1918_v61  ;;  %1199 = vmatprep.subr.bf16.mxu0 %v1919_v62  ;;  %v2012_v61 = vld [vmem:[%s2600_s1 + $0x3a0] ss:$8 sps:$4 sm:$0xff]   ;;  %v2017_v62 = vld [vmem:[%s2600_s1 + $0x294] ss:$8 sps:$4 sm:$0xff]  }
  0x48   : > { %1242 = vmatprep.subr.bf16.mxu1 %v1921_v63  ;;  %v2020_v63 = vld [vmem:[%s2600_s1 + $0x394] ss:$8 sps:$4 sm:$0xff]  }
  0x4a   : > { %1200 = vmatpush2.bf16.msra.mxu0 %v1923_v0  ;;  %v2015_v0 = vld [vmem:[%s2600_s1 + $0x290] ss:$8 sps:$4 sm:$0xff]  }
  0x4b   : > { %1243 = vmatpush2.bf16.msra.mxu1 %v1924_v1  ;;  %1255 = vmatprep.subr.bf16.mxu0 %v1933_v2  ;;  %v2018_v1 = vld [vmem:[%s2600_s1 + $0x390] ss:$8 sps:$4 sm:$0xff]   ;;  %v2023_v2 = vld [vmem:[%s2600_s1 + $0x284] ss:$8 sps:$4 sm:$0xff]  }
  0x4c   : > { %1298 = vmatprep.subr.bf16.mxu1 %v1936_v3  ;;  %v2026_v3 = vld [vmem:[%s2600_s1 + $0x384] ss:$8 sps:$4 sm:$0xff]  }
  0x4d   : > { %1202 = vmatmul.mubr.bf16.vlgmr.msra.gmra.mxu0 %v1925_v4  ;;  %v2021_v4 = vld [vmem:[%s2600_s1 + $0x280] ss:$8 sps:$4 sm:$0xff]  }
  0x4e   : > { %1245 = vmatmul.mubr.bf16.vlgmr.msra.gmra.mxu1 %v1928_v5  ;;  %1256 = vmatpush1.bf16.msra.mxu0 %v1931_v6  ;;  %v2024_v5 = vld [vmem:[%s2600_s1 + $0x380] ss:$8 sps:$4 sm:$0xff]   ;;  %v2032_v6 = vld [vmem:[%s2600_s1 + $0x474] ss:$8 sps:$4 sm:$0xff]  }
  0x4f   : > { %1299 = vmatpush1.bf16.msra.mxu1 %v1934_v7  ;;  %1257 = vmatprep.subr.bf16.mxu0 %v1939_v8  ;;  %v2027_v7 = vld [vmem:[%s2267_s19 + $0x10] ss:$36 sps:$4 sm:$0xff]   ;;  %v2033_v8 = vld [vmem:[%s2267_s19 + $0x18] ss:$36 sps:$4 sm:$0xff]  }
  0x50   : > { %1300 = vmatprep.subr.bf16.mxu1 %v1942_v9  ;;  %1287 = vmatprep.mubr.bf16.mxu0 %v2029_v34  ;;  %v2030_v9 = vld [vmem:[%s2600_s1 + $0x470] ss:$8 sps:$4 sm:$0xff]  }
  0x51   : > { %1330 = vmatprep.mubr.bf16.mxu1 %v2035_v37 }
  0x52   : > { %1258 = vmatpush1.bf16.msra.mxu0 %v1937_v10  ;;  %v2038_v10 = vld [vmem:[%s2600_s1 + $0x464] ss:$8 sps:$4 sm:$0xff]  }
  0x53   : > { %1301 = vmatpush1.bf16.msra.mxu1 %v1940_v11  ;;  %1259 = vmatprep.subr.bf16.mxu0 %v1945_v12  ;;  %v2036_v11 = vld [vmem:[%s2600_s1 + $0x460] ss:$8 sps:$4 sm:$0xff]   ;;  %v2082_v12 = vmov 0  }
  0x54   : > { %1302 = vmatprep.subr.bf16.mxu1 %v1948_v13  ;;  %v2041_v13 = vld [vmem:[%s2600_s1 + $0x454] ss:$8 sps:$4 sm:$0xff]  }
  0x56   : > { %1260 = vmatpush1.bf16.msra.mxu0 %v1943_v14  ;;  %v2039_v14 = vld [vmem:[%s2600_s1 + $0x450] ss:$8 sps:$4 sm:$0xff]  }
  0x57   : > { %1303 = vmatpush1.bf16.msra.mxu1 %v1946_v15  ;;  %1261 = vmatprep.subr.bf16.mxu0 %v1951_v16  ;;  %v2044_v15 = vld [vmem:[%s2600_s1 + $0x444] ss:$8 sps:$4 sm:$0xff]   ;;  %v2042_v16 = vld [vmem:[%s2600_s1 + $0x440] ss:$8 sps:$4 sm:$0xff]  }
  0x58   : > { %1304 = vmatprep.subr.bf16.mxu1 %v1954_v17  ;;  %v2047_v17 = vld [vmem:[%s2600_s1 + $0x434] ss:$8 sps:$4 sm:$0xff]  }
  0x5a   : > { %1262 = vmatpush1.bf16.msra.mxu0 %v1949_v18  ;;  %v2045_v18 = vld [vmem:[%s2600_s1 + $0x430] ss:$8 sps:$4 sm:$0xff]  }
  0x5b   : > { %1305 = vmatpush1.bf16.msra.mxu1 %v1952_v19  ;;  %1263 = vmatprep.subr.bf16.mxu0 %v1957_v20  ;;  %v2050_v19 = vld [vmem:[%s2600_s1 + $0x424] ss:$8 sps:$4 sm:$0xff]   ;;  %v2048_v20 = vld [vmem:[%s2600_s1 + $0x420] ss:$8 sps:$4 sm:$0xff]  }
  0x5c   : > { %1306 = vmatprep.subr.bf16.mxu1 %v1960_v21  ;;  %v2053_v21 = vld [vmem:[%s2600_s1 + $0x414] ss:$8 sps:$4 sm:$0xff]  }
  0x5e   : > { %1264 = vmatpush1.bf16.msra.mxu0 %v1955_v22  ;;  %v2051_v22 = vld [vmem:[%s2600_s1 + $0x410] ss:$8 sps:$4 sm:$0xff]  }
  0x5f   : > { %1307 = vmatpush1.bf16.msra.mxu1 %v1958_v23  ;;  %1265 = vmatprep.subr.bf16.mxu0 %v1963_v24  ;;  %v2056_v23 = vld [vmem:[%s2600_s1 + $0x404] ss:$8 sps:$4 sm:$0xff]   ;;  %v2054_v24 = vld [vmem:[%s2600_s1 + $0x400] ss:$8 sps:$4 sm:$0xff]  }
  0x60   : > { %1308 = vmatprep.subr.bf16.mxu1 %v1966_v25  ;;  %v2057_v25 = vld [vmem:[%s2267_s19 + $0x20] ss:$36 sps:$4 sm:$0xff]  }
  0x62   : > { %1266 = vmatpush1.bf16.msra.mxu0 %v1961_v26  ;;  %v2083_v26 = vmov 0.0  }
  0x63   : > { %1309 = vmatpush1.bf16.msra.mxu1 %v1964_v27  ;;  %1267 = vmatprep.subr.bf16.mxu0 %v1969_v28  ;;  %1398 = vst [vmem:[%s2580_s6] sm:$0xff] %v2083_v26  ;;  %1399 = vst [vmem:[%s2580_s6 + $0x8] sm:$0xff] %v2083_v26 }
  0x64   : > { %1310 = vmatprep.subr.bf16.mxu1 %v1972_v29 }
  0x66   : > { %1268 = vmatpush1.bf16.msra.mxu0 %v1967_v30 }
  0x67   : > { %1311 = vmatpush1.bf16.msra.mxu1 %v1970_v31  ;;  %1269 = vmatprep.subr.bf16.mxu0 %v1975_v32 }
  0x68   : > { %1312 = vmatprep.subr.bf16.mxu1 %v1978_v33 }
  0x6a   : > { %1270 = vmatpush1.bf16.msra.mxu0 %v1973_v35 }
  0x6b   : > { %1313 = vmatpush1.bf16.msra.mxu1 %v1976_v36  ;;  %1271 = vmatprep.subr.bf16.mxu0 %v1981_v38 }
  0x6c   : > { %1314 = vmatprep.subr.bf16.mxu1 %v1984_v39 }
  0x6e   : > { %1272 = vmatpush2.bf16.msra.mxu0 %v1979_v40 }
  0x6f   : > { %1315 = vmatpush2.bf16.msra.mxu1 %v1982_v41  ;;  %1273 = vmatprep.subr.bf16.mxu0 %v1987_v42 }
  0x70   : > { %1316 = vmatprep.subr.bf16.mxu1 %v1990_v43 }
  0x72   : > { %1274 = vmatpush2.bf16.msra.mxu0 %v1985_v44 }
  0x73   : > { %1317 = vmatpush2.bf16.msra.mxu1 %v1988_v45  ;;  %1275 = vmatprep.subr.bf16.mxu0 %v1993_v46 }
  0x74   : > { %1318 = vmatprep.subr.bf16.mxu1 %v1996_v47 }
  0x76   : > { %1276 = vmatpush2.bf16.msra.mxu0 %v1991_v48 }
  0x77   : > { %1319 = vmatpush2.bf16.msra.mxu1 %v1994_v49  ;;  %1277 = vmatprep.subr.bf16.mxu0 %v1999_v50 }
  0x78   : > { %1320 = vmatprep.subr.bf16.mxu1 %v2002_v51 }
  0x7a   : > { %1278 = vmatpush2.bf16.msra.mxu0 %v1997_v52 }
  0x7b   : > { %1321 = vmatpush2.bf16.msra.mxu1 %v2000_v53  ;;  %1279 = vmatprep.subr.bf16.mxu0 %v2005_v54 }
  0x7c   : > { %1322 = vmatprep.subr.bf16.mxu1 %v2008_v55 }
  0x7e   : > { %1280 = vmatpush2.bf16.msra.mxu0 %v2003_v56 }
  0x7f   : > { %1323 = vmatpush2.bf16.msra.mxu1 %v2006_v57  ;;  %1281 = vmatprep.subr.bf16.mxu0 %v2011_v58 }
  0x80   : > { %1324 = vmatprep.subr.bf16.mxu1 %v2014_v59 }
  0x82   : > { %1282 = vmatpush2.bf16.msra.mxu0 %v2009_v60 }
  0x83   : > { %1325 = vmatpush2.bf16.msra.mxu1 %v2012_v61  ;;  %1283 = vmatprep.subr.bf16.mxu0 %v2017_v62 }
  0x84   : > { %1326 = vmatprep.subr.bf16.mxu1 %v2020_v63 }
  0x86   : > { %1284 = vmatpush2.bf16.msra.mxu0 %v2015_v0 }
  0x87   : > { %1327 = vmatpush2.bf16.msra.mxu1 %v2018_v1  ;;  %1285 = vmatprep.subr.bf16.mxu0 %v2023_v2 }
  0x88   : > { %1328 = vmatprep.subr.bf16.mxu1 %v2026_v3 }
  0x8a   : > { %1286 = vmatpush2.bf16.msra.mxu0 %v2021_v4 }
  0x8b   : > { %1329 = vmatpush2.bf16.msra.mxu1 %v2024_v5  ;;  %1341 = vmatprep.subr.bf16.mxu0 %v2032_v6 }
  0x8d   : > { %1288 = vmatmul.mubr.bf16.vlgmr.msra.gmra.mxu0 %v2027_v7 }
  0x8e   : > { %1331 = vmatmul.mubr.bf16.vlgmr.msra.gmra.mxu1 %v2033_v8  ;;  %1342 = vmatpush1.bf16.msra.mxu0 %v2030_v9 }
  0x8f   : > { %1373 = vmatprep.mubr.bf16.mxu0 %v2082_v12  ;;  %1343 = vmatprep.subr.bf16.mxu0 %v2038_v10  ;;  %v2084_v12 = vmov 1966171168  }
  0x92   : > { %1344 = vmatpush1.bf16.msra.mxu0 %v2036_v11 }
  0x93   : > { %1345 = vmatprep.subr.bf16.mxu0 %v2041_v13  ;;  %v1418_v13 = vunpack.c.l.s4 %v2084_v12 }
  0x96   : > { %1346 = vmatpush1.bf16.msra.mxu0 %v2039_v14 }
  0x97   : > { %1347 = vmatprep.subr.bf16.mxu0 %v2044_v15 }
  0x9a   : > { %1348 = vmatpush1.bf16.msra.mxu0 %v2042_v16 }
  0x9b   : > { %1349 = vmatprep.subr.bf16.mxu0 %v2047_v17 }
  0x9e   : > { %1350 = vmatpush1.bf16.msra.mxu0 %v2045_v18  ;;  %v1420_v18 = vlaneseq }
  0x9f   : > { %1351 = vmatprep.subr.bf16.mxu0 %v2050_v19 }
  0xa0   : > { %vm1434_vm0 = vcmp.lt.s32.totalorder %v1420_v18, 256 }
  0xa2   : > { %1352 = vmatpush1.bf16.msra.mxu0 %v2048_v20 }
  0xa3   : > { %1353 = vmatprep.subr.bf16.mxu0 %v2053_v21 }
  0xa6   : > { %1354 = vmatpush1.bf16.msra.mxu0 %v2051_v22 }
  0xa7   : > { %1355 = vmatprep.subr.bf16.mxu0 %v2056_v23  ;;  %v1419_v23 = vunpack.c.0.s8 %v1418_v13 }
  0xaa   : > { %1356 = vmatpush1.bf16.msra.mxu0 %v2054_v24 }
  0xad   : > { %1374 = vmatmul.mubr.bf16.vlgmr.msra.gmra.mxu0 %v2057_v25 }
 0x10d   : > { %v1203_v27 = vpop.f32.mrf.mxu0 }
 0x10e   : > { %v1246_v28 = vpop.f32.mrf.mxu1 }
 0x10f   : > { %v1205_v29 = vpop.f32.mrf.mxu0  ;;  %v1247_v40 = vadd.f32 %v1246_v28, %v1203_v27  ;;  %v1421_v28 = vshrl.u32 %v1420_v18, 7 }
 0x110   : > { %v1248_v30 = vpop.f32.mrf.mxu1 }
 0x111   : > { %v1207_v31 = vpop.f32.mrf.mxu0  ;;  %v1249_v41 = vadd.f32 %v1248_v30, %v1205_v29 }
 0x112   : > { %v1250_v32 = vpop.f32.mrf.mxu1 }
 0x113   : > { %v1209_v33 = vpop.f32.mrf.mxu0  ;;  %v1251_v42 = vadd.f32 %v1250_v32, %v1207_v31 }
 0x114   : > { %v1252_v35 = vpop.f32.mrf.mxu1 }
 0x115   : > { %v1253_v47 = vadd.f32 %v1252_v35, %v1209_v33  ;;  %v1422_v35 = vsub.s32 %v1419_v23, %v1421_v28 }
 0x14d   : > { %v1289_v34 = vpop.f32.mrf.mxu0 }
 0x14e   : > { %v1332_v37 = vpop.f32.mrf.mxu1  ;;  %v1290_v43 = vadd.f32 %v1289_v34, %v1247_v40 }
 0x14f   : > { %v1291_v36 = vpop.f32.mrf.mxu0 }
 0x150   : > { %v1334_v39 = vpop.f32.mrf.mxu1  ;;  %v1292_v44 = vadd.f32 %v1291_v36, %v1249_v41  ;;  %v1333_v50 = vadd.f32 %v1332_v37, %v1290_v43 }
 0x151   : > { %v1293_v38 = vpop.f32.mrf.mxu0 }
 0x152   : > { %v1336_v46 = vpop.f32.mrf.mxu1  ;;  %v1294_v48 = vadd.f32 %v1293_v38, %v1251_v42  ;;  %v1335_v51 = vadd.f32 %v1334_v39, %v1292_v44 }
 0x153   : > { %v1295_v45 = vpop.f32.mrf.mxu0 }
 0x154   : > { %v1296_v52 = vadd.f32 %v1295_v45, %v1253_v47  ;;  %v1338_v53 = vpop.f32.mrf.mxu1  ;;  %v1337_v55 = vadd.f32 %v1336_v46, %v1294_v48 }
 0x156   : > { %v1339_v59 = vadd.f32 %v1338_v53, %v1296_v52 }
 0x16d   : > { %v1375_v49 = vpop.f32.mrf.mxu0 }
 0x16e   : > { %v1376_v56 = vadd.f32 %v1375_v49, %v1333_v50 }
 0x16f   : > { %v1377_v54 = vpop.f32.mrf.mxu0 }
 0x170   : > { %v1378_v57 = vadd.f32 %v1377_v54, %v1335_v51  ;;  %v1438_v63 = vmul.f32 %v1376_v56, %v1376_v56 }
 0x171   : > { %v1379_v58 = vpop.f32.mrf.mxu0 }
 0x172   : > { %v1799_v60 = vpack.c.bf16 %v1378_v57, %v1376_v56  ;;  %v1380_v61 = vadd.f32 %v1379_v58, %v1337_v55  ;;  %v1439_v7 = vmul.f32 %v1378_v57, %v1378_v57 }
 0x173   : > { %v1381_v62 = vpop.f32.mrf.mxu0 }
 0x174   : > { %1396 = vst [vmem:[%s235_s8] sm:$0xff] %v1799_v60  ;;  %v1400_v0 = vadd.f32 %v1380_v61, %v1376_v56  ;;  %v1440_v1 = vmul.f32 %v1380_v61, %v1380_v61  ;;  %v1382_v2 = vadd.f32 %v1381_v62, %v1339_v59 }
 0x176   : > { %v1401_v3 = vrot.slane %v1400_v0, 4  ;;  %v1442_v4 = vadd.f32 %v1440_v1, %v1438_v63  ;;  %v1800_v5 = vpack.c.bf16 %v1382_v2, %v1380_v61  ;;  %v1407_v6 = vadd.f32 %v1382_v2, %v1378_v57 }
 0x177   : > { %v1441_v8 = vmul.f32 %v1382_v2, %v1382_v2 }
 0x178   : > { %v1402_v9 = vadd.f32 %v1401_v3, %v1400_v0  ;;  %v1443_v10 = vrot.slane %v1442_v4, 4  ;;  %1397 = vst [vmem:[%s235_s8 + $0x8] sm:$0xff] %v1800_v5  ;;  %v1408_v11 = vrot.slane %v1407_v6, 4 }
 0x179   : > { %v1449_v14 = vadd.f32 %v1441_v8, %v1439_v7 }
 0x17a   : > { %v1403_v15 = vrot.slane %v1402_v9, 2  ;;  %v1444_v16 = vadd.f32 %v1443_v10, %v1442_v4  ;;  %v1409_v17 = vadd.f32 %v1408_v11, %v1407_v6 }
 0x17b   : > { %v1450_v19 = vrot.slane %v1449_v14, 4 }
 0x17c   : > { %v1404_v20 = vadd.f32 %v1403_v15, %v1402_v9  ;;  %v1445_v21 = vrot.slane %v1444_v16, 2  ;;  %v1410_v22 = vrot.slane %v1409_v17, 2 }
 0x17d   : > { %v1451_v24 = vadd.f32 %v1450_v19, %v1449_v14 }
 0x17e   : > { %v1405_v25 = vrot.slane %v1404_v20, 1  ;;  %v1446_v26 = vadd.f32 %v1445_v21, %v1444_v16  ;;  %v1411_v27 = vadd.f32 %v1410_v22, %v1409_v17 }
 0x17f   : > { %v1452_v29 = vrot.slane %v1451_v24, 2 }
 0x180   : > { %v1412_v30 = vrot.slane %v1411_v27, 1  ;;  %v1447_v31 = vrot.slane %v1446_v26, 1  ;;  %v1406_v33 = vadd.f32 %v1405_v25, %v1404_v20 }
 0x181   : > { %v1453_v32 = vadd.f32 %v1452_v29, %v1451_v24 }
 0x182   : > { %v1413_v34 = vadd.f32 %v1412_v30, %v1411_v27  ;;  %v1448_v38 = vadd.f32 %v1447_v31, %v1446_v26 }
 0x183   : > { %v1454_v36 = vrot.slane %v1453_v32, 1 }
 0x184   : > { %v1416_v37 = vcombine.low %v1406_v33, %v1413_v34 }
 0x185   : > { %v1455_v39 = vadd.f32 %v1454_v36, %v1453_v32 }
 0x186   : > { %v1423_v40 = vrot.slane %v1416_v37, %v1422_v35 }
 0x187   : > { %v1458_v41 = vcombine.low %v1448_v38, %v1455_v39 }
 0x188   : > { %v1430_v42 = vrot.slane %v1423_v40, %v1422_v35 }
 0x189   : > { %v1465_v43 = vrot.slane %v1458_v41, %v1422_v35 }
 0x18a   : > { %1436 = vst.msk [vmem:[%s2580_s6] ss:$8 sm:$0x3] %vm1434_vm0, %v1430_v42 }
 0x18b   : > { %v1472_v44 = vrot.slane %v1465_v43, %v1422_v35 }
 0x18d   : > { %1794 = vst.msk [vmem:[%s2580_s6 + $0x1] ss:$8 sm:$0x3] %vm1434_vm0, %v1472_v44 }
 0x18e PF: > { %s14_s14 = sadd.s32 1, %s2080_s14   ;;  %s2603_s12 = smov %s2076_s13 }
 0x18f   : > { %p11_p6 = scmp.ge.s32.totalorder %s14_s14, 4   ;;  %s2604_s13 = smov %s2606_s15 }
 0x191   :  { %13 = sbr.rel (!%p11_p6) target bundleno = 2 (0x2), region = 74 }

// kernel: tile.42
= control target key start
LH: loop header
LB: loop body
LE: loop exit
PB: predicated region body
PF: predicated region fallthrough
CT: control target
= control target key end

     0   :  { %s22_s0 = inlined_call_operand.vmem [shape: f32[64], index: 0, kind: input, shape index: {}]   ;;  %s23_s1 = inlined_call_operand.vmem [shape: f32[4,64], index: 1, kind: output, shape index: {}]  }
   0x1   :  { %v4_v0 = vld [vmem:[%s22_s0] ss:$0 sm:$0xff] }
   0x2   :  { %5 = vst [vmem:[%s23_s1] sm:$0xf] %v4_v0 }

// kernel: tile.47
= control target key start
LH: loop header
LB: loop body
LE: loop exit
PB: predicated region body
PF: predicated region fallthrough
CT: control target
= control target key end

     0   :  { %s7_s8 = smov 3  ;;  %vm9_vm0 = vcmask 523264   ;;  %s34_s9 = smov 64   ;;  %vm16_vm1 = vcmask 1048064   ;;  %s54_s0 = inlined_call_operand.vmem [shape: f32[4,64], index: 0, kind: input, shape index: {}]   ;;  %s55_s1 = inlined_call_operand.vmem [shape: f32[1,256], index: 1, kind: output, shape index: {}]  }
   0x1   :  { %v5_v0 = vld [vmem:[%s54_s0] sm:$0xf]  ;;  %s12_s0 = smov 3 }
   0x2   :  { %6 = vst [vmem:[#allocation1] sm:$0xf] %v5_v0 }
   0x9   :  { %v13_v1 = vld [vmem:[#allocation1 + $0x1] ss:$2 sm:%s12_s0]   ;;  %v8_v2 = vld [vmem:[#allocation1] ss:$2 sm:%s7_s8]  }
   0xa   :  { %14 = vrot.lane.b32.xlu0 %v13_v1, %s34_s9  ;;  %10 = vst.msk [vmem:[#allocation0] ss:$8 sm:$0x3] %vm9_vm0, %v8_v2  }
  0x7c   :  { %v15_v3 = vpop.permute.xlu0 %14  }
  0x7d   :  { %17 = vst.msk [vmem:[#allocation0] ss:$8 sm:$0x3] %vm16_vm1, %v15_v3  }
  0x84   :  { %v22_v4 = vld [vmem:[#allocation0] sm:$0x1]  ;;  %v27_v5 = vld [vmem:[#allocation0 + $0x8] sm:$0x1] }
  0x85   :  { %25 = vst [vmem:[%s55_s1] sm:$0x1] %v22_v4  ;;  %32 = vst [vmem:[%s55_s1 + $0x1] sm:$0x1] %v27_v5 }

// kernel: dcgenerator_forward.12
= control target key start
LH: loop header
LB: loop body
LE: loop exit
PB: predicated region body
PF: predicated region fallthrough
CT: control target
= control target key end

     0   :  { %s348_s12 = smov 0   ;;  %s374_s0 = inlined_call_operand.vmem [shape: bf16[32,256], index: 0, kind: input, shape index: {}]   ;;  %s375_s1 = inlined_call_operand.vmem [shape: f32[1,256], index: 1, kind: input, shape index: {}]   ;;  %s376_s2 = inlined_call_operand.vmem [shape: f32[1,256], index: 2, kind: input, shape index: {}]   ;;  %s377_s3 = inlined_call_operand.vmem [shape: bf16[32,256], index: 3, kind: output, shape index: {}]  }
   0x1 LB: > { %s293_s13 = sadd.s32 4294967295, %s326_s12   ;;  %p297_p0 = scmp.ge.s32.totalorder %s326_s12, 1  ;;  %s326_s12 = sphi %s348_s12, %s13_s12  }
   0x2   : > { %p139_p1 = scmp.lt.s32.totalorder %s326_s12, 3 }
   0x4   : > { %p140_p2 = pnand %p297_p0, %p139_p1 }
   0x5   : > { %s298_s14 = sshll.u32 (!%p140_p2), %s293_s13, 1 }
   0x6   : > { %143 = sbr.rel (%p140_p2) target bundleno = 28 (0x1c), region = 32  ;;  %p166_p3 = scmp.lt.s32.totalorder (!%p140_p2), %s298_s14, 3 }
   0xb   : > { %v187_v0 = vlaneseq  ;;  %s379_s14 = smov (!%p166_p3, %s298_s14), 3  ;;  %v185_v2 = vld [vmem:[%s375_s1] sm:$0x3] }
   0xc   : > { %v201_v5 = vld [vmem:[%s376_s2] sm:$0x3]  ;;  %s308_s19 = sshll.u32 %s379_s14, 3 }
   0xd   : > { %v188_v1 = vshrl.u32 %v187_v0, 7  ;;  %s170_s22 = scalar_lea.vmem %s374_s0, %s308_s19  ;;  %s177_s25 = scalar_lea.vmem %s377_s3, %s308_s19 }
   0xe   : > { %v179_v8 = vld [vmem:[%s170_s22] sm:$0xff]  ;;  %v180_v9 = vld [vmem:[%s170_s22 + $0x8] sm:$0xff] }
   0xf   : > { %v189_v3 = vsub.s32 0, %v188_v1  ;;  %v193_v4 = vsub.s32 1, %v188_v1  ;;  %v181_v12 = vunpack.c.l.bf16 %v179_v8  ;;  %v182_v13 = vunpack.c.h.bf16 %v179_v8 }
  0x10   : > { %v183_v14 = vunpack.c.l.bf16 %v180_v9  ;;  %v184_v15 = vunpack.c.h.bf16 %v180_v9 }
  0x11   : > { %v190_v6 = vrot.slane %v185_v2, %v189_v3  ;;  %v194_v7 = vrot.slane %v185_v2, %v193_v4  ;;  %v206_v10 = vrot.slane %v201_v5, %v189_v3  ;;  %v210_v11 = vrot.slane %v201_v5, %v193_v4 }
  0x13   : > { %v197_v16 = vmul.f32 %v190_v6, %v181_v12  ;;  %v198_v17 = vmul.f32 %v194_v7, %v182_v13  ;;  %v199_v18 = vmul.f32 %v190_v6, %v183_v14  ;;  %v200_v19 = vmul.f32 %v194_v7, %v184_v15 }
  0x15   : > { %v213_v20 = vadd.f32 %v206_v10, %v197_v16  ;;  %v214_v21 = vadd.f32 %v210_v11, %v198_v17  ;;  %v215_v22 = vadd.f32 %v206_v10, %v199_v18  ;;  %v216_v23 = vadd.f32 %v210_v11, %v200_v19 }
  0x17   : > { %v217_v24 = vmax.f32 %v213_v20, 0.0  ;;  %v218_v25 = vmax.f32 %v214_v21, 0.0  ;;  %v219_v26 = vmax.f32 %v215_v22, 0.0  ;;  %v220_v27 = vmax.f32 %v216_v23, 0.0 }
  0x19   : > { %v310_v28 = vpack.c.bf16 %v218_v25, %v217_v24  ;;  %v311_v29 = vpack.c.bf16 %v220_v27, %v219_v26 }
  0x1b   : > { %233 = vst [vmem:[%s177_s25] sm:$0xff] %v310_v28  ;;  %234 = vst [vmem:[%s177_s25 + $0x8] sm:$0xff] %v311_v29 }
  0x1c PF: > { %s13_s12 = sadd.s32 1, %s326_s12  }
  0x1d   : > { %p10_p4 = scmp.ge.s32.totalorder %s13_s12, 4  }
  0x1f   :  { %12 = sbr.rel (!%p10_p4) target bundleno = 1 (0x1), region = 62 }

// kernel: dcgenerator_forward.13
= control target key start
LH: loop header
LB: loop body
LE: loop exit
PB: predicated region body
PF: predicated region fallthrough
CT: control target
= control target key end

     0   :  { %s1468_s12 = smov 0   ;;  %s1470_s13 = smov 0   ;;  %s1660_s0 = inlined_call_operand.vmem [shape: bf16[128,640], index: 0, kind: input, shape index: {}]   ;;  %s1661_s1 = inlined_call_operand.vmem [shape: bf16[640,128], index: 1, kind: input, shape index: {}]   ;;  %s1662_s2 = inlined_call_operand.vmem [shape: bf16[128,128], index: 2, kind: output, shape index: {0}]   ;;  %s1663_s3 = inlined_call_operand.vmem [shape: f32[16,128], index: 3, kind: output, shape index: {1}]  }
   0x1   :  { %s1472_s14 = smov 0  }
   0x2 LB: > { %s23_s15 = sadd.s32 1, %s1441_s13  ;;  %p1090_p0 = scmp.ge.s32.totalorder %s1445_s14, 1  ;;  %s1445_s14 = sphi %s1472_s14, %s14_s14   ;;  %s1441_s13 = sphi %s1470_s13, %s1665_s13   ;;  %s1437_s12 = sphi %s1468_s12, %s1664_s12  }
   0x3   : > { %p24_p1 = scmp.ge.s32.totalorder %s23_s15, 2  ;;  %p167_p2 = scmp.lt.s32.totalorder %s1445_s14, 3 }
   0x5   : > { %s1667_s15 = smov (%p24_p1, %s23_s15), 0  ;;  %p168_p3 = pnand %p1090_p0, %p167_p2 }
   0x6   : > { %s1091_s23 = sshll.u32 (!%p168_p3), %s1437_s12, 3  ;;  %p226_p5 = scmp.lt.s32.totalorder (!%p168_p3), %s1437_s12, 1 }
   0x7   : > { %171 = sbr.rel (%p168_p3) target bundleno = 309 (0x135), region = 28  ;;  %p207_p4 = scmp.lt.s32.totalorder (!%p168_p3), %s1091_s23, 15 }
   0xc   : > { %v1355_v0 = vld [vmem:[%s1661_s1 + $0x78] sm:$0xff]   ;;  %v1359_v4 = vld [vmem:[%s1661_s1 + $0x70] sm:$0xff]   ;;  %v1363_v8 = vld [vmem:[%s1661_s1 + $0x68] sm:$0xff]   ;;  %s1669_s23 = smov (!%p207_p4, %s1091_s23), 15  ;;  %s1671_s12 = smov (!%p226_p5, %s1437_s12), 1  ;;  %v1447_v60 = vmov 0.0  }
   0xd   : > { %v1356_v1 = vld [vmem:[%s1661_s1 + $0xf8] sm:$0xff]   ;;  %1197 = vmatprep.subr.bf16.mxu0 %v1355_v0  ;;  %v1360_v5 = vld [vmem:[%s1661_s1 + $0xf0] sm:$0xff]   ;;  %v1364_v9 = vld [vmem:[%s1661_s1 + $0xe8] sm:$0xff]   ;;  %s1329_s24 = smul.u32 20, %s1669_s23  ;;  %s1095_s7 = sshll.u32 %s1671_s12, 3 }
   0xe   : > { %v1357_v2 = vld [vmem:[%s1661_s1 + $0x38] sm:$0xff]   ;;  %1237 = vmatprep.subr.bf16.mxu1 %v1356_v1  ;;  %v1361_v6 = vld [vmem:[%s1661_s1 + $0x30] sm:$0xff]   ;;  %v1365_v10 = vld [vmem:[%s1661_s1 + $0x28] sm:$0xff]   ;;  %s1642_s11 = scalar_lea.vmem %s1663_s3, %s1095_s7  ;;  %s1094_s12 = sshll.u32 %s1669_s23, 2 }
   0xf   : > { %v1358_v3 = vld [vmem:[%s1661_s1 + $0xb8] sm:$0xff]   ;;  %1198 = vmatpush3.bf16.msra.mxu0 %v1357_v2  ;;  %v1362_v7 = vld [vmem:[%s1661_s1 + $0xb0] sm:$0xff]   ;;  %v1366_v11 = vld [vmem:[%s1661_s1 + $0xa8] sm:$0xff]   ;;  %s1585_s8 = scalar_lea.vmem %s1660_s0, %s1329_s24  ;;  %917 = vst [vmem:[%s1642_s11] sm:$0xff] %v1447_v60  ;;  %s224_s17 = scalar_lea.vmem %s1662_s2, %s1094_s12 }
  0x10   : > { %1238 = vmatpush3.bf16.msra.mxu1 %v1358_v3  ;;  %1199 = vmatprep.subr.bf16.mxu0 %v1359_v4  ;;  %v1367_v12 = vld [vmem:[%s1661_s1 + $0x60] sm:$0xff]   ;;  %v1371_v16 = vld [vmem:[%s1661_s1 + $0x58] sm:$0xff]   ;;  %v1375_v20 = vld [vmem:[%s1661_s1 + $0x50] sm:$0xff]  }
  0x11   : > { %1239 = vmatprep.subr.bf16.mxu1 %v1360_v5  ;;  %v1368_v13 = vld [vmem:[%s1661_s1 + $0xe0] sm:$0xff]   ;;  %v1372_v17 = vld [vmem:[%s1661_s1 + $0xd8] sm:$0xff]   ;;  %v1376_v21 = vld [vmem:[%s1661_s1 + $0xd0] sm:$0xff]  }
  0x12   : > { %v1369_v14 = vld [vmem:[%s1661_s1 + $0x20] sm:$0xff]   ;;  %v1373_v18 = vld [vmem:[%s1661_s1 + $0x18] sm:$0xff]   ;;  %v1377_v22 = vld [vmem:[%s1661_s1 + $0x10] sm:$0xff]  }
  0x13   : > { %1200 = vmatpush3.bf16.msra.mxu0 %v1361_v6  ;;  %v1370_v15 = vld [vmem:[%s1661_s1 + $0xa0] sm:$0xff]   ;;  %v1374_v19 = vld [vmem:[%s1661_s1 + $0x98] sm:$0xff]   ;;  %v1378_v23 = vld [vmem:[%s1661_s1 + $0x90] sm:$0xff]  }
  0x14   : > { %1240 = vmatpush3.bf16.msra.mxu1 %v1362_v7  ;;  %1201 = vmatprep.subr.bf16.mxu0 %v1363_v8  ;;  %v1379_v24 = vld [vmem:[%s1661_s1 + $0x48] sm:$0xff]   ;;  %v1383_v28 = vld [vmem:[%s1661_s1 + $0x40] sm:$0xff]   ;;  %v1393_v36 = vld [vmem:[%s1661_s1 + $0x138] sm:$0xff]  }
  0x15   : > { %1241 = vmatprep.subr.bf16.mxu1 %v1364_v9  ;;  %v1380_v25 = vld [vmem:[%s1661_s1 + $0xc8] sm:$0xff]   ;;  %v1384_v29 = vld [vmem:[%s1661_s1 + $0xc0] sm:$0xff]   ;;  %v1394_v37 = vld [vmem:[%s1661_s1 + $0x130] sm:$0xff]  }
  0x16   : > { %v1381_v26 = vld [vmem:[%s1661_s1 + $0x8] sm:$0xff]   ;;  %v1385_v30 = vld [vmem:[%s1661_s1] sm:$0xff]   ;;  %v1405_v45 = vld [vmem:[%s1585_s8 + $0x5c] ss:$20 sps:$4 sm:$0xff]  }
  0x17   : > { %1202 = vmatpush3.bf16.msra.mxu0 %v1365_v10  ;;  %v1382_v27 = vld [vmem:[%s1661_s1 + $0x88] sm:$0xff]   ;;  %v1386_v31 = vld [vmem:[%s1661_s1 + $0x80] sm:$0xff]   ;;  %v1409_v46 = vld [vmem:[%s1661_s1 + $0x118] sm:$0xff]  }
  0x18   : > { %1242 = vmatpush3.bf16.msra.mxu1 %v1366_v11  ;;  %1203 = vmatprep.subr.bf16.mxu0 %v1367_v12  ;;  %v1387_v32 = vld [vmem:[%s1585_s8] ss:$20 sps:$4 sm:$0xff]   ;;  %v1389_v33 = vld [vmem:[%s1585_s8 + $0x4] ss:$20 sps:$4 sm:$0xff]   ;;  %v1390_v34 = vld [vmem:[%s1585_s8 + $0x8] ss:$20 sps:$4 sm:$0xff]  }
  0x19   : > { %1243 = vmatprep.subr.bf16.mxu1 %v1368_v13  ;;  %v1392_v35 = vld [vmem:[%s1585_s8 + $0xc] ss:$20 sps:$4 sm:$0xff]   ;;  %714 = vmatprep.mubr.bf16.mxu0 %v1389_v33  ;;  %v1397_v39 = vld [vmem:[%s1585_s8 + $0x34] ss:$20 sps:$4 sm:$0xff]   ;;  %v1400_v42 = vld [vmem:[%s1585_s8 + $0x30] ss:$20 sps:$4 sm:$0xff]  }
  0x1a   : > { %779 = vmatprep.mubr.bf16.mxu1 %v1392_v35  ;;  %v1395_v38 = vld [vmem:[%s1585_s8 + $0x2c] ss:$20 sps:$4 sm:$0xff]   ;;  %v1399_v40 = vld [vmem:[%s1585_s8 + $0x28] ss:$20 sps:$4 sm:$0xff]   ;;  %v1407_v47 = vld [vmem:[%s1585_s8 + $0x50] ss:$20 sps:$4 sm:$0xff]  }
  0x1b   : > { %1204 = vmatpush3.bf16.msra.mxu0 %v1369_v14  ;;  %v1401_v41 = vld [vmem:[%s1661_s1 + $0x128] sm:$0xff]   ;;  %v1402_v44 = vld [vmem:[%s1661_s1 + $0x120] sm:$0xff]   ;;  %v1411_v49 = vld [vmem:[%s1585_s8 + $0x7c] ss:$20 sps:$4 sm:$0xff]  }
  0x1c   : > { %1244 = vmatpush3.bf16.msra.mxu1 %v1370_v15  ;;  %1205 = vmatprep.subr.bf16.mxu0 %v1371_v16  ;;  %v1403_v43 = vld [vmem:[%s1585_s8 + $0x54] ss:$20 sps:$4 sm:$0xff]   ;;  %v1408_v48 = vld [vmem:[%s1585_s8 + $0x58] ss:$20 sps:$4 sm:$0xff]   ;;  %v1419_v55 = vld [vmem:[%s1585_s8 + $0x10] ss:$20 sps:$4 sm:$0xff]  }
  0x1d   : > { %1245 = vmatprep.subr.bf16.mxu1 %v1372_v17  ;;  %v1413_v50 = vld [vmem:[%s1585_s8 + $0x84] ss:$20 sps:$4 sm:$0xff]   ;;  %v1410_v51 = vld [vmem:[%s1661_s1 + $0x110] sm:$0xff]   ;;  %v1417_v52 = vld [vmem:[%s1661_s1 + $0x108] sm:$0xff]  }
  0x1e   : > { %v1415_v53 = vld [vmem:[%s1585_s8 + $0x78] ss:$20 sps:$4 sm:$0xff]   ;;  %v1416_v54 = vld [vmem:[%s1585_s8 + $0x80] ss:$20 sps:$4 sm:$0xff]   ;;  %v1422_v59 = vld [vmem:[%s1585_s8 + $0x88] ss:$20 sps:$4 sm:$0xff]  }
  0x1f   : > { %1206 = vmatpush3.bf16.msra.mxu0 %v1373_v18  ;;  %v1420_v56 = vld [vmem:[%s1585_s8 + $0x60] ss:$20 sps:$4 sm:$0xff]   ;;  %v1421_v58 = vld [vmem:[%s1585_s8 + $0x38] ss:$20 sps:$4 sm:$0xff]  }
  0x20   : > { %1246 = vmatpush3.bf16.msra.mxu1 %v1374_v19  ;;  %1207 = vmatprep.subr.bf16.mxu0 %v1375_v20  ;;  %v1418_v57 = vld [vmem:[%s1661_s1 + $0x100] sm:$0xff]  }
  0x21   : > { %1247 = vmatprep.subr.bf16.mxu1 %v1376_v21 }
  0x23   : > { %1208 = vmatpush3.bf16.msra.mxu0 %v1377_v22 }
  0x24   : > { %1248 = vmatpush3.bf16.msra.mxu1 %v1378_v23  ;;  %1209 = vmatprep.subr.bf16.mxu0 %v1379_v24 }
  0x25   : > { %1249 = vmatprep.subr.bf16.mxu1 %v1380_v25 }
  0x27   : > { %1210 = vmatpush3.bf16.msra.mxu0 %v1381_v26 }
  0x28   : > { %1250 = vmatpush3.bf16.msra.mxu1 %v1382_v27  ;;  %1211 = vmatprep.subr.bf16.mxu0 %v1383_v28 }
  0x29   : > { %1251 = vmatprep.subr.bf16.mxu1 %v1384_v29 }
  0x2b   : > { %1212 = vmatpush3.bf16.msra.mxu0 %v1385_v30 }
  0x2c   : > { %1252 = vmatpush3.bf16.msra.mxu1 %v1386_v31  ;;  %1289 = vmatprep.subr.bf16.mxu0 %v1393_v36 }
  0x2d   : > { %1313 = vmatprep.subr.bf16.mxu1 %v1393_v36 }
  0x2e   : > { %715 = vmatmul.mubr.bf16.vlgmr.msra.gmra.mxu0 %v1387_v32 }
  0x2f   : > { %780 = vmatmul.mubr.bf16.vlgmr.msra.gmra.mxu1 %v1390_v34  ;;  %1290 = vmatpush3.bf16.msra.mxu0 %v1393_v36 }
  0x30   : > { %1321 = vmatpush3.bf16.msra.mxu1 %v1393_v36  ;;  %1291 = vmatprep.subr.bf16.mxu0 %v1394_v37 }
  0x31   : > { %1314 = vmatprep.subr.bf16.mxu1 %v1394_v37  ;;  %722 = vmatprep.mubr.bf16.mxu0 %v1395_v38 }
  0x32   : > { %787 = vmatprep.mubr.bf16.mxu1 %v1397_v39 }
  0x33   : > { %1292 = vmatpush3.bf16.msra.mxu0 %v1394_v37 }
  0x34   : > { %1322 = vmatpush3.bf16.msra.mxu1 %v1394_v37  ;;  %1293 = vmatprep.subr.bf16.mxu0 %v1401_v41 }
  0x35   : > { %1315 = vmatprep.subr.bf16.mxu1 %v1401_v41 }
  0x36   : > { %723 = vmatmul.mubr.bf16.gmra.mxu0 %v1399_v40 }
  0x37   : > { %788 = vmatmul.mubr.bf16.gmra.mxu1 %v1400_v42  ;;  %730 = vmatprep.mubr.bf16.mxu0 %v1403_v43 }
  0x38   : > { %1294 = vmatpush3.bf16.msra.mxu0 %v1401_v41  ;;  %795 = vmatprep.mubr.bf16.mxu1 %v1405_v45 }
  0x39   : > { %1323 = vmatpush3.bf16.msra.mxu1 %v1401_v41  ;;  %1295 = vmatprep.subr.bf16.mxu0 %v1402_v44 }
  0x3a   : > { %1316 = vmatprep.subr.bf16.mxu1 %v1402_v44 }
  0x3c   : > { %1296 = vmatpush3.bf16.msra.mxu0 %v1402_v44 }
  0x3d   : > { %1324 = vmatpush3.bf16.msra.mxu1 %v1402_v44  ;;  %1297 = vmatprep.subr.bf16.mxu0 %v1409_v46 }
  0x3e   : > { %731 = vmatmul.mubr.bf16.gmra.mxu0 %v1407_v47  ;;  %1317 = vmatprep.subr.bf16.mxu1 %v1409_v46 }
  0x3f   : > { %796 = vmatmul.mubr.bf16.gmra.mxu1 %v1408_v48  ;;  %738 = vmatprep.mubr.bf16.mxu0 %v1411_v49 }
  0x40   : > { %1298 = vmatpush3.bf16.msra.mxu0 %v1409_v46  ;;  %803 = vmatprep.mubr.bf16.mxu1 %v1413_v50 }
  0x41   : > { %1325 = vmatpush3.bf16.msra.mxu1 %v1409_v46  ;;  %1299 = vmatprep.subr.bf16.mxu0 %v1410_v51 }
  0x42   : > { %1318 = vmatprep.subr.bf16.mxu1 %v1410_v51 }
  0x44   : > { %1300 = vmatpush3.bf16.msra.mxu0 %v1410_v51 }
  0x45   : > { %1326 = vmatpush3.bf16.msra.mxu1 %v1410_v51  ;;  %1301 = vmatprep.subr.bf16.mxu0 %v1417_v52 }
  0x46   : > { %739 = vmatmul.mubr.bf16.gmra.mxu0 %v1415_v53  ;;  %1319 = vmatprep.subr.bf16.mxu1 %v1417_v52 }
  0x47   : > { %804 = vmatmul.mubr.bf16.gmra.mxu1 %v1416_v54  ;;  %1305 = vmatprep.mubr.bf16.mxu0 %v1419_v55 }
  0x48   : > { %1302 = vmatpush3.bf16.msra.mxu0 %v1417_v52  ;;  %1309 = vmatprep.mubr.bf16.mxu1 %v1420_v56 }
  0x49   : > { %1327 = vmatpush3.bf16.msra.mxu1 %v1417_v52  ;;  %1303 = vmatprep.subr.bf16.mxu0 %v1418_v57 }
  0x4a   : > { %1320 = vmatprep.subr.bf16.mxu1 %v1418_v57 }
  0x4c   : > { %1304 = vmatpush3.bf16.msra.mxu0 %v1418_v57 }
  0x4d   : > { %1328 = vmatpush3.bf16.msra.mxu1 %v1418_v57 }
  0x4f   : > { %1306 = vmatmul.mubr.bf16.vlgmr.msra.gmra.mxu0 %v1421_v58 }
  0x50   : > { %1310 = vmatmul.mubr.bf16.vlgmr.msra.gmra.mxu1 %v1422_v59 }
  0xee   : > { %v1213_v61 = vpop.f32.mrf.mxu0 }
  0xef   : > { %v1253_v62 = vpop.f32.mrf.mxu1 }
  0xf0   : > { %v1214_v63 = vpop.f32.mrf.mxu0 }
  0xf1   : > { %v1254_v0 = vpop.f32.mrf.mxu1  ;;  %v1215_v28 = vadd.f32 %v1214_v63, %v1213_v61 }
  0xf2   : > { %v1216_v1 = vpop.f32.mrf.mxu0  ;;  %v1255_v29 = vadd.f32 %v1254_v0, %v1253_v62 }
  0xf3   : > { %v1256_v2 = vpop.f32.mrf.mxu1 }
  0xf4   : > { %v1217_v3 = vpop.f32.mrf.mxu0  ;;  %v782_v49 = vadd.f32 %v1255_v29, %v1215_v28 }
  0xf5   : > { %v1257_v4 = vpop.f32.mrf.mxu1  ;;  %v1218_v40 = vadd.f32 %v1217_v3, %v1216_v1 }
  0xf6   : > { %v1219_v5 = vpop.f32.mrf.mxu0  ;;  %v1258_v41 = vadd.f32 %v1257_v4, %v1256_v2 }
  0xf7   : > { %v1259_v6 = vpop.f32.mrf.mxu1 }
  0xf8   : > { %v1220_v7 = vpop.f32.mrf.mxu0  ;;  %v785_v59 = vadd.f32 %v1258_v41, %v1218_v40 }
  0xf9   : > { %v1260_v8 = vpop.f32.mrf.mxu1  ;;  %v1221_v31 = vadd.f32 %v1220_v7, %v1219_v5 }
  0xfa   : > { %v1222_v9 = vpop.f32.mrf.mxu0  ;;  %v1261_v32 = vadd.f32 %v1260_v8, %v1259_v6 }
  0xfb   : > { %v1262_v10 = vpop.f32.mrf.mxu1 }
  0xfc   : > { %v1223_v11 = vpop.f32.mrf.mxu0  ;;  %v790_v48 = vadd.f32 %v1261_v32, %v1221_v31 }
  0xfd   : > { %v1263_v12 = vpop.f32.mrf.mxu1  ;;  %v1224_v33 = vadd.f32 %v1223_v11, %v1222_v9 }
  0xfe   : > { %v1225_v13 = vpop.f32.mrf.mxu0  ;;  %v1264_v34 = vadd.f32 %v1263_v12, %v1262_v10 }
  0xff   : > { %v1265_v14 = vpop.f32.mrf.mxu1 }
 0x100   : > { %v1226_v15 = vpop.f32.mrf.mxu0  ;;  %v793_v51 = vadd.f32 %v1264_v34, %v1224_v33 }
 0x101   : > { %v1266_v16 = vpop.f32.mrf.mxu1  ;;  %v1227_v43 = vadd.f32 %v1226_v15, %v1225_v13 }
 0x102   : > { %v1228_v17 = vpop.f32.mrf.mxu0  ;;  %v1267_v44 = vadd.f32 %v1266_v16, %v1265_v14 }
 0x103   : > { %v1268_v18 = vpop.f32.mrf.mxu1 }
 0x104   : > { %v1229_v19 = vpop.f32.mrf.mxu0  ;;  %v798_v61 = vadd.f32 %v1267_v44, %v1227_v43 }
 0x105   : > { %v1269_v20 = vpop.f32.mrf.mxu1  ;;  %v1230_v45 = vadd.f32 %v1229_v19, %v1228_v17 }
 0x106   : > { %v1231_v21 = vpop.f32.mrf.mxu0  ;;  %v1270_v46 = vadd.f32 %v1269_v20, %v1268_v18 }
 0x107   : > { %v1271_v22 = vpop.f32.mrf.mxu1 }
 0x108   : > { %v1232_v23 = vpop.f32.mrf.mxu0  ;;  %v801_v0 = vadd.f32 %v1270_v46, %v1230_v45 }
 0x109   : > { %v1272_v24 = vpop.f32.mrf.mxu1  ;;  %v1233_v35 = vadd.f32 %v1232_v23, %v1231_v21 }
 0x10a   : > { %v1234_v25 = vpop.f32.mrf.mxu0  ;;  %v1273_v36 = vadd.f32 %v1272_v24, %v1271_v22 }
 0x10b   : > { %v1274_v26 = vpop.f32.mrf.mxu1 }
 0x10c   : > { %v1235_v27 = vpop.f32.mrf.mxu0  ;;  %v806_v52 = vadd.f32 %v1273_v36, %v1233_v35 }
 0x10d   : > { %v1275_v30 = vpop.f32.mrf.mxu1  ;;  %v1236_v37 = vadd.f32 %v1235_v27, %v1234_v25 }
 0x10e   : > { %v1276_v38 = vadd.f32 %v1275_v30, %v1274_v26 }
 0x10f   : > { %v1307_v39 = vpop.f32.mrf.mxu0 }
 0x110   : > { %v1311_v42 = vpop.f32.mrf.mxu1  ;;  %v809_v54 = vadd.f32 %v1276_v38, %v1236_v37  ;;  %v855_v55 = vadd.f32 %v1307_v39, %v790_v48 }
 0x111   : > { %v846_v47 = vpop.f32.mrf.mxu0  ;;  %v871_v60 = vadd.f32 %v1311_v42, %v806_v52 }
 0x112   : > { %v862_v50 = vpop.f32.mrf.mxu1  ;;  %v847_v56 = vadd.f32 %v846_v47, %v782_v49  ;;  %v934_v12 = vmul.f32 %v855_v55, %v855_v55 }
 0x113   : > { %v1308_v53 = vpop.f32.mrf.mxu0  ;;  %v863_v4 = vadd.f32 %v862_v50, %v798_v61  ;;  %v938_v24 = vmul.f32 %v871_v60, %v871_v60 }
 0x114   : > { %v858_v57 = vadd.f32 %v1308_v53, %v793_v51  ;;  %v1312_v58 = vpop.f32.mrf.mxu1  ;;  %v932_v7 = vmul.f32 %v847_v56, %v847_v56 }
 0x115   : > { %v874_v62 = vadd.f32 %v1312_v58, %v809_v54  ;;  %v849_v63 = vpop.f32.mrf.mxu0  ;;  %v936_v18 = vmul.f32 %v863_v4, %v863_v4 }
 0x116   : > { %v1182_v1 = vpack.c.bf16 %v858_v57, %v855_v55  ;;  %v850_v2 = vadd.f32 %v849_v63, %v785_v59  ;;  %v865_v3 = vpop.f32.mrf.mxu1  ;;  %v935_v15 = vmul.f32 %v858_v57, %v858_v57 }
 0x117   : > { %v1192_v5 = vpack.c.bf16 %v874_v62, %v871_v60  ;;  %v866_v6 = vadd.f32 %v865_v3, %v801_v0  ;;  %v939_v27 = vmul.f32 %v874_v62, %v874_v62 }
 0x118   : > { %1194 = vst [vmem:[%s224_s17 + $0x8] sm:$0xff] %v1182_v1   ;;  %v1177_v8 = vpack.c.bf16 %v850_v2, %v847_v56  ;;  %v918_v9 = vadd.f32 %v850_v2, %v847_v56  ;;  %v933_v10 = vmul.f32 %v850_v2, %v850_v2 }
 0x119   : > { %1196 = vst [vmem:[%s224_s17 + $0x18] sm:$0xff] %v1192_v5   ;;  %v1187_v11 = vpack.c.bf16 %v866_v6, %v863_v4  ;;  %v937_v22 = vmul.f32 %v866_v6, %v866_v6 }
 0x11a   : > { %1178 = vst [vmem:[%s224_s17] sm:$0xff] %v1177_v8   ;;  %v919_v13 = vadd.f32 %v918_v9, %v855_v55  ;;  %v940_v14 = vadd.f32 %v933_v10, %v932_v7 }
 0x11b   : > { %1195 = vst [vmem:[%s224_s17 + $0x10] sm:$0xff] %v1187_v11  }
 0x11c   : > { %v941_v16 = vadd.f32 %v940_v14, %v934_v12  ;;  %v920_v17 = vadd.f32 %v919_v13, %v858_v57 }
 0x11e   : > { %v921_v19 = vadd.f32 %v920_v17, %v863_v4  ;;  %v942_v20 = vadd.f32 %v941_v16, %v935_v15 }
 0x120   : > { %v922_v21 = vadd.f32 %v921_v19, %v866_v6  ;;  %v943_v23 = vadd.f32 %v942_v20, %v936_v18 }
 0x122   : > { %v923_v25 = vadd.f32 %v922_v21, %v871_v60  ;;  %v944_v26 = vadd.f32 %v943_v23, %v937_v22 }
 0x124   : > { %v924_v28 = vadd.f32 %v923_v25, %v874_v62  ;;  %v945_v29 = vadd.f32 %v944_v26, %v938_v24 }
 0x126   : > { %v925_v30 = vrot.slane %v924_v28, 4  ;;  %v946_v31 = vadd.f32 %v945_v29, %v939_v27 }
 0x128   : > { %v926_v32 = vadd.f32 %v925_v30, %v924_v28  ;;  %v947_v33 = vrot.slane %v946_v31, 4 }
 0x12a   : > { %v927_v34 = vrot.slane %v926_v32, 2  ;;  %v948_v35 = vadd.f32 %v947_v33, %v946_v31 }
 0x12c   : > { %v928_v36 = vadd.f32 %v927_v34, %v926_v32  ;;  %v949_v37 = vrot.slane %v948_v35, 2 }
 0x12e   : > { %v929_v38 = vrot.slane %v928_v36, 1  ;;  %v950_v39 = vadd.f32 %v949_v37, %v948_v35 }
 0x130   : > { %v930_v40 = vadd.f32 %v929_v38, %v928_v36  ;;  %v951_v41 = vrot.slane %v950_v39, 1 }
 0x132   : > { %931 = vst [vmem:[%s1642_s11] sm:$0x1] %v930_v40  ;;  %v952_v42 = vadd.f32 %v951_v41, %v950_v39 }
 0x134   : > { %953 = vst [vmem:[%s1642_s11 + $0x1] sm:$0x1] %v952_v42 }
 0x135 PF: > { %s14_s14 = sadd.s32 1, %s1445_s14   ;;  %s1664_s12 = smov %s1441_s13 }
 0x136   : > { %p11_p6 = scmp.ge.s32.totalorder %s14_s14, 4   ;;  %s1665_s13 = smov %s1667_s15 }
 0x138   :  { %13 = sbr.rel (!%p11_p6) target bundleno = 2 (0x2), region = 73 }

// kernel: tile.52
= control target key start
LH: loop header
LB: loop body
LE: loop exit
PB: predicated region body
PF: predicated region fallthrough
CT: control target
= control target key end

     0   :  { %s22_s0 = inlined_call_operand.vmem [shape: f32[32], index: 0, kind: input, shape index: {}]   ;;  %s23_s1 = inlined_call_operand.vmem [shape: f32[4,32], index: 1, kind: output, shape index: {}]  }
   0x1   :  { %v4_v0 = vld [vmem:[%s22_s0] ss:$0 sm:$0xff] }
   0x2   :  { %5 = vst [vmem:[%s23_s1] sm:$0xf] %v4_v0 }

// kernel: tile.57
= control target key start
LH: loop header
LB: loop body
LE: loop exit
PB: predicated region body
PF: predicated region fallthrough
CT: control target
= control target key end

     0   :  { %vm8_vm0 = vcmask 261120   ;;  %s40_s8 = smov 32   ;;  %s41_s9 = smov 64   ;;  %vm14_vm1 = vcmask 1048320   ;;  %vm20_vm2 = vcmask 785920   ;;  %vm26_vm3 = vcmask 523520   ;;  %s58_s0 = inlined_call_operand.vmem [shape: f32[4,32], index: 0, kind: input, shape index: {}]   ;;  %s59_s1 = inlined_call_operand.vmem [shape: f32[1,128], index: 1, kind: output, shape index: {}]  }
   0x1   :  { %v5_v0 = vld [vmem:[%s58_s0] sm:$0xf]  ;;  %s39_s0 = smov 96  }
   0x2   :  { %6 = vst [vmem:[#allocation1] sm:$0xf] %v5_v0 }
   0x9   :  { %v11_v1 = vld [vmem:[#allocation1 + $0x3] sm:$0x1]   ;;  %v23_v2 = vld [vmem:[#allocation1 + $0x1] sm:$0x1]   ;;  %v7_v3 = vld [vmem:[#allocation1] sm:$0x1]  }
   0xa   :  { %12 = vrot.lane.b32.xlu0 %v11_v1, %s39_s0  ;;  %24 = vrot.lane.b32.xlu1 %v23_v2, %s40_s8  ;;  %v17_v4 = vld [vmem:[#allocation1 + $0x2] sm:$0x1]   ;;  %9 = vst.msk [vmem:[#allocation0] sm:$0x1] %vm8_vm0, %v7_v3  }
   0xe   :  { %18 = vrot.lane.b32.xlu0 %v17_v4, %s41_s9 }
  0x7c   :  { %v13_v5 = vpop.permute.xlu0 %12   ;;  %v25_v6 = vpop.permute.xlu1 %24  }
  0x7d   :  { %15 = vst.msk [vmem:[#allocation0] sm:$0x1] %vm14_vm1, %v13_v5  }
  0x80   :  { %v19_v7 = vpop.permute.xlu0 %18  }
  0x81   :  { %21 = vst.msk [vmem:[#allocation0] sm:$0x1] %vm20_vm2, %v19_v7  }
  0x82   :  { %27 = vst.msk [vmem:[#allocation0] sm:$0x1] %vm26_vm3, %v25_v6  }
  0x89   :  { %v32_v8 = vld [vmem:[#allocation0] sm:$0x1] }
  0x8a   :  { %35 = vst [vmem:[%s59_s1] sm:$0x1] %v32_v8 }

// kernel: dcgenerator_forward.14
= control target key start
LH: loop header
LB: loop body
LE: loop exit
PB: predicated region body
PF: predicated region fallthrough
CT: control target
= control target key end

     0   :  { %s431_s12 = smov 0   ;;  %s461_s0 = inlined_call_operand.vmem [shape: bf16[128,128], index: 0, kind: input, shape index: {}]   ;;  %s462_s1 = inlined_call_operand.vmem [shape: f32[1,128], index: 1, kind: input, shape index: {}]   ;;  %s463_s2 = inlined_call_operand.vmem [shape: f32[1,128], index: 2, kind: input, shape index: {}]   ;;  %s464_s3 = inlined_call_operand.vmem [shape: bf16[128,128], index: 3, kind: output, shape index: {}]  }
   0x1 LB: > { %s324_s13 = sadd.s32 4294967295, %s409_s12   ;;  %p328_p0 = scmp.ge.s32.totalorder %s409_s12, 1  ;;  %s409_s12 = sphi %s431_s12, %s13_s12  }
   0x2   : > { %p138_p1 = scmp.lt.s32.totalorder %s409_s12, 3 }
   0x4   : > { %p139_p2 = pnand %p328_p0, %p138_p1 }
   0x5   : > { %s329_s14 = sshll.u32 (!%p139_p2), %s324_s13, 3 }
   0x6   : > { %142 = sbr.rel (%p139_p2) target bundleno = 27 (0x1b), region = 32  ;;  %p163_p3 = scmp.lt.s32.totalorder (!%p139_p2), %s329_s14, 15 }
   0xb   : > { %s466_s14 = smov (!%p163_p3, %s329_s14), 15  ;;  %v333_v0 = vld [vmem:[%s462_s1] ss:$0 sm:$0xff] }
   0xc   : > { %s330_s15 = sshll.u32 %s466_s14, 2  ;;  %v334_v9 = vld [vmem:[%s463_s2] ss:$0 sm:$0xff] }
   0xd   : > { %s166_s18 = scalar_lea.vmem %s461_s0, %s330_s15  ;;  %s172_s25 = scalar_lea.vmem %s464_s3, %s330_s15 }
   0xe   : > { %v354_v1 = vld [vmem:[%s166_s18] sm:$0xff]   ;;  %v389_v2 = vld [vmem:[%s166_s18 + $0x8] sm:$0xff]   ;;  %v390_v3 = vld [vmem:[%s166_s18 + $0x10] sm:$0xff]  }
   0xf   : > { %v355_v4 = vunpack.c.l.bf16 %v354_v1  ;;  %v356_v5 = vunpack.c.h.bf16 %v354_v1  ;;  %v359_v6 = vunpack.c.l.bf16 %v389_v2  ;;  %v360_v7 = vunpack.c.h.bf16 %v389_v2  ;;  %v391_v8 = vld [vmem:[%s166_s18 + $0x18] sm:$0xff]  }
  0x10   : > { %v363_v10 = vunpack.c.l.bf16 %v390_v3  ;;  %v364_v11 = vunpack.c.h.bf16 %v390_v3  ;;  %v367_v12 = vunpack.c.l.bf16 %v391_v8  ;;  %v368_v13 = vunpack.c.h.bf16 %v391_v8 }
  0x11   : > { %v197_v14 = vmul.f32 %v355_v4, %v333_v0  ;;  %v198_v15 = vmul.f32 %v356_v5, %v333_v0  ;;  %v199_v16 = vmul.f32 %v359_v6, %v333_v0  ;;  %v200_v17 = vmul.f32 %v360_v7, %v333_v0 }
  0x12   : > { %v201_v18 = vmul.f32 %v363_v10, %v333_v0  ;;  %v202_v19 = vmul.f32 %v364_v11, %v333_v0  ;;  %v203_v20 = vmul.f32 %v367_v12, %v333_v0  ;;  %v204_v21 = vmul.f32 %v368_v13, %v333_v0 }
  0x13   : > { %v212_v22 = vadd.f32 %v334_v9, %v197_v14  ;;  %v213_v23 = vadd.f32 %v334_v9, %v198_v15  ;;  %v214_v24 = vadd.f32 %v334_v9, %v199_v16  ;;  %v215_v25 = vadd.f32 %v334_v9, %v200_v17 }
  0x14   : > { %v216_v26 = vadd.f32 %v334_v9, %v201_v18  ;;  %v217_v27 = vadd.f32 %v334_v9, %v202_v19  ;;  %v218_v28 = vadd.f32 %v334_v9, %v203_v20  ;;  %v219_v29 = vadd.f32 %v334_v9, %v204_v21 }
  0x15   : > { %v220_v30 = vmax.f32 %v212_v22, 0.0  ;;  %v221_v31 = vmax.f32 %v213_v23, 0.0  ;;  %v222_v32 = vmax.f32 %v214_v24, 0.0  ;;  %v223_v33 = vmax.f32 %v215_v25, 0.0 }
  0x16   : > { %v224_v34 = vmax.f32 %v216_v26, 0.0  ;;  %v225_v35 = vmax.f32 %v217_v27, 0.0  ;;  %v226_v36 = vmax.f32 %v218_v28, 0.0  ;;  %v227_v37 = vmax.f32 %v219_v29, 0.0 }
  0x17   : > { %v372_v38 = vpack.c.bf16 %v221_v31, %v220_v30  ;;  %v377_v39 = vpack.c.bf16 %v223_v33, %v222_v32 }
  0x18   : > { %v382_v40 = vpack.c.bf16 %v225_v35, %v224_v34  ;;  %v387_v41 = vpack.c.bf16 %v227_v37, %v226_v36 }
  0x19   : > { %373 = vst [vmem:[%s172_s25] sm:$0xff] %v372_v38   ;;  %392 = vst [vmem:[%s172_s25 + $0x8] sm:$0xff] %v377_v39  }
  0x1a   : > { %393 = vst [vmem:[%s172_s25 + $0x10] sm:$0xff] %v382_v40   ;;  %394 = vst [vmem:[%s172_s25 + $0x18] sm:$0xff] %v387_v41  }
  0x1b PF: > { %s13_s12 = sadd.s32 1, %s409_s12  }
  0x1c   : > { %p10_p4 = scmp.ge.s32.totalorder %s13_s12, 4  }
  0x1e   :  { %12 = sbr.rel (!%p10_p4) target bundleno = 1 (0x1), region = 62 }

// kernel: tile.62
= control target key start
LH: loop header
LB: loop body
LE: loop exit
PB: predicated region body
PF: predicated region fallthrough
CT: control target
= control target key end

     0   :  { %s22_s0 = inlined_call_operand.vmem [shape: f32[16], index: 0, kind: input, shape index: {}]   ;;  %s23_s1 = inlined_call_operand.vmem [shape: f32[4,16], index: 1, kind: output, shape index: {}]  }
   0x1   :  { %v4_v0 = vld [vmem:[%s22_s0] ss:$0 sm:$0xff] }
   0x2   :  { %5 = vst [vmem:[%s23_s1] sm:$0xf] %v4_v0 }

// kernel: tile.63
= control target key start
LH: loop header
LB: loop body
LE: loop exit
PB: predicated region body
PF: predicated region fallthrough
CT: control target
= control target key end

     0   :  { %vm8_vm0 = vcmask 130048   ;;  %s40_s8 = smov 16   ;;  %s41_s9 = smov 32   ;;  %vm14_vm1 = vcmask 523648   ;;  %vm20_vm2 = vcmask 392448   ;;  %vm26_vm3 = vcmask 261248   ;;  %s58_s0 = inlined_call_operand.vmem [shape: f32[4,16], index: 0, kind: input, shape index: {}]   ;;  %s59_s1 = inlined_call_operand.vmem [shape: f32[64], index: 1, kind: output, shape index: {}]  }
   0x1   :  { %v5_v0 = vld [vmem:[%s58_s0] sm:$0xf]  ;;  %s39_s0 = smov 48  }
   0x2   :  { %6 = vst [vmem:[#allocation1] sm:$0xf] %v5_v0 }
   0x9   :  { %v11_v1 = vld [vmem:[#allocation1 + $0x3] sm:$0x1]   ;;  %v23_v2 = vld [vmem:[#allocation1 + $0x1] sm:$0x1]   ;;  %v7_v3 = vld [vmem:[#allocation1] sm:$0x1]  }
   0xa   :  { %12 = vrot.lane.b32.xlu0 %v11_v1, %s39_s0  ;;  %24 = vrot.lane.b32.xlu1 %v23_v2, %s40_s8  ;;  %v17_v4 = vld [vmem:[#allocation1 + $0x2] sm:$0x1]   ;;  %9 = vst.msk [vmem:[#allocation0] sm:$0x1] %vm8_vm0, %v7_v3  }
   0xe   :  { %18 = vrot.lane.b32.xlu0 %v17_v4, %s41_s9 }
  0x7c   :  { %v13_v5 = vpop.permute.xlu0 %12   ;;  %v25_v6 = vpop.permute.xlu1 %24  }
  0x7d   :  { %15 = vst.msk [vmem:[#allocation0] sm:$0x1] %vm14_vm1, %v13_v5  }
  0x80   :  { %v19_v7 = vpop.permute.xlu0 %18  }
  0x81   :  { %21 = vst.msk [vmem:[#allocation0] sm:$0x1] %vm20_vm2, %v19_v7  }
  0x82   :  { %27 = vst.msk [vmem:[#allocation0] sm:$0x1] %vm26_vm3, %v25_v6  }
  0x89   :  { %v32_v8 = vld [vmem:[#allocation0] sm:$0x1] }
  0x8a   :  { %35 = vst [vmem:[%s59_s1] sm:$0x1] %v32_v8 }

// kernel: dcgenerator_forward.15
= control target key start
LH: loop header
LB: loop body
LE: loop exit
PB: predicated region body
PF: predicated region fallthrough
CT: control target
= control target key end

     0   :  { %s2071_s12 = smov 0   ;;  %s2073_s13 = smov 0   ;;  %s2306_s0 = inlined_call_operand.vmem [shape: bf16[512,384], index: 0, kind: input, shape index: {}]   ;;  %s2307_s1 = inlined_call_operand.vmem [shape: bf16[384,128], index: 1, kind: input, shape index: {}]   ;;  %s2308_s2 = inlined_call_operand.vmem [shape: bf16[512,128], index: 2, kind: output, shape index: {0}]   ;;  %s2309_s3 = inlined_call_operand.vmem [shape: f32[16,128], index: 3, kind: output, shape index: {1}]  }
   0x1   :  { %s2075_s14 = smov 0  }
   0x2 LB: > { %s23_s15 = sadd.s32 1, %s2044_s13  ;;  %p1473_p0 = scmp.ge.s32.totalorder %s2048_s14, 1  ;;  %s2048_s14 = sphi %s2075_s14, %s14_s14   ;;  %s2044_s13 = sphi %s2073_s13, %s2311_s13   ;;  %s2040_s12 = sphi %s2071_s12, %s2310_s12  }
   0x3   : > { %p24_p1 = scmp.ge.s32.totalorder %s23_s15, 2  ;;  %p167_p2 = scmp.lt.s32.totalorder %s2048_s14, 3 }
   0x5   : > { %s2313_s15 = smov (%p24_p1, %s23_s15), 0  ;;  %p168_p3 = pnand %p1473_p0, %p167_p2 }
   0x6   : > { %s1474_s18 = sshll.u32 (!%p168_p3), %s2040_s12, 5  ;;  %p226_p5 = scmp.lt.s32.totalorder (!%p168_p3), %s2040_s12, 1 }
   0x7   : > { %171 = sbr.rel (%p168_p3) target bundleno = 369 (0x171), region = 28  ;;  %p207_p4 = scmp.lt.s32.totalorder (!%p168_p3), %s1474_s18, 63 }
   0xc   : > { %v1938_v0 = vld [vmem:[%s2307_s1 + $0x78] sm:$0xff]   ;;  %v1940_v2 = vld [vmem:[%s2307_s1 + $0x70] sm:$0xff]   ;;  %v1942_v4 = vld [vmem:[%s2307_s1 + $0x68] sm:$0xff]   ;;  %s2315_s18 = smov (!%p207_p4, %s1474_s18), 63  ;;  %s2317_s12 = smov (!%p226_p5, %s2040_s12), 1 }
   0xd   : > { %v1939_v1 = vld [vmem:[%s2307_s1 + $0x38] sm:$0xff]   ;;  %1712 = vmatprep.subr.bf16.mxu0 %v1938_v0  ;;  %1896 = vmatprep.subr.bf16.mxu1 %v1938_v0  ;;  %v1941_v3 = vld [vmem:[%s2307_s1 + $0x30] sm:$0xff]   ;;  %v1943_v5 = vld [vmem:[%s2307_s1 + $0x28] sm:$0xff]   ;;  %s1912_s4 = smul.u32 12, %s2315_s18  ;;  %s1478_s26 = sshll.u32 %s2317_s12, 3 }
   0xe   : > { %1713 = vmatpush3.bf16.msra.mxu0 %v1939_v1  ;;  %1904 = vmatpush3.bf16.msra.mxu1 %v1939_v1  ;;  %v1944_v6 = vld [vmem:[%s2307_s1 + $0x60] sm:$0xff]   ;;  %v1946_v8 = vld [vmem:[%s2307_s1 + $0x58] sm:$0xff]   ;;  %v1948_v10 = vld [vmem:[%s2307_s1 + $0x50] sm:$0xff]   ;;  %s2225_s29 = scalar_lea.vmem %s2309_s3, %s1478_s26  ;;  %s1477_s12 = sshll.u32 %s2315_s18, 2 }
   0xf   : > { %1714 = vmatprep.subr.bf16.mxu0 %v1940_v2  ;;  %1897 = vmatprep.subr.bf16.mxu1 %v1940_v2  ;;  %v1945_v7 = vld [vmem:[%s2307_s1 + $0x20] sm:$0xff]   ;;  %s2125_s11 = scalar_lea.vmem %s2306_s0, %s1912_s4  ;;  %v1947_v9 = vld [vmem:[%s2307_s1 + $0x18] sm:$0xff]   ;;  %v1949_v13 = vld [vmem:[%s2307_s1 + $0x10] sm:$0xff]   ;;  %s2250_s4 = scalar_lea.vmem %s2308_s2, %s1477_s12 }
  0x10   : > { %v1956_v11 = vld [vmem:[%s2125_s11 + $0x4] ss:$12 sps:$4 sm:$0xff]   ;;  %v1950_v14 = vld [vmem:[%s2307_s1 + $0x48] sm:$0xff]   ;;  %v1960_v18 = vld [vmem:[%s2307_s1 + $0xb8] sm:$0xff]  }
  0x11   : > { %v1959_v12 = vld [vmem:[%s2125_s11 + $0x124] ss:$12 sps:$4 sm:$0xff]   ;;  %778 = vmatprep.mubr.bf16.mxu0 %v1956_v11  ;;  %v1951_v15 = vld [vmem:[%s2307_s1 + $0x8] sm:$0xff]   ;;  %v1970_v28 = vld [vmem:[%s2125_s11 + $0x34] ss:$12 sps:$4 sm:$0xff]  }
  0x12   : > { %1715 = vmatpush3.bf16.msra.mxu0 %v1941_v3  ;;  %1905 = vmatpush3.bf16.msra.mxu1 %v1941_v3  ;;  %v1952_v16 = vld [vmem:[%s2307_s1 + $0x40] sm:$0xff]   ;;  %v1962_v21 = vld [vmem:[%s2125_s11 + $0x1c] ss:$12 sps:$4 sm:$0xff]   ;;  %v1961_v22 = vld [vmem:[%s2307_s1 + $0xb0] sm:$0xff]  }
  0x13   : > { %1716 = vmatprep.subr.bf16.mxu0 %v1942_v4  ;;  %1898 = vmatprep.subr.bf16.mxu1 %v1942_v4  ;;  %v1953_v17 = vld [vmem:[%s2307_s1] sm:$0xff]   ;;  %v1964_v23 = vld [vmem:[%s2125_s11 + $0x13c] ss:$12 sps:$4 sm:$0xff]   ;;  %v1977_v33 = vld [vmem:[%s2307_s1 + $0x90] sm:$0xff]  }
  0x14   : > { %874 = vmatprep.mubr.bf16.mxu1 %v1959_v12  ;;  %v1954_v19 = vld [vmem:[%s2125_s11] ss:$12 sps:$4 sm:$0xff]   ;;  %v1966_v24 = vld [vmem:[%s2125_s11 + $0x18] ss:$12 sps:$4 sm:$0xff]   ;;  %v1974_v31 = vld [vmem:[%s2125_s11 + $0x30] ss:$12 sps:$4 sm:$0xff]  }
  0x15   : > { %v1957_v20 = vld [vmem:[%s2125_s11 + $0x120] ss:$12 sps:$4 sm:$0xff]   ;;  %v1967_v26 = vld [vmem:[%s2125_s11 + $0x138] ss:$12 sps:$4 sm:$0xff]   ;;  %v1975_v32 = vld [vmem:[%s2125_s11 + $0x150] ss:$12 sps:$4 sm:$0xff]  }
  0x16   : > { %1717 = vmatpush3.bf16.msra.mxu0 %v1943_v5  ;;  %1906 = vmatpush3.bf16.msra.mxu1 %v1943_v5  ;;  %v1968_v25 = vld [vmem:[%s2307_s1 + $0xa8] sm:$0xff]   ;;  %v1969_v27 = vld [vmem:[%s2307_s1 + $0xa0] sm:$0xff]   ;;  %v1976_v30 = vld [vmem:[%s2307_s1 + $0x98] sm:$0xff]  }
  0x17   : > { %1718 = vmatprep.subr.bf16.mxu0 %v1944_v6  ;;  %1899 = vmatprep.subr.bf16.mxu1 %v1944_v6  ;;  %v1972_v29 = vld [vmem:[%s2125_s11 + $0x154] ss:$12 sps:$4 sm:$0xff]   ;;  %v1978_v34 = vld [vmem:[%s2125_s11 + $0x4c] ss:$12 sps:$4 sm:$0xff]   ;;  %v1986_v39 = vld [vmem:[%s2125_s11 + $0x64] ss:$12 sps:$4 sm:$0xff]  }
  0x18   : > { %v1980_v35 = vld [vmem:[%s2125_s11 + $0x16c] ss:$12 sps:$4 sm:$0xff]   ;;  %v1982_v37 = vld [vmem:[%s2125_s11 + $0x48] ss:$12 sps:$4 sm:$0xff]   ;;  %v1985_v40 = vld [vmem:[%s2307_s1 + $0x80] sm:$0xff]  }
  0x19   : > { %v1984_v36 = vld [vmem:[%s2307_s1 + $0x88] sm:$0xff]   ;;  %v1993_v45 = vld [vmem:[%s2125_s11 + $0x38] ss:$12 sps:$4 sm:$0xff]   ;;  %v1995_v47 = vld [vmem:[%s2125_s11 + $0x50] ss:$12 sps:$4 sm:$0xff]  }
  0x1a   : > { %1719 = vmatpush3.bf16.msra.mxu0 %v1945_v7  ;;  %1907 = vmatpush3.bf16.msra.mxu1 %v1945_v7  ;;  %v1983_v38 = vld [vmem:[%s2125_s11 + $0x168] ss:$12 sps:$4 sm:$0xff]   ;;  %v1989_v42 = vld [vmem:[%s2125_s11 + $0x60] ss:$12 sps:$4 sm:$0xff]   ;;  %v1994_v46 = vld [vmem:[%s2125_s11 + $0x78] ss:$12 sps:$4 sm:$0xff]  }
  0x1b   : > { %1720 = vmatprep.subr.bf16.mxu0 %v1946_v8  ;;  %1900 = vmatprep.subr.bf16.mxu1 %v1946_v8  ;;  %v1988_v41 = vld [vmem:[%s2125_s11 + $0x8] ss:$12 sps:$4 sm:$0xff]   ;;  %v1990_v43 = vld [vmem:[%s2125_s11 + $0x20] ss:$12 sps:$4 sm:$0xff]   ;;  %v1999_v50 = vld [vmem:[%s2125_s11 + $0x90] ss:$12 sps:$4 sm:$0xff]  }
  0x1c   : > { %v1991_v44 = vld [vmem:[%s2125_s11 + $0x7c] ss:$12 sps:$4 sm:$0xff]   ;;  %v1996_v48 = vld [vmem:[%s2125_s11 + $0x94] ss:$12 sps:$4 sm:$0xff]   ;;  %v2001_v52 = vld [vmem:[%s2125_s11 + $0xac] ss:$12 sps:$4 sm:$0xff]  }
  0x1d   : > { %v1998_v49 = vld [vmem:[%s2125_s11 + $0x68] ss:$12 sps:$4 sm:$0xff]   ;;  %v2000_v51 = vld [vmem:[%s2125_s11 + $0x80] ss:$12 sps:$4 sm:$0xff]   ;;  %v2003_v53 = vld [vmem:[%s2125_s11 + $0x98] ss:$12 sps:$4 sm:$0xff]  }
  0x1e   : > { %1721 = vmatpush3.bf16.msra.mxu0 %v1947_v9  ;;  %1908 = vmatpush3.bf16.msra.mxu1 %v1947_v9  ;;  %v2004_v54 = vld [vmem:[%s2125_s11 + $0xa8] ss:$12 sps:$4 sm:$0xff]   ;;  %v2005_v55 = vld [vmem:[%s2125_s11 + $0xb0] ss:$12 sps:$4 sm:$0xff]   ;;  %v2009_v58 = vld [vmem:[%s2125_s11 + $0xc0] ss:$12 sps:$4 sm:$0xff]  }
  0x1f   : > { %1722 = vmatprep.subr.bf16.mxu0 %v1948_v10  ;;  %1901 = vmatprep.subr.bf16.mxu1 %v1948_v10  ;;  %v2006_v56 = vld [vmem:[%s2125_s11 + $0xc4] ss:$12 sps:$4 sm:$0xff]   ;;  %v2008_v57 = vld [vmem:[%s2125_s11 + $0xc8] ss:$12 sps:$4 sm:$0xff]   ;;  %v2010_v59 = vld [vmem:[%s2125_s11 + $0xe0] ss:$12 sps:$4 sm:$0xff]  }
  0x20   : > { %v2011_v60 = vld [vmem:[%s2125_s11 + $0xdc] ss:$12 sps:$4 sm:$0xff]   ;;  %v2013_v61 = vld [vmem:[%s2125_s11 + $0xf8] ss:$12 sps:$4 sm:$0xff]   ;;  %v2016_v0 = vld [vmem:[%s2125_s11 + $0xf4] ss:$12 sps:$4 sm:$0xff]  }
  0x21   : > { %v2014_v62 = vld [vmem:[%s2125_s11 + $0xd8] ss:$12 sps:$4 sm:$0xff]   ;;  %v2015_v63 = vld [vmem:[%s2125_s11 + $0x110] ss:$12 sps:$4 sm:$0xff]   ;;  %v2018_v1 = vld [vmem:[%s2125_s11 + $0x128] ss:$12 sps:$4 sm:$0xff]  }
  0x22   : > { %1723 = vmatpush3.bf16.msra.mxu0 %v1949_v13  ;;  %1909 = vmatpush3.bf16.msra.mxu1 %v1949_v13  ;;  %v2019_v2 = vld [vmem:[%s2125_s11 + $0xf0] ss:$12 sps:$4 sm:$0xff]   ;;  %v2020_v3 = vld [vmem:[%s2125_s11 + $0x140] ss:$12 sps:$4 sm:$0xff]   ;;  %v2023_v5 = vld [vmem:[%s2125_s11 + $0x158] ss:$12 sps:$4 sm:$0xff]  }
  0x23   : > { %1724 = vmatprep.subr.bf16.mxu0 %v1950_v14  ;;  %1902 = vmatprep.subr.bf16.mxu1 %v1950_v14  ;;  %v2021_v4 = vld [vmem:[%s2125_s11 + $0x10c] ss:$12 sps:$4 sm:$0xff]   ;;  %v2024_v6 = vld [vmem:[%s2125_s11 + $0x108] ss:$12 sps:$4 sm:$0xff]   ;;  %v2025_v7 = vld [vmem:[%s2125_s11 + $0x170] ss:$12 sps:$4 sm:$0xff]  }
  0x24   : > { %v2050_v8 = vmov 0.0  }
  0x25   : > { %1228 = vst [vmem:[%s2225_s29] sm:$0xff] %v2050_v8 }
  0x26   : > { %1725 = vmatpush3.bf16.msra.mxu0 %v1951_v15  ;;  %1910 = vmatpush3.bf16.msra.mxu1 %v1951_v15 }
  0x27   : > { %1726 = vmatprep.subr.bf16.mxu0 %v1952_v16  ;;  %1903 = vmatprep.subr.bf16.mxu1 %v1952_v16 }
  0x2a   : > { %1727 = vmatpush3.bf16.msra.mxu0 %v1953_v17  ;;  %1911 = vmatpush3.bf16.msra.mxu1 %v1953_v17 }
  0x2b   : > { %1848 = vmatprep.subr.bf16.mxu1 %v1960_v18 }
  0x2d   : > { %779 = vmatmul.mubr.bf16.vlgmr.msra.gmra.mxu0 %v1954_v19  ;;  %875 = vmatmul.mubr.bf16.vlgmr.msra.gmra.mxu1 %v1957_v20 }
  0x2e   : > { %1849 = vmatpush3.bf16.msra.mxu1 %v1960_v18  ;;  %786 = vmatprep.mubr.bf16.mxu0 %v1962_v21 }
  0x2f   : > { %1850 = vmatprep.subr.bf16.mxu1 %v1961_v22  ;;  %882 = vmatprep.mubr.bf16.mxu1 %v1964_v23 }
  0x32   : > { %1851 = vmatpush3.bf16.msra.mxu1 %v1961_v22 }
  0x33   : > { %1852 = vmatprep.subr.bf16.mxu1 %v1968_v25 }
  0x35   : > { %787 = vmatmul.mubr.bf16.gmra.mxu0 %v1966_v24  ;;  %883 = vmatmul.mubr.bf16.gmra.mxu1 %v1967_v26 }
  0x36   : > { %1853 = vmatpush3.bf16.msra.mxu1 %v1968_v25  ;;  %794 = vmatprep.mubr.bf16.mxu0 %v1970_v28 }
  0x37   : > { %1854 = vmatprep.subr.bf16.mxu1 %v1969_v27  ;;  %890 = vmatprep.mubr.bf16.mxu1 %v1972_v29 }
  0x3a   : > { %1855 = vmatpush3.bf16.msra.mxu1 %v1969_v27 }
  0x3b   : > { %1856 = vmatprep.subr.bf16.mxu1 %v1976_v30 }
  0x3d   : > { %795 = vmatmul.mubr.bf16.gmra.mxu0 %v1974_v31  ;;  %891 = vmatmul.mubr.bf16.gmra.mxu1 %v1975_v32 }
  0x3e   : > { %1857 = vmatpush3.bf16.msra.mxu1 %v1976_v30  ;;  %802 = vmatprep.mubr.bf16.mxu0 %v1978_v34 }
  0x3f   : > { %1858 = vmatprep.subr.bf16.mxu1 %v1977_v33  ;;  %898 = vmatprep.mubr.bf16.mxu1 %v1980_v35 }
  0x42   : > { %1859 = vmatpush3.bf16.msra.mxu1 %v1977_v33 }
  0x43   : > { %1860 = vmatprep.subr.bf16.mxu1 %v1984_v36 }
  0x45   : > { %803 = vmatmul.mubr.bf16.gmra.mxu0 %v1982_v37  ;;  %899 = vmatmul.mubr.bf16.gmra.mxu1 %v1983_v38 }
  0x46   : > { %1861 = vmatpush3.bf16.msra.mxu1 %v1984_v36  ;;  %810 = vmatprep.mubr.bf16.mxu0 %v1986_v39 }
  0x47   : > { %1862 = vmatprep.subr.bf16.mxu1 %v1985_v40  ;;  %1864 = vmatprep.mubr.bf16.mxu1 %v1988_v41 }
  0x4a   : > { %1863 = vmatpush3.bf16.msra.mxu1 %v1985_v40 }
  0x4d   : > { %811 = vmatmul.mubr.bf16.gmra.mxu0 %v1989_v42  ;;  %1865 = vmatmul.mubr.bf16.vlgmr.msra.gmra.mxu1 %v1990_v43 }
  0x4e   : > { %818 = vmatprep.mubr.bf16.mxu0 %v1991_v44  ;;  %1868 = vmatprep.mubr.bf16.mxu1 %v1993_v45 }
  0x55   : > { %819 = vmatmul.mubr.bf16.gmra.mxu0 %v1994_v46  ;;  %1869 = vmatmul.mubr.bf16.gmra.mxu1 %v1995_v47 }
  0x56   : > { %826 = vmatprep.mubr.bf16.mxu0 %v1996_v48  ;;  %1872 = vmatprep.mubr.bf16.mxu1 %v1998_v49 }
  0x5d   : > { %827 = vmatmul.mubr.bf16.gmra.mxu0 %v1999_v50  ;;  %1873 = vmatmul.mubr.bf16.gmra.mxu1 %v2000_v51 }
  0x5e   : > { %834 = vmatprep.mubr.bf16.mxu0 %v2001_v52  ;;  %1876 = vmatprep.mubr.bf16.mxu1 %v2003_v53 }
  0x65   : > { %835 = vmatmul.mubr.bf16.gmra.mxu0 %v2004_v54  ;;  %1877 = vmatmul.mubr.bf16.gmra.mxu1 %v2005_v55 }
  0x66   : > { %842 = vmatprep.mubr.bf16.mxu0 %v2006_v56  ;;  %1880 = vmatprep.mubr.bf16.mxu1 %v2008_v57 }
  0x6d   : > { %843 = vmatmul.mubr.bf16.gmra.mxu0 %v2009_v58  ;;  %1881 = vmatmul.mubr.bf16.gmra.mxu1 %v2010_v59 }
  0x6e   : > { %850 = vmatprep.mubr.bf16.mxu0 %v2011_v60  ;;  %1884 = vmatprep.mubr.bf16.mxu1 %v2013_v61 }
  0x75   : > { %851 = vmatmul.mubr.bf16.gmra.mxu0 %v2014_v62  ;;  %1885 = vmatmul.mubr.bf16.gmra.mxu1 %v2015_v63 }
  0x76   : > { %858 = vmatprep.mubr.bf16.mxu0 %v2016_v0  ;;  %1888 = vmatprep.mubr.bf16.mxu1 %v2018_v1 }
  0x7d   : > { %859 = vmatmul.mubr.bf16.gmra.mxu0 %v2019_v2  ;;  %1889 = vmatmul.mubr.bf16.gmra.mxu1 %v2020_v3 }
  0x7e   : > { %866 = vmatprep.mubr.bf16.mxu0 %v2021_v4  ;;  %1892 = vmatprep.mubr.bf16.mxu1 %v2023_v5 }
  0x85   : > { %867 = vmatmul.mubr.bf16.gmra.mxu0 %v2024_v6  ;;  %1893 = vmatmul.mubr.bf16.gmra.mxu1 %v2025_v7 }
  0xed   : > { %v1728_v9 = vpop.f32.mrf.mxu0  ;;  %v1800_v10 = vpop.f32.mrf.mxu1 }
  0xef   : > { %v1729_v11 = vpop.f32.mrf.mxu0  ;;  %v1801_v12 = vpop.f32.mrf.mxu1 }
  0xf0   : > { %v2228_v13 = vadd.f32 %v1801_v12, %v1800_v10  ;;  %v1730_v52 = vadd.f32 %v1729_v11, %v1728_v9 }
  0xf1   : > { %v1731_v14 = vpop.f32.mrf.mxu0  ;;  %v1803_v15 = vpop.f32.mrf.mxu1 }
  0xf3   : > { %v1732_v16 = vpop.f32.mrf.mxu0  ;;  %v1804_v17 = vpop.f32.mrf.mxu1 }
  0xf4   : > { %v2230_v18 = vadd.f32 %v1804_v17, %v1803_v15  ;;  %v1733_v57 = vadd.f32 %v1732_v16, %v1731_v14 }
  0xf5   : > { %v1734_v19 = vpop.f32.mrf.mxu0  ;;  %v1806_v20 = vpop.f32.mrf.mxu1 }
  0xf7   : > { %v1735_v21 = vpop.f32.mrf.mxu0  ;;  %v1807_v22 = vpop.f32.mrf.mxu1 }
  0xf8   : > { %v2232_v23 = vadd.f32 %v1807_v22, %v1806_v20  ;;  %v1736_v53 = vadd.f32 %v1735_v21, %v1734_v19 }
  0xf9   : > { %v1737_v24 = vpop.f32.mrf.mxu0  ;;  %v1809_v25 = vpop.f32.mrf.mxu1 }
  0xfb   : > { %v1738_v26 = vpop.f32.mrf.mxu0  ;;  %v1810_v27 = vpop.f32.mrf.mxu1 }
  0xfc   : > { %v2234_v28 = vadd.f32 %v1810_v27, %v1809_v25  ;;  %v1739_v54 = vadd.f32 %v1738_v26, %v1737_v24 }
  0xfd   : > { %v1740_v29 = vpop.f32.mrf.mxu0  ;;  %v1812_v30 = vpop.f32.mrf.mxu1 }
  0xff   : > { %v1741_v31 = vpop.f32.mrf.mxu0  ;;  %v1813_v32 = vpop.f32.mrf.mxu1 }
 0x100   : > { %v2236_v33 = vadd.f32 %v1813_v32, %v1812_v30  ;;  %v1742_v7 = vadd.f32 %v1741_v31, %v1740_v29 }
 0x101   : > { %v1743_v34 = vpop.f32.mrf.mxu0  ;;  %v1815_v35 = vpop.f32.mrf.mxu1 }
 0x103   : > { %v1744_v36 = vpop.f32.mrf.mxu0  ;;  %v1816_v37 = vpop.f32.mrf.mxu1 }
 0x104   : > { %v2238_v38 = vadd.f32 %v1816_v37, %v1815_v35  ;;  %v1745_v26 = vadd.f32 %v1744_v36, %v1743_v34 }
 0x105   : > { %v1746_v39 = vpop.f32.mrf.mxu0  ;;  %v1818_v40 = vpop.f32.mrf.mxu1 }
 0x107   : > { %v1747_v41 = vpop.f32.mrf.mxu0  ;;  %v1819_v42 = vpop.f32.mrf.mxu1 }
 0x108   : > { %v2240_v43 = vadd.f32 %v1819_v42, %v1818_v40  ;;  %v1748_v8 = vadd.f32 %v1747_v41, %v1746_v39 }
 0x109   : > { %v1749_v44 = vpop.f32.mrf.mxu0  ;;  %v2242_v45 = vpop.f32.mrf.mxu1 }
 0x10b   : > { %v1750_v46 = vpop.f32.mrf.mxu0  ;;  %v2244_v47 = vpop.f32.mrf.mxu1 }
 0x10c   : > { %v1751_v11 = vadd.f32 %v1750_v46, %v1749_v44 }
 0x10d   : > { %v1752_v48 = vpop.f32.mrf.mxu0  ;;  %v1866_v49 = vpop.f32.mrf.mxu1 }
 0x10e   : > { %v950_v58 = vadd.f32 %v1866_v49, %v1736_v53 }
 0x10f   : > { %v1753_v50 = vpop.f32.mrf.mxu0  ;;  %v941_v51 = vpop.f32.mrf.mxu1 }
 0x110   : > { %v942_v59 = vadd.f32 %v1730_v52, %v941_v51  ;;  %v1269_v12 = vmul.f32 %v950_v58, %v950_v58  ;;  %v1754_v42 = vadd.f32 %v1753_v50, %v1752_v48 }
 0x111   : > { %v1755_v55 = vpop.f32.mrf.mxu0  ;;  %v1867_v56 = vpop.f32.mrf.mxu1 }
 0x112   : > { %v953_v60 = vadd.f32 %v1867_v56, %v1739_v54  ;;  %v1267_v3 = vmul.f32 %v942_v59, %v942_v59 }
 0x113   : > { %v1756_v61 = vpop.f32.mrf.mxu0  ;;  %v944_v62 = vpop.f32.mrf.mxu1 }
 0x114   : > { %v1625_v63 = vpack.c.bf16 %v953_v60, %v950_v58  ;;  %v945_v0 = vadd.f32 %v1733_v57, %v944_v62  ;;  %v1270_v16 = vmul.f32 %v953_v60, %v953_v60 }
 0x115   : > { %v1758_v1 = vpop.f32.mrf.mxu0  ;;  %v1870_v2 = vpop.f32.mrf.mxu1 }
 0x116   : > { %1697 = vst [vmem:[%s2250_s4 + $0x8] sm:$0xff] %v1625_v63   ;;  %v1620_v4 = vpack.c.bf16 %v945_v0, %v942_v59  ;;  %v1229_v5 = vadd.f32 %v945_v0, %v942_v59  ;;  %v1268_v6 = vmul.f32 %v945_v0, %v945_v0  ;;  %v966_v22 = vadd.f32 %v1870_v2, %v1748_v8 }
 0x117   : > { %v1759_v9 = vpop.f32.mrf.mxu0  ;;  %v957_v10 = vpop.f32.mrf.mxu1 }
 0x118   : > { %1621 = vst [vmem:[%s2250_s4] sm:$0xff] %v1620_v4   ;;  %v1230_v14 = vadd.f32 %v1229_v5, %v950_v58  ;;  %v1299_v15 = vadd.f32 %v1268_v6, %v1267_v3  ;;  %v958_v17 = vadd.f32 %v1742_v7, %v957_v10  ;;  %v1760_v53 = vadd.f32 %v1759_v9, %v1758_v1 }
 0x119   : > { %v1761_v19 = vpop.f32.mrf.mxu0  ;;  %v1871_v20 = vpop.f32.mrf.mxu1  ;;  %v1273_v36 = vmul.f32 %v966_v22, %v966_v22 }
 0x11a   : > { %v1300_v21 = vadd.f32 %v1299_v15, %v1269_v12  ;;  %v1231_v24 = vadd.f32 %v1230_v14, %v953_v60  ;;  %v969_v25 = vadd.f32 %v1871_v20, %v1751_v11  ;;  %v1271_v31 = vmul.f32 %v958_v17, %v958_v17 }
 0x11b   : > { %v1762_v27 = vpop.f32.mrf.mxu0  ;;  %v960_v29 = vpop.f32.mrf.mxu1  ;;  %v1757_v60 = vadd.f32 %v1756_v61, %v1755_v55 }
 0x11c   : > { %v1232_v30 = vadd.f32 %v1231_v24, %v958_v17  ;;  %v1301_v32 = vadd.f32 %v1300_v21, %v1270_v16  ;;  %v1635_v35 = vpack.c.bf16 %v969_v25, %v966_v22  ;;  %v961_v37 = vadd.f32 %v1745_v26, %v960_v29 }
 0x11d   : > { %v1764_v39 = vpop.f32.mrf.mxu0  ;;  %v1874_v40 = vpop.f32.mrf.mxu1  ;;  %v1763_v34 = vadd.f32 %v1762_v27, %v1761_v19  ;;  %v1274_v0 = vmul.f32 %v969_v25, %v969_v25 }
 0x11e   : > { %v1302_v41 = vadd.f32 %v1301_v32, %v1271_v31  ;;  %1699 = vst [vmem:[%s2250_s4 + $0x18] sm:$0xff] %v1635_v35   ;;  %v1630_v44 = vpack.c.bf16 %v961_v37, %v958_v17  ;;  %v1233_v46 = vadd.f32 %v1232_v30, %v961_v37  ;;  %v1272_v49 = vmul.f32 %v961_v37, %v961_v37 }
 0x11f   : > { %v1765_v51 = vpop.f32.mrf.mxu0  ;;  %v973_v52 = vpop.f32.mrf.mxu1  ;;  %v982_v62 = vadd.f32 %v1874_v40, %v1760_v53 }
 0x120   : > { %1698 = vst [vmem:[%s2250_s4 + $0x10] sm:$0xff] %v1630_v44   ;;  %v1234_v54 = vadd.f32 %v1233_v46, %v966_v22  ;;  %v1303_v56 = vadd.f32 %v1302_v41, %v1272_v49  ;;  %v974_v57 = vadd.f32 %v1754_v42, %v973_v52  ;;  %v1766_v21 = vadd.f32 %v1765_v51, %v1764_v39 }
 0x121   : > { %v1767_v58 = vpop.f32.mrf.mxu0  ;;  %v1875_v59 = vpop.f32.mrf.mxu1  ;;  %v1277_v15 = vmul.f32 %v982_v62, %v982_v62 }
 0x122   : > { %v985_v63 = vadd.f32 %v1875_v59, %v1763_v34  ;;  %v1304_v48 = vadd.f32 %v1303_v56, %v1273_v36  ;;  %v1235_v50 = vadd.f32 %v1234_v54, %v969_v25  ;;  %v1275_v6 = vmul.f32 %v974_v57, %v974_v57 }
 0x123   : > { %v1768_v2 = vpop.f32.mrf.mxu0  ;;  %v976_v3 = vpop.f32.mrf.mxu1 }
 0x124   : > { %v1645_v4 = vpack.c.bf16 %v985_v63, %v982_v62  ;;  %v977_v1 = vadd.f32 %v1757_v60, %v976_v3  ;;  %v1236_v5 = vadd.f32 %v1235_v50, %v974_v57  ;;  %v1305_v7 = vadd.f32 %v1304_v48, %v1274_v0 }
 0x125   : > { %v1770_v8 = vpop.f32.mrf.mxu0  ;;  %v1878_v9 = vpop.f32.mrf.mxu1  ;;  %v1769_v22 = vadd.f32 %v1768_v2, %v1767_v58  ;;  %v1278_v32 = vmul.f32 %v985_v63, %v985_v63 }
 0x126   : > { %1701 = vst [vmem:[%s2250_s4 + $0x28] sm:$0xff] %v1645_v4   ;;  %v1640_v10 = vpack.c.bf16 %v977_v1, %v974_v57  ;;  %v1276_v11 = vmul.f32 %v977_v1, %v977_v1  ;;  %v1306_v12 = vadd.f32 %v1305_v7, %v1275_v6  ;;  %v1237_v55 = vadd.f32 %v1236_v5, %v977_v1 }
 0x127   : > { %v1771_v61 = vpop.f32.mrf.mxu0  ;;  %v989_v14 = vpop.f32.mrf.mxu1 }
 0x128   : > { %1700 = vst [vmem:[%s2250_s4 + $0x20] sm:$0xff] %v1640_v10   ;;  %v1238_v16 = vadd.f32 %v1237_v55, %v982_v62  ;;  %v1307_v17 = vadd.f32 %v1306_v12, %v1276_v11  ;;  %v1772_v24 = vadd.f32 %v1771_v61, %v1770_v8  ;;  %v990_v29 = vadd.f32 %v1766_v21, %v989_v14 }
 0x129   : > { %v1773_v19 = vpop.f32.mrf.mxu0  ;;  %v1879_v20 = vpop.f32.mrf.mxu1 }
 0x12a   : > { %v1308_v25 = vadd.f32 %v1307_v17, %v1277_v15  ;;  %v1239_v35 = vadd.f32 %v1238_v16, %v985_v63  ;;  %v998_v41 = vadd.f32 %v1878_v9, %v1772_v24  ;;  %v1279_v53 = vmul.f32 %v990_v29, %v990_v29 }
 0x12b   : > { %v1774_v26 = vpop.f32.mrf.mxu0  ;;  %v992_v27 = vpop.f32.mrf.mxu1 }
 0x12c   : > { %v1775_v30 = vadd.f32 %v1774_v26, %v1773_v19  ;;  %v993_v31 = vadd.f32 %v1769_v22, %v992_v27  ;;  %v1309_v46 = vadd.f32 %v1308_v25, %v1278_v32  ;;  %v1240_v52 = vadd.f32 %v1239_v35, %v990_v29 }
 0x12d   : > { %v1776_v37 = vpop.f32.mrf.mxu0  ;;  %v1882_v40 = vpop.f32.mrf.mxu1  ;;  %v1281_v5 = vmul.f32 %v998_v41, %v998_v41 }
 0x12e   : > { %v1001_v42 = vadd.f32 %v1879_v20, %v1775_v30  ;;  %v1650_v44 = vpack.c.bf16 %v993_v31, %v990_v29  ;;  %v1310_v56 = vadd.f32 %v1309_v46, %v1279_v53  ;;  %v1280_v57 = vmul.f32 %v993_v31, %v993_v31 }
 0x12f   : > { %v1777_v49 = vpop.f32.mrf.mxu0  ;;  %v1005_v39 = vpop.f32.mrf.mxu1  ;;  %v1241_v62 = vadd.f32 %v1240_v52, %v993_v31 }
 0x130   : > { %v1655_v51 = vpack.c.bf16 %v1001_v42, %v998_v41  ;;  %1702 = vst [vmem:[%s2250_s4 + $0x30] sm:$0xff] %v1650_v44   ;;  %v1778_v54 = vadd.f32 %v1777_v49, %v1776_v37  ;;  %v1311_v2 = vadd.f32 %v1310_v56, %v1280_v57  ;;  %v1282_v61 = vmul.f32 %v1001_v42, %v1001_v42 }
 0x131   : > { %v1779_v34 = vpop.f32.mrf.mxu0  ;;  %v1883_v36 = vpop.f32.mrf.mxu1  ;;  %v1242_v6 = vadd.f32 %v1241_v62, %v998_v41  ;;  %v1823_v62 = vadd.f32 %v2244_v47, %v2242_v45 }
 0x132   : > { %1703 = vst [vmem:[%s2250_s4 + $0x38] sm:$0xff] %v1655_v51   ;;  %v1006_v48 = vadd.f32 %v1778_v54, %v1005_v39  ;;  %v1312_v10 = vadd.f32 %v1311_v2, %v1281_v5 }
 0x133   : > { %v1780_v58 = vpop.f32.mrf.mxu0  ;;  %v1008_v59 = vpop.f32.mrf.mxu1  ;;  %v1243_v14 = vadd.f32 %v1242_v6, %v1001_v42 }
 0x134   : > { %v1781_v60 = vadd.f32 %v1780_v58, %v1779_v34  ;;  %v1283_v20 = vmul.f32 %v1006_v48, %v1006_v48  ;;  %v1313_v21 = vadd.f32 %v1312_v10, %v1282_v61 }
 0x135   : > { %v1782_v63 = vpop.f32.mrf.mxu0  ;;  %v2260_v0 = vpop.f32.mrf.mxu1  ;;  %v1244_v26 = vadd.f32 %v1243_v14, %v1006_v48 }
 0x136   : > { %v1009_v50 = vadd.f32 %v1781_v60, %v1008_v59  ;;  %v1314_v37 = vadd.f32 %v1313_v21, %v1283_v20 }
 0x137   : > { %v1783_v3 = vpop.f32.mrf.mxu0  ;;  %v1021_v4 = vpop.f32.mrf.mxu1 }
 0x138   : > { %v1660_v1 = vpack.c.bf16 %v1009_v50, %v1006_v48  ;;  %v1784_v9 = vadd.f32 %v1783_v3, %v1782_v63  ;;  %v1284_v27 = vmul.f32 %v1009_v50, %v1009_v50 }
 0x139   : > { %v1785_v7 = vpop.f32.mrf.mxu0  ;;  %v2262_v8 = vpop.f32.mrf.mxu1 }
 0x13a   : > { %1704 = vst [vmem:[%s2250_s4 + $0x40] sm:$0xff] %v1660_v1   ;;  %v1014_v17 = vadd.f32 %v1882_v40, %v1784_v9  ;;  %v1245_v40 = vadd.f32 %v1244_v26, %v1009_v50 }
 0x13b   : > { %v1786_v11 = vpop.f32.mrf.mxu0  ;;  %v1024_v12 = vpop.f32.mrf.mxu1 }
 0x13c   : > { %v1787_v55 = vadd.f32 %v1786_v11, %v1785_v7  ;;  %v1285_v41 = vmul.f32 %v1014_v17, %v1014_v17  ;;  %v1246_v53 = vadd.f32 %v1245_v40, %v1014_v17 }
 0x13d   : > { %v1788_v15 = vpop.f32.mrf.mxu0  ;;  %v1890_v16 = vpop.f32.mrf.mxu1 }
 0x13e   : > { %v1017_v19 = vadd.f32 %v1883_v36, %v1787_v55  ;;  %v2267_v32 = vadd.f32 %v1890_v16, %v2232_v23  ;;  %v1315_v23 = vadd.f32 %v1314_v37, %v1284_v27 }
 0x13f   : > { %v1789_v22 = vpop.f32.mrf.mxu0  ;;  %v1037_v24 = vpop.f32.mrf.mxu1 }
 0x140   : > { %v1665_v25 = vpack.c.bf16 %v1017_v19, %v1014_v17  ;;  %v1790_v29 = vadd.f32 %v1789_v22, %v1788_v15  ;;  %v1038_v49 = vadd.f32 %v2228_v13, %v1037_v24  ;;  %v1316_v57 = vadd.f32 %v1315_v23, %v1285_v41 }
 0x141   : > { %v1791_v30 = vpop.f32.mrf.mxu0  ;;  %v1891_v31 = vpop.f32.mrf.mxu1  ;;  %v1247_v58 = vadd.f32 %v1246_v53, %v1017_v19 }
 0x142   : > { %1705 = vst [vmem:[%s2250_s4 + $0x48] sm:$0xff] %v1665_v25   ;;  %v2270_v35 = vadd.f32 %v1891_v31, %v2234_v28  ;;  %v1022_v42 = vadd.f32 %v1790_v29, %v1021_v4  ;;  %v1286_v28 = vmul.f32 %v1017_v19, %v1017_v19  ;;  %v1291_v21 = vmul.f32 %v1038_v49, %v1038_v49 }
 0x143   : > { %v1792_v44 = vpop.f32.mrf.mxu0  ;;  %v1040_v46 = vpop.f32.mrf.mxu1 }
 0x144   : > { %v1685_v39 = vpack.c.bf16 %v2270_v35, %v2267_v32  ;;  %v1793_v51 = vadd.f32 %v1792_v44, %v1791_v30  ;;  %v1041_v52 = vadd.f32 %v2230_v18, %v1040_v46  ;;  %v1287_v59 = vmul.f32 %v1022_v42, %v1022_v42 }
 0x145   : > { %v1794_v34 = vpop.f32.mrf.mxu0  ;;  %v1894_v36 = vpop.f32.mrf.mxu1  ;;  %v1317_v18 = vadd.f32 %v1316_v57, %v1286_v28  ;;  %v1248_v48 = vadd.f32 %v1247_v58, %v1022_v42 }
 0x146   : > { %1709 = vst [vmem:[%s2250_s4 + $0x68] sm:$0xff] %v1685_v39   ;;  %v1025_v54 = vadd.f32 %v1793_v51, %v1024_v12  ;;  %v1680_v56 = vpack.c.bf16 %v1041_v52, %v1038_v49  ;;  %v1062_v1 = vadd.f32 %v1894_v36, %v2240_v43  ;;  %v1292_v24 = vmul.f32 %v1041_v52, %v1041_v52 }
 0x147   : > { %v1795_v13 = vpop.f32.mrf.mxu0  ;;  %v1053_v60 = vpop.f32.mrf.mxu1  ;;  %v1318_v6 = vadd.f32 %v1317_v18, %v1287_v59 }
 0x148   : > { %v1670_v63 = vpack.c.bf16 %v1025_v54, %v1022_v42  ;;  %1708 = vst [vmem:[%s2250_s4 + $0x60] sm:$0xff] %v1680_v56   ;;  %v1796_v50 = vadd.f32 %v1795_v13, %v1794_v34  ;;  %v1288_v4 = vmul.f32 %v1025_v54, %v1025_v54  ;;  %v1249_v7 = vadd.f32 %v1248_v48, %v1025_v54 }
 0x149   : > { %v1797_v2 = vpop.f32.mrf.mxu0  ;;  %v1895_v3 = vpop.f32.mrf.mxu1  ;;  %v1054_v47 = vadd.f32 %v2236_v33, %v1053_v60 }
 0x14a   : > { %1706 = vst [vmem:[%s2250_s4 + $0x50] sm:$0xff] %v1670_v63   ;;  %v1065_v5 = vadd.f32 %v1895_v3, %v1823_v62  ;;  %v1030_v9 = vadd.f32 %v2260_v0, %v1796_v50  ;;  %v1319_v14 = vadd.f32 %v1318_v6, %v1288_v4 }
 0x14b   : > { %v1798_v10 = vpop.f32.mrf.mxu0  ;;  %v1056_v45 = vpop.f32.mrf.mxu1  ;;  %v1295_v37 = vmul.f32 %v1054_v47, %v1054_v47 }
 0x14c   : > { %v1695_v11 = vpack.c.bf16 %v1065_v5, %v1062_v1  ;;  %v1799_v12 = vadd.f32 %v1798_v10, %v1797_v2  ;;  %v1057_v55 = vadd.f32 %v2238_v38, %v1056_v45  ;;  %v1289_v61 = vmul.f32 %v1030_v9, %v1030_v9 }
 0x14d   : > { %v1250_v15 = vadd.f32 %v1249_v7, %v1030_v9  ;;  %v1293_v38 = vmul.f32 %v2267_v32, %v2267_v32 }
 0x14e   : > { %1711 = vst [vmem:[%s2250_s4 + $0x78] sm:$0xff] %v1695_v11   ;;  %v1033_v43 = vadd.f32 %v2262_v8, %v1799_v12  ;;  %v1690_v16 = vpack.c.bf16 %v1057_v55, %v1054_v47  ;;  %v1320_v17 = vadd.f32 %v1319_v14, %v1289_v61  ;;  %v1294_v8 = vmul.f32 %v2270_v35, %v2270_v35 }
 0x14f   : > { %v1296_v44 = vmul.f32 %v1057_v55, %v1057_v55 }
 0x150   : > { %v1675_v19 = vpack.c.bf16 %v1033_v43, %v1030_v9  ;;  %v1251_v0 = vadd.f32 %v1250_v15, %v1033_v43  ;;  %v1290_v20 = vmul.f32 %v1033_v43, %v1033_v43  ;;  %1710 = vst [vmem:[%s2250_s4 + $0x70] sm:$0xff] %v1690_v16  }
 0x152   : > { %1707 = vst [vmem:[%s2250_s4 + $0x58] sm:$0xff] %v1675_v19   ;;  %v1252_v33 = vadd.f32 %v1251_v0, %v1038_v49  ;;  %v1321_v22 = vadd.f32 %v1320_v17, %v1290_v20  ;;  %v1297_v49 = vmul.f32 %v1062_v1, %v1062_v1 }
 0x154   : > { %v1253_v25 = vadd.f32 %v1252_v33, %v1041_v52  ;;  %v1322_v26 = vadd.f32 %v1321_v22, %v1291_v21  ;;  %v1298_v52 = vmul.f32 %v1065_v5, %v1065_v5 }
 0x156   : > { %v1323_v27 = vadd.f32 %v1322_v26, %v1292_v24  ;;  %v1254_v29 = vadd.f32 %v1253_v25, %v2267_v32 }
 0x158   : > { %v1255_v30 = vadd.f32 %v1254_v29, %v2270_v35  ;;  %v1324_v31 = vadd.f32 %v1323_v27, %v1293_v38 }
 0x15a   : > { %v1256_v40 = vadd.f32 %v1255_v30, %v1054_v47  ;;  %v1325_v41 = vadd.f32 %v1324_v31, %v1294_v8 }
 0x15c   : > { %v1257_v42 = vadd.f32 %v1256_v40, %v1057_v55  ;;  %v1326_v46 = vadd.f32 %v1325_v41, %v1295_v37 }
 0x15e   : > { %v1258_v39 = vadd.f32 %v1257_v42, %v1062_v1  ;;  %v1327_v51 = vadd.f32 %v1326_v46, %v1296_v44 }
 0x160   : > { %v1259_v23 = vadd.f32 %v1258_v39, %v1065_v5  ;;  %v1328_v32 = vadd.f32 %v1327_v51, %v1297_v49 }
 0x162   : > { %v1260_v53 = vrot.slane %v1259_v23, 4  ;;  %v1329_v28 = vadd.f32 %v1328_v32, %v1298_v52 }
 0x164   : > { %v1261_v34 = vadd.f32 %v1260_v53, %v1259_v23  ;;  %v1330_v36 = vrot.slane %v1329_v28, 4 }
 0x166   : > { %v1262_v35 = vrot.slane %v1261_v34, 2  ;;  %v1331_v54 = vadd.f32 %v1330_v36, %v1329_v28 }
 0x168   : > { %v1263_v56 = vadd.f32 %v1262_v35, %v1261_v34  ;;  %v1332_v57 = vrot.slane %v1331_v54, 2 }
 0x16a   : > { %v1264_v58 = vrot.slane %v1263_v56, 1  ;;  %v1333_v59 = vadd.f32 %v1332_v57, %v1331_v54 }
 0x16c   : > { %v1265_v13 = vadd.f32 %v1264_v58, %v1263_v56  ;;  %v1334_v60 = vrot.slane %v1333_v59, 1 }
 0x16e   : > { %1266 = vst [vmem:[%s2225_s29] sm:$0x1] %v1265_v13  ;;  %v1335_v62 = vadd.f32 %v1334_v60, %v1333_v59 }
 0x170   : > { %1336 = vst [vmem:[%s2225_s29 + $0x1] sm:$0x1] %v1335_v62 }
 0x171 PF: > { %s14_s14 = sadd.s32 1, %s2048_s14   ;;  %s2310_s12 = smov %s2044_s13 }
 0x172   : > { %p11_p6 = scmp.ge.s32.totalorder %s14_s14, 4   ;;  %s2311_s13 = smov %s2313_s15 }
 0x174   :  { %13 = sbr.rel (!%p11_p6) target bundleno = 2 (0x2), region = 73 }

// kernel: dcgenerator_forward.16
= control target key start
LH: loop header
LB: loop body
LE: loop exit
PB: predicated region body
PF: predicated region fallthrough
CT: control target
= control target key end

     0   :  { %s851_s12 = smov 0   ;;  %s985_s0 = inlined_call_operand.vmem [shape: bf16[512,128], index: 0, kind: input, shape index: {}]   ;;  %s986_s1 = inlined_call_operand.vmem [shape: f32[1,128], index: 1, kind: input, shape index: {}]   ;;  %s987_s2 = inlined_call_operand.vmem [shape: f32[1,128], index: 2, kind: input, shape index: {}]   ;;  %s988_s3 = inlined_call_operand.vmem [shape: bf16[512,128], index: 3, kind: output, shape index: {}]  }
   0x1 LB: > { %s564_s13 = sadd.s32 4294967295, %s829_s12   ;;  %p568_p0 = scmp.ge.s32.totalorder %s829_s12, 1  ;;  %s829_s12 = sphi %s851_s12, %s13_s12  }
   0x2   : > { %p138_p1 = scmp.lt.s32.totalorder %s829_s12, 3 }
   0x4   : > { %p139_p2 = pnand %p568_p0, %p138_p1 }
   0x5   : > { %s569_s14 = sshll.u32 (!%p139_p2), %s564_s13, 5 }
   0x6   : > { %142 = sbr.rel (%p139_p2) target bundleno = 57 (0x39), region = 32  ;;  %p163_p3 = scmp.lt.s32.totalorder (!%p139_p2), %s569_s14, 63 }
   0xb   : > { %s990_s14 = smov (!%p163_p3, %s569_s14), 63  ;;  %v872_v0 = vld [vmem:[%s986_s1] ss:$0 sm:$0xff] }
   0xc   : > { %s570_s15 = sshll.u32 %s990_s14, 2  ;;  %v881_v9 = vld [vmem:[%s987_s2] ss:$0 sm:$0xff] }
   0xd   : > { %s867_s18 = scalar_lea.vmem %s985_s0, %s570_s15  ;;  %s906_s25 = scalar_lea.vmem %s988_s3, %s570_s15 }
   0xe   : > { %v642_v1 = vld [vmem:[%s867_s18] sm:$0xff]   ;;  %v785_v2 = vld [vmem:[%s867_s18 + $0x8] sm:$0xff]   ;;  %v786_v3 = vld [vmem:[%s867_s18 + $0x10] sm:$0xff]  }
   0xf   : > { %v643_v4 = vunpack.c.l.bf16 %v642_v1  ;;  %v644_v5 = vunpack.c.h.bf16 %v642_v1  ;;  %v647_v6 = vunpack.c.l.bf16 %v785_v2  ;;  %v648_v7 = vunpack.c.h.bf16 %v785_v2  ;;  %v787_v8 = vld [vmem:[%s867_s18 + $0x18] sm:$0xff]   ;;  %v788_v30 = vld [vmem:[%s867_s18 + $0x20] sm:$0xff]   ;;  %v789_v35 = vld [vmem:[%s867_s18 + $0x28] sm:$0xff]  }
  0x10   : > { %v651_v10 = vunpack.c.l.bf16 %v786_v3  ;;  %v652_v11 = vunpack.c.h.bf16 %v786_v3  ;;  %v655_v12 = vunpack.c.l.bf16 %v787_v8  ;;  %v656_v13 = vunpack.c.h.bf16 %v787_v8  ;;  %v790_v40 = vld [vmem:[%s867_s18 + $0x30] sm:$0xff]   ;;  %v791_v45 = vld [vmem:[%s867_s18 + $0x38] sm:$0xff]   ;;  %v792_v3 = vld [vmem:[%s867_s18 + $0x40] sm:$0xff]  }
  0x11   : > { %v245_v14 = vmul.f32 %v643_v4, %v872_v0  ;;  %v246_v15 = vmul.f32 %v644_v5, %v872_v0  ;;  %v247_v16 = vmul.f32 %v647_v6, %v872_v0  ;;  %v248_v17 = vmul.f32 %v648_v7, %v872_v0 }
  0x12   : > { %v249_v18 = vmul.f32 %v651_v10, %v872_v0  ;;  %v250_v19 = vmul.f32 %v652_v11, %v872_v0  ;;  %v251_v20 = vmul.f32 %v655_v12, %v872_v0  ;;  %v252_v21 = vmul.f32 %v656_v13, %v872_v0  ;;  %v793_v13 = vld [vmem:[%s867_s18 + $0x48] sm:$0xff]  }
  0x13   : > { %v284_v22 = vadd.f32 %v881_v9, %v245_v14  ;;  %v285_v23 = vadd.f32 %v881_v9, %v246_v15  ;;  %v286_v24 = vadd.f32 %v881_v9, %v247_v16  ;;  %v287_v25 = vadd.f32 %v881_v9, %v248_v17 }
  0x14   : > { %v288_v26 = vadd.f32 %v881_v9, %v249_v18  ;;  %v289_v27 = vadd.f32 %v881_v9, %v250_v19  ;;  %v290_v28 = vadd.f32 %v881_v9, %v251_v20  ;;  %v291_v29 = vadd.f32 %v881_v9, %v252_v21  ;;  %v794_v18 = vld [vmem:[%s867_s18 + $0x50] sm:$0xff]  }
  0x15   : > { %v316_v31 = vmax.f32 %v284_v22, 0.0  ;;  %v317_v32 = vmax.f32 %v285_v23, 0.0  ;;  %v318_v33 = vmax.f32 %v286_v24, 0.0  ;;  %v319_v34 = vmax.f32 %v287_v25, 0.0  ;;  %v795_v23 = vld [vmem:[%s867_s18 + $0x58] sm:$0xff]  }
  0x16   : > { %v320_v36 = vmax.f32 %v288_v26, 0.0  ;;  %v321_v37 = vmax.f32 %v289_v27, 0.0  ;;  %v322_v38 = vmax.f32 %v290_v28, 0.0  ;;  %v323_v39 = vmax.f32 %v291_v29, 0.0 }
  0x17   : > { %v708_v41 = vpack.c.bf16 %v317_v32, %v316_v31  ;;  %v713_v42 = vpack.c.bf16 %v319_v34, %v318_v33  ;;  %v659_v43 = vunpack.c.l.bf16 %v788_v30  ;;  %v660_v44 = vunpack.c.h.bf16 %v788_v30 }
  0x18   : > { %v718_v46 = vpack.c.bf16 %v321_v37, %v320_v36  ;;  %v723_v47 = vpack.c.bf16 %v323_v39, %v322_v38  ;;  %v663_v48 = vunpack.c.l.bf16 %v789_v35  ;;  %v664_v49 = vunpack.c.h.bf16 %v789_v35 }
  0x19   : > { %709 = vst [vmem:[%s906_s25] sm:$0xff] %v708_v41   ;;  %800 = vst [vmem:[%s906_s25 + $0x8] sm:$0xff] %v713_v42   ;;  %v253_v50 = vmul.f32 %v659_v43, %v872_v0  ;;  %v254_v51 = vmul.f32 %v660_v44, %v872_v0  ;;  %v667_v52 = vunpack.c.l.bf16 %v790_v40  ;;  %v668_v53 = vunpack.c.h.bf16 %v790_v40  ;;  %v796_v40 = vld [vmem:[%s867_s18 + $0x60] sm:$0xff]  }
  0x1a   : > { %801 = vst [vmem:[%s906_s25 + $0x10] sm:$0xff] %v718_v46   ;;  %802 = vst [vmem:[%s906_s25 + $0x18] sm:$0xff] %v723_v47   ;;  %v255_v54 = vmul.f32 %v663_v48, %v872_v0  ;;  %v256_v55 = vmul.f32 %v664_v49, %v872_v0  ;;  %v671_v56 = vunpack.c.l.bf16 %v791_v45  ;;  %v672_v57 = vunpack.c.h.bf16 %v791_v45 }
  0x1b   : > { %v292_v58 = vadd.f32 %v881_v9, %v253_v50  ;;  %v293_v59 = vadd.f32 %v881_v9, %v254_v51  ;;  %v257_v60 = vmul.f32 %v667_v52, %v872_v0  ;;  %v258_v61 = vmul.f32 %v668_v53, %v872_v0  ;;  %v797_v53 = vld [vmem:[%s867_s18 + $0x68] sm:$0xff]  }
  0x1c   : > { %v294_v62 = vadd.f32 %v881_v9, %v255_v54  ;;  %v295_v63 = vadd.f32 %v881_v9, %v256_v55  ;;  %v259_v1 = vmul.f32 %v671_v56, %v872_v0  ;;  %v260_v2 = vmul.f32 %v672_v57, %v872_v0 }
  0x1d   : > { %v324_v4 = vmax.f32 %v292_v58, 0.0  ;;  %v325_v5 = vmax.f32 %v293_v59, 0.0  ;;  %v296_v6 = vadd.f32 %v881_v9, %v257_v60  ;;  %v297_v7 = vadd.f32 %v881_v9, %v258_v61  ;;  %v798_v58 = vld [vmem:[%s867_s18 + $0x70] sm:$0xff]  }
  0x1e   : > { %v326_v8 = vmax.f32 %v294_v62, 0.0  ;;  %v327_v10 = vmax.f32 %v295_v63, 0.0  ;;  %v298_v11 = vadd.f32 %v881_v9, %v259_v1  ;;  %v299_v12 = vadd.f32 %v881_v9, %v260_v2  ;;  %v799_v63 = vld [vmem:[%s867_s18 + $0x78] sm:$0xff]  }
  0x1f   : > { %v728_v14 = vpack.c.bf16 %v325_v5, %v324_v4  ;;  %v328_v15 = vmax.f32 %v296_v6, 0.0  ;;  %v329_v16 = vmax.f32 %v297_v7, 0.0  ;;  %v675_v17 = vunpack.c.l.bf16 %v792_v3 }
  0x20   : > { %v733_v19 = vpack.c.bf16 %v327_v10, %v326_v8  ;;  %v330_v20 = vmax.f32 %v298_v11, 0.0  ;;  %v331_v21 = vmax.f32 %v299_v12, 0.0  ;;  %v676_v22 = vunpack.c.h.bf16 %v792_v3 }
  0x21   : > { %803 = vst [vmem:[%s906_s25 + $0x20] sm:$0xff] %v728_v14   ;;  %v738_v24 = vpack.c.bf16 %v329_v16, %v328_v15  ;;  %v261_v25 = vmul.f32 %v675_v17, %v872_v0  ;;  %v679_v26 = vunpack.c.l.bf16 %v793_v13  ;;  %v680_v27 = vunpack.c.h.bf16 %v793_v13 }
  0x22   : > { %804 = vst [vmem:[%s906_s25 + $0x28] sm:$0xff] %v733_v19   ;;  %v743_v28 = vpack.c.bf16 %v331_v21, %v330_v20  ;;  %v262_v29 = vmul.f32 %v676_v22, %v872_v0  ;;  %v683_v30 = vunpack.c.l.bf16 %v794_v18  ;;  %v684_v31 = vunpack.c.h.bf16 %v794_v18 }
  0x23   : > { %805 = vst [vmem:[%s906_s25 + $0x30] sm:$0xff] %v738_v24   ;;  %v300_v32 = vadd.f32 %v881_v9, %v261_v25  ;;  %v263_v33 = vmul.f32 %v679_v26, %v872_v0  ;;  %v264_v34 = vmul.f32 %v680_v27, %v872_v0  ;;  %v687_v35 = vunpack.c.l.bf16 %v795_v23 }
  0x24   : > { %806 = vst [vmem:[%s906_s25 + $0x38] sm:$0xff] %v743_v28   ;;  %v301_v36 = vadd.f32 %v881_v9, %v262_v29  ;;  %v265_v37 = vmul.f32 %v683_v30, %v872_v0  ;;  %v266_v38 = vmul.f32 %v684_v31, %v872_v0  ;;  %v688_v39 = vunpack.c.h.bf16 %v795_v23 }
  0x25   : > { %v332_v41 = vmax.f32 %v300_v32, 0.0  ;;  %v302_v42 = vadd.f32 %v881_v9, %v263_v33  ;;  %v303_v43 = vadd.f32 %v881_v9, %v264_v34  ;;  %v267_v44 = vmul.f32 %v687_v35, %v872_v0 }
  0x26   : > { %v333_v45 = vmax.f32 %v301_v36, 0.0  ;;  %v304_v46 = vadd.f32 %v881_v9, %v265_v37  ;;  %v305_v47 = vadd.f32 %v881_v9, %v266_v38  ;;  %v268_v48 = vmul.f32 %v688_v39, %v872_v0 }
  0x27   : > { %v334_v49 = vmax.f32 %v302_v42, 0.0  ;;  %v335_v50 = vmax.f32 %v303_v43, 0.0  ;;  %v306_v51 = vadd.f32 %v881_v9, %v267_v44  ;;  %v691_v52 = vunpack.c.l.bf16 %v796_v40 }
  0x28   : > { %v748_v54 = vpack.c.bf16 %v333_v45, %v332_v41  ;;  %v336_v55 = vmax.f32 %v304_v46, 0.0  ;;  %v337_v56 = vmax.f32 %v305_v47, 0.0  ;;  %v307_v57 = vadd.f32 %v881_v9, %v268_v48 }
  0x29   : > { %v753_v59 = vpack.c.bf16 %v335_v50, %v334_v49  ;;  %v338_v60 = vmax.f32 %v306_v51, 0.0  ;;  %v692_v61 = vunpack.c.h.bf16 %v796_v40  ;;  %v269_v62 = vmul.f32 %v691_v52, %v872_v0 }
  0x2a   : > { %807 = vst [vmem:[%s906_s25 + $0x40] sm:$0xff] %v748_v54   ;;  %v758_v1 = vpack.c.bf16 %v337_v56, %v336_v55  ;;  %v339_v2 = vmax.f32 %v307_v57, 0.0  ;;  %v695_v3 = vunpack.c.l.bf16 %v797_v53  ;;  %v696_v4 = vunpack.c.h.bf16 %v797_v53 }
  0x2b   : > { %808 = vst [vmem:[%s906_s25 + $0x48] sm:$0xff] %v753_v59   ;;  %v270_v5 = vmul.f32 %v692_v61, %v872_v0  ;;  %v308_v6 = vadd.f32 %v881_v9, %v269_v62  ;;  %v699_v7 = vunpack.c.l.bf16 %v798_v58  ;;  %v700_v8 = vunpack.c.h.bf16 %v798_v58 }
  0x2c   : > { %809 = vst [vmem:[%s906_s25 + $0x50] sm:$0xff] %v758_v1   ;;  %v763_v10 = vpack.c.bf16 %v339_v2, %v338_v60  ;;  %v271_v11 = vmul.f32 %v695_v3, %v872_v0  ;;  %v272_v12 = vmul.f32 %v696_v4, %v872_v0  ;;  %v703_v13 = vunpack.c.l.bf16 %v799_v63 }
  0x2d   : > { %v309_v14 = vadd.f32 %v881_v9, %v270_v5  ;;  %v340_v15 = vmax.f32 %v308_v6, 0.0  ;;  %v273_v16 = vmul.f32 %v699_v7, %v872_v0  ;;  %v274_v17 = vmul.f32 %v700_v8, %v872_v0 }
  0x2e   : > { %810 = vst [vmem:[%s906_s25 + $0x58] sm:$0xff] %v763_v10   ;;  %v310_v18 = vadd.f32 %v881_v9, %v271_v11  ;;  %v311_v19 = vadd.f32 %v881_v9, %v272_v12  ;;  %v704_v20 = vunpack.c.h.bf16 %v799_v63  ;;  %v275_v21 = vmul.f32 %v703_v13, %v872_v0 }
  0x2f   : > { %v341_v22 = vmax.f32 %v309_v14, 0.0  ;;  %v312_v23 = vadd.f32 %v881_v9, %v273_v16  ;;  %v313_v24 = vadd.f32 %v881_v9, %v274_v17 }
  0x30   : > { %v342_v25 = vmax.f32 %v310_v18, 0.0  ;;  %v343_v26 = vmax.f32 %v311_v19, 0.0  ;;  %v276_v27 = vmul.f32 %v704_v20, %v872_v0  ;;  %v314_v28 = vadd.f32 %v881_v9, %v275_v21 }
  0x31   : > { %v768_v29 = vpack.c.bf16 %v341_v22, %v340_v15  ;;  %v344_v30 = vmax.f32 %v312_v23, 0.0  ;;  %v345_v31 = vmax.f32 %v313_v24, 0.0 }
  0x32   : > { %v773_v32 = vpack.c.bf16 %v343_v26, %v342_v25  ;;  %v315_v33 = vadd.f32 %v881_v9, %v276_v27  ;;  %v346_v34 = vmax.f32 %v314_v28, 0.0 }
  0x33   : > { %811 = vst [vmem:[%s906_s25 + $0x60] sm:$0xff] %v768_v29   ;;  %v778_v35 = vpack.c.bf16 %v345_v31, %v344_v30 }
  0x34   : > { %812 = vst [vmem:[%s906_s25 + $0x68] sm:$0xff] %v773_v32   ;;  %v347_v36 = vmax.f32 %v315_v33, 0.0 }
  0x35   : > { %813 = vst [vmem:[%s906_s25 + $0x70] sm:$0xff] %v778_v35  }
  0x36   : > { %v783_v37 = vpack.c.bf16 %v347_v36, %v346_v34 }
  0x38   : > { %814 = vst [vmem:[%s906_s25 + $0x78] sm:$0xff] %v783_v37  }
  0x39 PF: > { %s13_s12 = sadd.s32 1, %s829_s12  }
  0x3a   : > { %p10_p4 = scmp.ge.s32.totalorder %s13_s12, 4  }
  0x3c   :  { %12 = sbr.rel (!%p10_p4) target bundleno = 1 (0x1), region = 62 }

// kernel: dcgenerator_forward.17
= control target key start
LH: loop header
LB: loop body
LE: loop exit
PB: predicated region body
PF: predicated region fallthrough
CT: control target
= control target key end

     0   :  { %s2762_s12 = smov 0   ;;  %s2764_s13 = smov 0   ;;  %s3280_s0 = inlined_call_operand.vmem [shape: bf16[2048,256], index: 0, kind: input, shape index: {}]   ;;  %s3281_s1 = inlined_call_operand.vmem [shape: bf16[256,128], index: 1, kind: input, shape index: {}]   ;;  %s3282_s2 = inlined_call_operand.vmem [shape: f32[1,128], index: 2, kind: input, shape index: {}]   ;;  %s3283_s3 = inlined_call_operand.vmem [shape: f32[2048,128], index: 3, kind: output, shape index: {}]  }
   0x1   :  { %s2766_s14 = smov 0  }
   0x2 LB: > { %s22_s15 = sadd.s32 1, %s2735_s13  ;;  %p2041_p0 = scmp.ge.s32.totalorder %s2739_s14, 1  ;;  %s2739_s14 = sphi %s2766_s14, %s13_s14   ;;  %s2735_s13 = sphi %s2764_s13, %s3285_s13   ;;  %s2731_s12 = sphi %s2762_s12, %s3284_s12  }
   0x3   : > { %p23_p1 = scmp.ge.s32.totalorder %s22_s15, 2  ;;  %p170_p2 = scmp.lt.s32.totalorder %s2739_s14, 3 }
   0x5   : > { %s3287_s15 = smov (%p23_p1, %s22_s15), 0  ;;  %p171_p3 = pnand %p2041_p0, %p170_p2 }
   0x6   : > { %s2042_s18 = sshll.u32 (!%p171_p3), %s2731_s12, 7 }
   0x7   : > { %174 = sbr.rel (%p171_p3) target bundleno = 540 (0x21c), region = 32  ;;  %p206_p4 = scmp.lt.s32.totalorder (!%p171_p3), %s2042_s18, 255 }
   0xc   : > { %v2252_v0 = vld [vmem:[%s3281_s1 + $0x38] sm:$0xff]   ;;  %v2741_v1 = vmov 0   ;;  %v2253_v2 = vld [vmem:[%s3281_s1 + $0x30] sm:$0xff]   ;;  %v2254_v3 = vld [vmem:[%s3281_s1 + $0x28] sm:$0xff]   ;;  %s3289_s18 = smov (!%p206_p4, %s2042_s18), 255 }
   0xd   : > { %1132 = vmatprep.subr.bf16.mxu0 %v2741_v1  ;;  %2195 = vmatprep.subr.bf16.mxu1 %v2741_v1  ;;  %v2255_v4 = vld [vmem:[%s3281_s1 + $0x20] sm:$0xff]   ;;  %s2194_s25 = sshll.u32 %s3289_s18, 3  ;;  %v2256_v5 = vld [vmem:[%s3281_s1 + $0x18] sm:$0xff]   ;;  %v2257_v7 = vld [vmem:[%s3281_s1 + $0x10] sm:$0xff]  }
   0xe   : > { %1133 = vmatpush1.bf16.msra.mxu0 %v2252_v0  ;;  %2211 = vmatpush1.bf16.msra.mxu1 %v2252_v0  ;;  %s2811_s30 = scalar_lea.vmem %s3280_s0, %s2194_s25  ;;  %v2258_v9 = vld [vmem:[%s3281_s1 + $0x8] sm:$0xff]   ;;  %v2259_v10 = vld [vmem:[%s3281_s1] sm:$0xff]   ;;  %v2260_v11 = vld [vmem:[%s3281_s1 + $0x78] sm:$0xff]   ;;  %s2998_s9 = scalar_lea.vmem %s3283_s3, %s2194_s25 }
   0xf   : > { %1134 = vmatprep.subr.bf16.mxu0 %v2741_v1  ;;  %2196 = vmatprep.subr.bf16.mxu1 %v2741_v1  ;;  %v2270_v6 = vld [vmem:[%s2811_s30 + $0x4] ss:$8 sps:$4 sm:$0xff]   ;;  %v2261_v12 = vld [vmem:[%s3281_s1 + $0x70] sm:$0xff]   ;;  %v2264_v15 = vld [vmem:[%s3281_s1 + $0x58] sm:$0xff]  }
  0x10   : > { %v2273_v8 = vld [vmem:[%s2811_s30 + $0x204] ss:$8 sps:$4 sm:$0xff]   ;;  %1164 = vmatprep.mubr.bf16.mxu0 %v2270_v6  ;;  %v2265_v16 = vld [vmem:[%s3281_s1 + $0x50] sm:$0xff]   ;;  %v2268_v19 = vld [vmem:[%s2811_s30] ss:$8 sps:$4 sm:$0xff]  }
  0x11   : > { %1420 = vmatprep.mubr.bf16.mxu1 %v2273_v8  ;;  %v2262_v13 = vld [vmem:[%s3281_s1 + $0x68] sm:$0xff]   ;;  %v2263_v14 = vld [vmem:[%s3281_s1 + $0x60] sm:$0xff]   ;;  %v2274_v21 = vld [vmem:[%s2811_s30 + $0x14] ss:$8 sps:$4 sm:$0xff]  }
  0x12   : > { %1135 = vmatpush1.bf16.msra.mxu0 %v2253_v2  ;;  %2212 = vmatpush1.bf16.msra.mxu1 %v2253_v2  ;;  %v2266_v17 = vld [vmem:[%s3281_s1 + $0x48] sm:$0xff]   ;;  %v2267_v18 = vld [vmem:[%s3281_s1 + $0x40] sm:$0xff]   ;;  %v2276_v22 = vld [vmem:[%s2811_s30 + $0x214] ss:$8 sps:$4 sm:$0xff]  }
  0x13   : > { %1136 = vmatprep.subr.bf16.mxu0 %v2741_v1  ;;  %2197 = vmatprep.subr.bf16.mxu1 %v2741_v1  ;;  %v2271_v20 = vld [vmem:[%s2811_s30 + $0x200] ss:$8 sps:$4 sm:$0xff]   ;;  %v2278_v23 = vld [vmem:[%s2811_s30 + $0x10] ss:$8 sps:$4 sm:$0xff]   ;;  %v2280_v25 = vld [vmem:[%s2811_s30 + $0x24] ss:$8 sps:$4 sm:$0xff]  }
  0x14   : > { %v2279_v24 = vld [vmem:[%s2811_s30 + $0x210] ss:$8 sps:$4 sm:$0xff]   ;;  %v2282_v26 = vld [vmem:[%s2811_s30 + $0x224] ss:$8 sps:$4 sm:$0xff]   ;;  %v2284_v27 = vld [vmem:[%s2811_s30 + $0x20] ss:$8 sps:$4 sm:$0xff]  }
  0x15   : > { %v2285_v28 = vld [vmem:[%s2811_s30 + $0x220] ss:$8 sps:$4 sm:$0xff]   ;;  %v2286_v29 = vld [vmem:[%s2811_s30 + $0x34] ss:$8 sps:$4 sm:$0xff]   ;;  %v2290_v31 = vld [vmem:[%s2811_s30 + $0x30] ss:$8 sps:$4 sm:$0xff]  }
  0x16   : > { %1137 = vmatpush1.bf16.msra.mxu0 %v2254_v3  ;;  %2213 = vmatpush1.bf16.msra.mxu1 %v2254_v3  ;;  %v2288_v30 = vld [vmem:[%s2811_s30 + $0x234] ss:$8 sps:$4 sm:$0xff]   ;;  %v2291_v32 = vld [vmem:[%s2811_s30 + $0x230] ss:$8 sps:$4 sm:$0xff]   ;;  %v2292_v33 = vld [vmem:[%s2811_s30 + $0x44] ss:$8 sps:$4 sm:$0xff]  }
  0x17   : > { %1138 = vmatprep.subr.bf16.mxu0 %v2741_v1  ;;  %2198 = vmatprep.subr.bf16.mxu1 %v2741_v1  ;;  %v2294_v34 = vld [vmem:[%s2811_s30 + $0x244] ss:$8 sps:$4 sm:$0xff]   ;;  %v2296_v35 = vld [vmem:[%s2811_s30 + $0x40] ss:$8 sps:$4 sm:$0xff]   ;;  %v2298_v37 = vld [vmem:[%s2811_s30 + $0x54] ss:$8 sps:$4 sm:$0xff]  }
  0x18   : > { %v2297_v36 = vld [vmem:[%s2811_s30 + $0x240] ss:$8 sps:$4 sm:$0xff]   ;;  %v2300_v38 = vld [vmem:[%s2811_s30 + $0x254] ss:$8 sps:$4 sm:$0xff]   ;;  %v2302_v39 = vld [vmem:[%s2811_s30 + $0x50] ss:$8 sps:$4 sm:$0xff]  }
  0x19   : > { %v2303_v40 = vld [vmem:[%s2811_s30 + $0x250] ss:$8 sps:$4 sm:$0xff]   ;;  %v2304_v41 = vld [vmem:[%s2811_s30 + $0x64] ss:$8 sps:$4 sm:$0xff]   ;;  %v2308_v43 = vld [vmem:[%s2811_s30 + $0x60] ss:$8 sps:$4 sm:$0xff]  }
  0x1a   : > { %1139 = vmatpush1.bf16.msra.mxu0 %v2255_v4  ;;  %2214 = vmatpush1.bf16.msra.mxu1 %v2255_v4  ;;  %v2306_v42 = vld [vmem:[%s2811_s30 + $0x264] ss:$8 sps:$4 sm:$0xff]   ;;  %v2309_v44 = vld [vmem:[%s2811_s30 + $0x260] ss:$8 sps:$4 sm:$0xff]   ;;  %v2310_v45 = vld [vmem:[%s2811_s30 + $0x74] ss:$8 sps:$4 sm:$0xff]  }
  0x1b   : > { %1140 = vmatprep.subr.bf16.mxu0 %v2741_v1  ;;  %2199 = vmatprep.subr.bf16.mxu1 %v2741_v1  ;;  %v2312_v46 = vld [vmem:[%s2811_s30 + $0x274] ss:$8 sps:$4 sm:$0xff]   ;;  %v2314_v47 = vld [vmem:[%s2811_s30 + $0x70] ss:$8 sps:$4 sm:$0xff]   ;;  %v2316_v49 = vld [vmem:[%s2811_s30 + $0x84] ss:$8 sps:$4 sm:$0xff]  }
  0x1c   : > { %v2315_v48 = vld [vmem:[%s2811_s30 + $0x270] ss:$8 sps:$4 sm:$0xff]   ;;  %v2318_v50 = vld [vmem:[%s2811_s30 + $0x284] ss:$8 sps:$4 sm:$0xff]   ;;  %v2320_v51 = vld [vmem:[%s2811_s30 + $0x80] ss:$8 sps:$4 sm:$0xff]  }
  0x1d   : > { %v2321_v52 = vld [vmem:[%s2811_s30 + $0x280] ss:$8 sps:$4 sm:$0xff]   ;;  %v2322_v53 = vld [vmem:[%s2811_s30 + $0x94] ss:$8 sps:$4 sm:$0xff]   ;;  %v2326_v55 = vld [vmem:[%s2811_s30 + $0x90] ss:$8 sps:$4 sm:$0xff]  }
  0x1e   : > { %1141 = vmatpush1.bf16.msra.mxu0 %v2256_v5  ;;  %2215 = vmatpush1.bf16.msra.mxu1 %v2256_v5  ;;  %v2324_v54 = vld [vmem:[%s2811_s30 + $0x294] ss:$8 sps:$4 sm:$0xff]   ;;  %v2327_v56 = vld [vmem:[%s2811_s30 + $0x290] ss:$8 sps:$4 sm:$0xff]   ;;  %v2328_v57 = vld [vmem:[%s2811_s30 + $0xa4] ss:$8 sps:$4 sm:$0xff]  }
  0x1f   : > { %1142 = vmatprep.subr.bf16.mxu0 %v2741_v1  ;;  %2200 = vmatprep.subr.bf16.mxu1 %v2741_v1  ;;  %v2330_v58 = vld [vmem:[%s2811_s30 + $0x2a4] ss:$8 sps:$4 sm:$0xff]   ;;  %v2332_v59 = vld [vmem:[%s2811_s30 + $0xa0] ss:$8 sps:$4 sm:$0xff]   ;;  %v2334_v61 = vld [vmem:[%s2811_s30 + $0xb4] ss:$8 sps:$4 sm:$0xff]  }
  0x20   : > { %v2333_v60 = vld [vmem:[%s2811_s30 + $0x2a0] ss:$8 sps:$4 sm:$0xff]   ;;  %v2336_v62 = vld [vmem:[%s2811_s30 + $0x2b4] ss:$8 sps:$4 sm:$0xff]   ;;  %v2338_v63 = vld [vmem:[%s2811_s30 + $0xb0] ss:$8 sps:$4 sm:$0xff]  }
  0x21   : > { %v2339_v0 = vld [vmem:[%s2811_s30 + $0x2b0] ss:$8 sps:$4 sm:$0xff]   ;;  %v2342_v2 = vld [vmem:[%s2811_s30 + $0x2c4] ss:$8 sps:$4 sm:$0xff]   ;;  %v2344_v3 = vld [vmem:[%s2811_s30 + $0xc0] ss:$8 sps:$4 sm:$0xff]  }
  0x22   : > { %1143 = vmatpush1.bf16.msra.mxu0 %v2257_v7  ;;  %2216 = vmatpush1.bf16.msra.mxu1 %v2257_v7  ;;  %v2345_v4 = vld [vmem:[%s2811_s30 + $0x2c0] ss:$8 sps:$4 sm:$0xff]   ;;  %v2346_v5 = vld [vmem:[%s2811_s30 + $0xd4] ss:$8 sps:$4 sm:$0xff]   ;;  %v2350_v7 = vld [vmem:[%s2811_s30 + $0xd0] ss:$8 sps:$4 sm:$0xff]  }
  0x23   : > { %1144 = vmatprep.subr.bf16.mxu0 %v2741_v1  ;;  %2201 = vmatprep.subr.bf16.mxu1 %v2741_v1  ;;  %v2348_v6 = vld [vmem:[%s2811_s30 + $0x2d4] ss:$8 sps:$4 sm:$0xff]   ;;  %v2351_v8 = vld [vmem:[%s2811_s30 + $0x2d0] ss:$8 sps:$4 sm:$0xff]  }
  0x26   : > { %1145 = vmatpush1.bf16.msra.mxu0 %v2258_v9  ;;  %2217 = vmatpush1.bf16.msra.mxu1 %v2258_v9  ;;  %v2352_v9 = vld [vmem:[%s2811_s30 + $0xe4] ss:$8 sps:$4 sm:$0xff]  }
  0x27   : > { %1146 = vmatprep.subr.bf16.mxu0 %v2741_v1  ;;  %2202 = vmatprep.subr.bf16.mxu1 %v2741_v1 }
  0x2a   : > { %1147 = vmatpush1.bf16.msra.mxu0 %v2259_v10  ;;  %2218 = vmatpush1.bf16.msra.mxu1 %v2259_v10  ;;  %v2354_v10 = vld [vmem:[%s2811_s30 + $0x2e4] ss:$8 sps:$4 sm:$0xff]  }
  0x2b   : > { %1148 = vmatprep.subr.bf16.mxu0 %v2741_v1  ;;  %2203 = vmatprep.subr.bf16.mxu1 %v2741_v1 }
  0x2e   : > { %1149 = vmatpush2.bf16.msra.mxu0 %v2260_v11  ;;  %2219 = vmatpush2.bf16.msra.mxu1 %v2260_v11  ;;  %v2356_v11 = vld [vmem:[%s2811_s30 + $0xe0] ss:$8 sps:$4 sm:$0xff]  }
  0x2f   : > { %1150 = vmatprep.subr.bf16.mxu0 %v2741_v1  ;;  %2204 = vmatprep.subr.bf16.mxu1 %v2741_v1 }
  0x32   : > { %1151 = vmatpush2.bf16.msra.mxu0 %v2261_v12  ;;  %2220 = vmatpush2.bf16.msra.mxu1 %v2261_v12  ;;  %v2357_v12 = vld [vmem:[%s2811_s30 + $0x2e0] ss:$8 sps:$4 sm:$0xff]  }
  0x33   : > { %1152 = vmatprep.subr.bf16.mxu0 %v2741_v1  ;;  %2205 = vmatprep.subr.bf16.mxu1 %v2741_v1 }
  0x36   : > { %1153 = vmatpush2.bf16.msra.mxu0 %v2262_v13  ;;  %2221 = vmatpush2.bf16.msra.mxu1 %v2262_v13  ;;  %v2358_v13 = vld [vmem:[%s2811_s30 + $0xf4] ss:$8 sps:$4 sm:$0xff]  }
  0x37   : > { %1154 = vmatprep.subr.bf16.mxu0 %v2741_v1  ;;  %2206 = vmatprep.subr.bf16.mxu1 %v2741_v1 }
  0x3a   : > { %1155 = vmatpush2.bf16.msra.mxu0 %v2263_v14  ;;  %2222 = vmatpush2.bf16.msra.mxu1 %v2263_v14  ;;  %v2360_v14 = vld [vmem:[%s2811_s30 + $0x2f4] ss:$8 sps:$4 sm:$0xff]  }
  0x3b   : > { %1156 = vmatprep.subr.bf16.mxu0 %v2741_v1  ;;  %2207 = vmatprep.subr.bf16.mxu1 %v2741_v1 }
  0x3e   : > { %1157 = vmatpush2.bf16.msra.mxu0 %v2264_v15  ;;  %2223 = vmatpush2.bf16.msra.mxu1 %v2264_v15  ;;  %v2362_v15 = vld [vmem:[%s2811_s30 + $0xf0] ss:$8 sps:$4 sm:$0xff]  }
  0x3f   : > { %1158 = vmatprep.subr.bf16.mxu0 %v2741_v1  ;;  %2208 = vmatprep.subr.bf16.mxu1 %v2741_v1 }
  0x42   : > { %1159 = vmatpush2.bf16.msra.mxu0 %v2265_v16  ;;  %2224 = vmatpush2.bf16.msra.mxu1 %v2265_v16  ;;  %v2363_v16 = vld [vmem:[%s2811_s30 + $0x2f0] ss:$8 sps:$4 sm:$0xff]  }
  0x43   : > { %1160 = vmatprep.subr.bf16.mxu0 %v2741_v1  ;;  %2209 = vmatprep.subr.bf16.mxu1 %v2741_v1 }
  0x46   : > { %1161 = vmatpush2.bf16.msra.mxu0 %v2266_v17  ;;  %2225 = vmatpush2.bf16.msra.mxu1 %v2266_v17  ;;  %v2364_v17 = vld [vmem:[%s2811_s30 + $0x104] ss:$8 sps:$4 sm:$0xff]  }
  0x47   : > { %1162 = vmatprep.subr.bf16.mxu0 %v2741_v1  ;;  %2210 = vmatprep.subr.bf16.mxu1 %v2741_v1  ;;  %v2340_v1 = vld [vmem:[%s2811_s30 + $0xc4] ss:$8 sps:$4 sm:$0xff]  }
  0x4a   : > { %1163 = vmatpush2.bf16.msra.mxu0 %v2267_v18  ;;  %2226 = vmatpush2.bf16.msra.mxu1 %v2267_v18  ;;  %v2366_v18 = vld [vmem:[%s2811_s30 + $0x304] ss:$8 sps:$4 sm:$0xff]  }
  0x4d   : > { %1165 = vmatmul.mubr.bf16.vlgmr.msra.gmra.mxu0 %v2268_v19  ;;  %1421 = vmatmul.mubr.bf16.vlgmr.msra.gmra.mxu1 %v2271_v20  ;;  %v2368_v19 = vld [vmem:[%s2811_s30 + $0x100] ss:$8 sps:$4 sm:$0xff]  }
  0x4e   : > { %1172 = vmatprep.mubr.bf16.mxu0 %v2274_v21  ;;  %1428 = vmatprep.mubr.bf16.mxu1 %v2276_v22  ;;  %v2369_v20 = vld [vmem:[%s2811_s30 + $0x300] ss:$8 sps:$4 sm:$0xff]   ;;  %v2370_v21 = vld [vmem:[%s2811_s30 + $0x114] ss:$8 sps:$4 sm:$0xff]  }
  0x4f   : > { %v2372_v22 = vld [vmem:[%s2811_s30 + $0x314] ss:$8 sps:$4 sm:$0xff]  }
  0x55   : > { %1173 = vmatmul.mubr.bf16.gmra.mxu0 %v2278_v23  ;;  %1429 = vmatmul.mubr.bf16.gmra.mxu1 %v2279_v24  ;;  %v2374_v23 = vld [vmem:[%s2811_s30 + $0x110] ss:$8 sps:$4 sm:$0xff]  }
  0x56   : > { %1180 = vmatprep.mubr.bf16.mxu0 %v2280_v25  ;;  %1436 = vmatprep.mubr.bf16.mxu1 %v2282_v26  ;;  %v2375_v24 = vld [vmem:[%s2811_s30 + $0x310] ss:$8 sps:$4 sm:$0xff]   ;;  %v2376_v25 = vld [vmem:[%s2811_s30 + $0x124] ss:$8 sps:$4 sm:$0xff]  }
  0x57   : > { %v2378_v26 = vld [vmem:[%s2811_s30 + $0x324] ss:$8 sps:$4 sm:$0xff]  }
  0x5d   : > { %1181 = vmatmul.mubr.bf16.gmra.mxu0 %v2284_v27  ;;  %1437 = vmatmul.mubr.bf16.gmra.mxu1 %v2285_v28  ;;  %v2380_v27 = vld [vmem:[%s2811_s30 + $0x120] ss:$8 sps:$4 sm:$0xff]  }
  0x5e   : > { %1188 = vmatprep.mubr.bf16.mxu0 %v2286_v29  ;;  %1444 = vmatprep.mubr.bf16.mxu1 %v2288_v30  ;;  %v2381_v28 = vld [vmem:[%s2811_s30 + $0x320] ss:$8 sps:$4 sm:$0xff]   ;;  %v2382_v29 = vld [vmem:[%s2811_s30 + $0x134] ss:$8 sps:$4 sm:$0xff]  }
  0x5f   : > { %v2384_v30 = vld [vmem:[%s2811_s30 + $0x334] ss:$8 sps:$4 sm:$0xff]  }
  0x65   : > { %1189 = vmatmul.mubr.bf16.gmra.mxu0 %v2290_v31  ;;  %1445 = vmatmul.mubr.bf16.gmra.mxu1 %v2291_v32  ;;  %v2386_v31 = vld [vmem:[%s2811_s30 + $0x130] ss:$8 sps:$4 sm:$0xff]  }
  0x66   : > { %1196 = vmatprep.mubr.bf16.mxu0 %v2292_v33  ;;  %1452 = vmatprep.mubr.bf16.mxu1 %v2294_v34  ;;  %v2387_v32 = vld [vmem:[%s2811_s30 + $0x330] ss:$8 sps:$4 sm:$0xff]   ;;  %v2388_v33 = vld [vmem:[%s2811_s30 + $0x144] ss:$8 sps:$4 sm:$0xff]  }
  0x67   : > { %v2390_v34 = vld [vmem:[%s2811_s30 + $0x344] ss:$8 sps:$4 sm:$0xff]  }
  0x6d   : > { %1197 = vmatmul.mubr.bf16.gmra.mxu0 %v2296_v35  ;;  %1453 = vmatmul.mubr.bf16.gmra.mxu1 %v2297_v36  ;;  %v2392_v35 = vld [vmem:[%s2811_s30 + $0x140] ss:$8 sps:$4 sm:$0xff]  }
  0x6e   : > { %1204 = vmatprep.mubr.bf16.mxu0 %v2298_v37  ;;  %1460 = vmatprep.mubr.bf16.mxu1 %v2300_v38  ;;  %v2393_v36 = vld [vmem:[%s2811_s30 + $0x340] ss:$8 sps:$4 sm:$0xff]   ;;  %v2394_v37 = vld [vmem:[%s2811_s30 + $0x154] ss:$8 sps:$4 sm:$0xff]  }
  0x6f   : > { %v2396_v38 = vld [vmem:[%s2811_s30 + $0x354] ss:$8 sps:$4 sm:$0xff]  }
  0x75   : > { %1205 = vmatmul.mubr.bf16.gmra.mxu0 %v2302_v39  ;;  %1461 = vmatmul.mubr.bf16.gmra.mxu1 %v2303_v40  ;;  %v2398_v39 = vld [vmem:[%s2811_s30 + $0x150] ss:$8 sps:$4 sm:$0xff]  }
  0x76   : > { %1212 = vmatprep.mubr.bf16.mxu0 %v2304_v41  ;;  %1468 = vmatprep.mubr.bf16.mxu1 %v2306_v42  ;;  %v2399_v40 = vld [vmem:[%s2811_s30 + $0x350] ss:$8 sps:$4 sm:$0xff]   ;;  %v2400_v41 = vld [vmem:[%s2811_s30 + $0x164] ss:$8 sps:$4 sm:$0xff]  }
  0x77   : > { %v2402_v42 = vld [vmem:[%s2811_s30 + $0x364] ss:$8 sps:$4 sm:$0xff]  }
  0x7d   : > { %1213 = vmatmul.mubr.bf16.gmra.mxu0 %v2308_v43  ;;  %1469 = vmatmul.mubr.bf16.gmra.mxu1 %v2309_v44  ;;  %v2404_v43 = vld [vmem:[%s2811_s30 + $0x160] ss:$8 sps:$4 sm:$0xff]  }
  0x7e   : > { %1220 = vmatprep.mubr.bf16.mxu0 %v2310_v45  ;;  %1476 = vmatprep.mubr.bf16.mxu1 %v2312_v46  ;;  %v2405_v44 = vld [vmem:[%s2811_s30 + $0x360] ss:$8 sps:$4 sm:$0xff]   ;;  %v2406_v45 = vld [vmem:[%s2811_s30 + $0x174] ss:$8 sps:$4 sm:$0xff]  }
  0x7f   : > { %v2408_v46 = vld [vmem:[%s2811_s30 + $0x374] ss:$8 sps:$4 sm:$0xff]  }
  0x85   : > { %1221 = vmatmul.mubr.bf16.gmra.mxu0 %v2314_v47  ;;  %1477 = vmatmul.mubr.bf16.gmra.mxu1 %v2315_v48  ;;  %v2410_v47 = vld [vmem:[%s2811_s30 + $0x170] ss:$8 sps:$4 sm:$0xff]  }
  0x86   : > { %1228 = vmatprep.mubr.bf16.mxu0 %v2316_v49  ;;  %1484 = vmatprep.mubr.bf16.mxu1 %v2318_v50  ;;  %v2411_v48 = vld [vmem:[%s2811_s30 + $0x370] ss:$8 sps:$4 sm:$0xff]   ;;  %v2412_v49 = vld [vmem:[%s2811_s30 + $0x184] ss:$8 sps:$4 sm:$0xff]  }
  0x87   : > { %v2414_v50 = vld [vmem:[%s2811_s30 + $0x384] ss:$8 sps:$4 sm:$0xff]  }
  0x8d   : > { %1229 = vmatmul.mubr.bf16.gmra.mxu0 %v2320_v51  ;;  %1485 = vmatmul.mubr.bf16.gmra.mxu1 %v2321_v52  ;;  %v2416_v51 = vld [vmem:[%s2811_s30 + $0x180] ss:$8 sps:$4 sm:$0xff]  }
  0x8e   : > { %1236 = vmatprep.mubr.bf16.mxu0 %v2322_v53  ;;  %1492 = vmatprep.mubr.bf16.mxu1 %v2324_v54  ;;  %v2417_v52 = vld [vmem:[%s2811_s30 + $0x380] ss:$8 sps:$4 sm:$0xff]   ;;  %v2418_v53 = vld [vmem:[%s2811_s30 + $0x194] ss:$8 sps:$4 sm:$0xff]  }
  0x8f   : > { %v2420_v54 = vld [vmem:[%s2811_s30 + $0x394] ss:$8 sps:$4 sm:$0xff]  }
  0x95   : > { %1237 = vmatmul.mubr.bf16.gmra.mxu0 %v2326_v55  ;;  %1493 = vmatmul.mubr.bf16.gmra.mxu1 %v2327_v56  ;;  %v2975_v55 = vld [vmem:[%s3282_s2] ss:$0 sm:$0xff] }
  0x96   : > { %1244 = vmatprep.mubr.bf16.mxu0 %v2328_v57  ;;  %1500 = vmatprep.mubr.bf16.mxu1 %v2330_v58 }
  0x9d   : > { %1245 = vmatmul.mubr.bf16.gmra.mxu0 %v2332_v59  ;;  %1501 = vmatmul.mubr.bf16.gmra.mxu1 %v2333_v60 }
  0x9e   : > { %1252 = vmatprep.mubr.bf16.mxu0 %v2334_v61  ;;  %1508 = vmatprep.mubr.bf16.mxu1 %v2336_v62 }
  0xa5   : > { %1253 = vmatmul.mubr.bf16.gmra.mxu0 %v2338_v63  ;;  %1509 = vmatmul.mubr.bf16.gmra.mxu1 %v2339_v0  ;;  %v2422_v0 = vld [vmem:[%s2811_s30 + $0x190] ss:$8 sps:$4 sm:$0xff]  }
  0xa6   : > { %1260 = vmatprep.mubr.bf16.mxu0 %v2340_v1  ;;  %1516 = vmatprep.mubr.bf16.mxu1 %v2342_v2  ;;  %v2423_v1 = vld [vmem:[%s2811_s30 + $0x390] ss:$8 sps:$4 sm:$0xff]  }
  0xad   : > { %1261 = vmatmul.mubr.bf16.gmra.mxu0 %v2344_v3  ;;  %1517 = vmatmul.mubr.bf16.gmra.mxu1 %v2345_v4  ;;  %v2424_v4 = vld [vmem:[%s2811_s30 + $0x1a4] ss:$8 sps:$4 sm:$0xff]  }
  0xae   : > { %1268 = vmatprep.mubr.bf16.mxu0 %v2346_v5  ;;  %1524 = vmatprep.mubr.bf16.mxu1 %v2348_v6  ;;  %v2426_v5 = vld [vmem:[%s2811_s30 + $0x3a4] ss:$8 sps:$4 sm:$0xff]  }
  0xb5   : > { %1269 = vmatmul.mubr.bf16.gmra.mxu0 %v2350_v7  ;;  %1525 = vmatmul.mubr.bf16.gmra.mxu1 %v2351_v8 }
  0xb6   : > { %1276 = vmatprep.mubr.bf16.mxu0 %v2352_v9  ;;  %1532 = vmatprep.mubr.bf16.mxu1 %v2354_v10 }
  0xbd   : > { %1277 = vmatmul.mubr.bf16.gmra.mxu0 %v2356_v11  ;;  %1533 = vmatmul.mubr.bf16.gmra.mxu1 %v2357_v12 }
  0xbe   : > { %1284 = vmatprep.mubr.bf16.mxu0 %v2358_v13  ;;  %1540 = vmatprep.mubr.bf16.mxu1 %v2360_v14 }
  0xc5   : > { %1285 = vmatmul.mubr.bf16.gmra.mxu0 %v2362_v15  ;;  %1541 = vmatmul.mubr.bf16.gmra.mxu1 %v2363_v16  ;;  %v2428_v16 = vld [vmem:[%s2811_s30 + $0x1a0] ss:$8 sps:$4 sm:$0xff]  }
  0xc6   : > { %1292 = vmatprep.mubr.bf16.mxu0 %v2364_v17  ;;  %1548 = vmatprep.mubr.bf16.mxu1 %v2366_v18  ;;  %v2429_v17 = vld [vmem:[%s2811_s30 + $0x3a0] ss:$8 sps:$4 sm:$0xff]  }
  0xcd   : > { %1293 = vmatmul.mubr.bf16.gmra.mxu0 %v2368_v19  ;;  %1549 = vmatmul.mubr.bf16.gmra.mxu1 %v2369_v20  ;;  %v2430_v20 = vld [vmem:[%s2811_s30 + $0x1b4] ss:$8 sps:$4 sm:$0xff]  }
  0xce   : > { %1300 = vmatprep.mubr.bf16.mxu0 %v2370_v21  ;;  %1556 = vmatprep.mubr.bf16.mxu1 %v2372_v22  ;;  %v2432_v21 = vld [vmem:[%s2811_s30 + $0x3b4] ss:$8 sps:$4 sm:$0xff]  }
  0xd5   : > { %1301 = vmatmul.mubr.bf16.gmra.mxu0 %v2374_v23  ;;  %1557 = vmatmul.mubr.bf16.gmra.mxu1 %v2375_v24 }
  0xd6   : > { %1308 = vmatprep.mubr.bf16.mxu0 %v2376_v25  ;;  %1564 = vmatprep.mubr.bf16.mxu1 %v2378_v26 }
  0xdd   : > { %1309 = vmatmul.mubr.bf16.gmra.mxu0 %v2380_v27  ;;  %1565 = vmatmul.mubr.bf16.gmra.mxu1 %v2381_v28 }
  0xde   : > { %1316 = vmatprep.mubr.bf16.mxu0 %v2382_v29  ;;  %1572 = vmatprep.mubr.bf16.mxu1 %v2384_v30 }
  0xe5   : > { %1317 = vmatmul.mubr.bf16.gmra.mxu0 %v2386_v31  ;;  %1573 = vmatmul.mubr.bf16.gmra.mxu1 %v2387_v32 }
  0xe6   : > { %1324 = vmatprep.mubr.bf16.mxu0 %v2388_v33  ;;  %1580 = vmatprep.mubr.bf16.mxu1 %v2390_v34 }
  0xed   : > { %1325 = vmatmul.mubr.bf16.gmra.mxu0 %v2392_v35  ;;  %1581 = vmatmul.mubr.bf16.gmra.mxu1 %v2393_v36  ;;  %v2434_v35 = vld [vmem:[%s2811_s30 + $0x1b0] ss:$8 sps:$4 sm:$0xff]  }
  0xee   : > { %1332 = vmatprep.mubr.bf16.mxu0 %v2394_v37  ;;  %1588 = vmatprep.mubr.bf16.mxu1 %v2396_v38  ;;  %v2435_v36 = vld [vmem:[%s2811_s30 + $0x3b0] ss:$8 sps:$4 sm:$0xff]  }
  0xf5   : > { %1333 = vmatmul.mubr.bf16.gmra.mxu0 %v2398_v39  ;;  %1589 = vmatmul.mubr.bf16.gmra.mxu1 %v2399_v40  ;;  %v2438_v40 = vld [vmem:[%s2811_s30 + $0x1c4] ss:$8 sps:$4 sm:$0xff]  }
  0xf6   : > { %1340 = vmatprep.mubr.bf16.mxu0 %v2400_v41  ;;  %1596 = vmatprep.mubr.bf16.mxu1 %v2402_v42  ;;  %v2441_v41 = vld [vmem:[%s2811_s30 + $0x3c4] ss:$8 sps:$4 sm:$0xff]  }
  0xfd   : > { %1341 = vmatmul.mubr.bf16.gmra.mxu0 %v2404_v43  ;;  %1597 = vmatmul.mubr.bf16.gmra.mxu1 %v2405_v44 }
  0xfe   : > { %1348 = vmatprep.mubr.bf16.mxu0 %v2406_v45  ;;  %1604 = vmatprep.mubr.bf16.mxu1 %v2408_v46 }
 0x105   : > { %1349 = vmatmul.mubr.bf16.gmra.mxu0 %v2410_v47  ;;  %1605 = vmatmul.mubr.bf16.gmra.mxu1 %v2411_v48 }
 0x106   : > { %1356 = vmatprep.mubr.bf16.mxu0 %v2412_v49  ;;  %1612 = vmatprep.mubr.bf16.mxu1 %v2414_v50 }
 0x10d   : > { %v1166_v56 = vpop.f32.mrf.mxu0  ;;  %1357 = vmatmul.mubr.bf16.gmra.mxu0 %v2416_v51  ;;  %v1422_v57 = vpop.f32.mrf.mxu1  ;;  %1613 = vmatmul.mubr.bf16.gmra.mxu1 %v2417_v52 }
 0x10e   : > { %v1167_v58 = vadd.f32 %v2975_v55, %v1166_v56  ;;  %v1423_v59 = vadd.f32 %v2975_v55, %v1422_v57  ;;  %1364 = vmatprep.mubr.bf16.mxu0 %v2418_v53  ;;  %1620 = vmatprep.mubr.bf16.mxu1 %v2420_v54  ;;  %v2436_v56 = vld [vmem:[%s2811_s30 + $0x1c0] ss:$8 sps:$4 sm:$0xff]  }
 0x10f   : > { %v1168_v60 = vpop.f32.mrf.mxu0  ;;  %v1424_v61 = vpop.f32.mrf.mxu1  ;;  %v2439_v57 = vld [vmem:[%s2811_s30 + $0x3c0] ss:$8 sps:$4 sm:$0xff]  }
 0x110   : > { %2460 = vtanh.f32 %v1167_v58  ;;  %v2444_v61 = vld [vmem:[%s2811_s30 + $0x1d4] ss:$8 sps:$4 sm:$0xff]  }
 0x111   : > { %2462 = vtanh.f32 %v1423_v59  ;;  %v1169_v62 = vpop.f32.mrf.mxu0  ;;  %v1425_v63 = vpop.f32.mrf.mxu1 }
 0x112   : > { %v1170_v2 = vadd.f32 %v2975_v55, %v1169_v62  ;;  %v1426_v3 = vadd.f32 %v2975_v55, %v1425_v63  ;;  %v2447_v62 = vld [vmem:[%s2811_s30 + $0x3d4] ss:$8 sps:$4 sm:$0xff]  }
 0x113   : > { %v1171_v6 = vpop.f32.mrf.mxu0  ;;  %v1427_v7 = vpop.f32.mrf.mxu1 }
 0x114   : > { %2464 = vtanh.f32 %v1170_v2 }
 0x115   : > { %2466 = vtanh.f32 %v1426_v3  ;;  %v1174_v8 = vpop.f32.mrf.mxu0  ;;  %1365 = vmatmul.mubr.bf16.gmra.mxu0 %v2422_v0  ;;  %v1430_v9 = vpop.f32.mrf.mxu1  ;;  %1621 = vmatmul.mubr.bf16.gmra.mxu1 %v2423_v1 }
 0x116   : > { %v1175_v10 = vadd.f32 %v2975_v55, %v1174_v8  ;;  %v1431_v11 = vadd.f32 %v2975_v55, %v1430_v9  ;;  %1372 = vmatprep.mubr.bf16.mxu0 %v2424_v4  ;;  %1628 = vmatprep.mubr.bf16.mxu1 %v2426_v5 }
 0x117   : > { %v1176_v12 = vpop.f32.mrf.mxu0  ;;  %v1432_v13 = vpop.f32.mrf.mxu1 }
 0x118   : > { %2468 = vtanh.f32 %v1175_v10  ;;  %v2442_v12 = vld [vmem:[%s2811_s30 + $0x1d0] ss:$8 sps:$4 sm:$0xff]  }
 0x119   : > { %2470 = vtanh.f32 %v1431_v11  ;;  %v1177_v14 = vpop.f32.mrf.mxu0  ;;  %v1433_v15 = vpop.f32.mrf.mxu1  ;;  %v2445_v13 = vld [vmem:[%s2811_s30 + $0x3d0] ss:$8 sps:$4 sm:$0xff]  }
 0x11a   : > { %v1178_v18 = vadd.f32 %v2975_v55, %v1177_v14  ;;  %v1434_v19 = vadd.f32 %v2975_v55, %v1433_v15 }
 0x11b   : > { %v1179_v22 = vpop.f32.mrf.mxu0  ;;  %v1435_v23 = vpop.f32.mrf.mxu1 }
 0x11c   : > { %2472 = vtanh.f32 %v1178_v18  ;;  %v2453_v18 = vld [vmem:[%s2811_s30 + $0x3e4] ss:$8 sps:$4 sm:$0xff]  }
 0x11d   : > { %v2461_v24 = vpop.eup %2460  ;;  %2474 = vtanh.f32 %v1434_v19  ;;  %v1182_v25 = vpop.f32.mrf.mxu0  ;;  %1373 = vmatmul.mubr.bf16.gmra.mxu0 %v2428_v16  ;;  %1629 = vmatmul.mubr.bf16.gmra.mxu1 %v2429_v17  ;;  %v2450_v17 = vld [vmem:[%s2811_s30 + $0x1e4] ss:$8 sps:$4 sm:$0xff]  }
 0x11e   : > { %v1438_v26 = vpop.f32.mrf.mxu1  ;;  %v2463_v27 = vpop.eup %2462  ;;  %1805 = vst [vmem:[%s2998_s9] sm:$0xff] %v2461_v24  ;;  %v1183_v28 = vadd.f32 %v2975_v55, %v1182_v25  ;;  %1380 = vmatprep.mubr.bf16.mxu0 %v2430_v20  ;;  %1636 = vmatprep.mubr.bf16.mxu1 %v2432_v21 }
 0x11f   : > { %v1439_v29 = vadd.f32 %v2975_v55, %v1438_v26  ;;  %1869 = vst [vmem:[%s2998_s9 + $0x200] sm:$0xff] %v2463_v27  ;;  %v1184_v30 = vpop.f32.mrf.mxu0 }
 0x120   : > { %v1440_v31 = vpop.f32.mrf.mxu1  ;;  %2476 = vtanh.f32 %v1183_v28 }
 0x121   : > { %v2465_v32 = vpop.eup %2464  ;;  %2478 = vtanh.f32 %v1439_v29  ;;  %v1185_v33 = vpop.f32.mrf.mxu0 }
 0x122   : > { %v1441_v34 = vpop.f32.mrf.mxu1  ;;  %v2467_v37 = vpop.eup %2466  ;;  %1806 = vst [vmem:[%s2998_s9 + $0x8] sm:$0xff] %v2465_v32  ;;  %v1186_v38 = vadd.f32 %v2975_v55, %v1185_v33  ;;  %v2448_v32 = vld [vmem:[%s2811_s30 + $0x1e0] ss:$8 sps:$4 sm:$0xff]  }
 0x123   : > { %v1442_v39 = vadd.f32 %v2975_v55, %v1441_v34  ;;  %1870 = vst [vmem:[%s2998_s9 + $0x208] sm:$0xff] %v2467_v37  ;;  %v1187_v42 = vpop.f32.mrf.mxu0  ;;  %v2451_v33 = vld [vmem:[%s2811_s30 + $0x3e0] ss:$8 sps:$4 sm:$0xff]   ;;  %v2456_v37 = vld [vmem:[%s2811_s30 + $0x1f4] ss:$8 sps:$4 sm:$0xff]  }
 0x124   : > { %v1443_v43 = vpop.f32.mrf.mxu1  ;;  %2480 = vtanh.f32 %v1186_v38  ;;  %v2459_v38 = vld [vmem:[%s2811_s30 + $0x3f4] ss:$8 sps:$4 sm:$0xff]  }
 0x125   : > { %v2469_v44 = vpop.eup %2468  ;;  %2482 = vtanh.f32 %v1442_v39  ;;  %v1190_v45 = vpop.f32.mrf.mxu0  ;;  %1381 = vmatmul.mubr.bf16.gmra.mxu0 %v2434_v35  ;;  %1637 = vmatmul.mubr.bf16.gmra.mxu1 %v2435_v36 }
 0x126   : > { %v1446_v46 = vpop.f32.mrf.mxu1  ;;  %v2471_v47 = vpop.eup %2470  ;;  %1807 = vst [vmem:[%s2998_s9 + $0x10] sm:$0xff] %v2469_v44  ;;  %v1191_v48 = vadd.f32 %v2975_v55, %v1190_v45  ;;  %1388 = vmatprep.mubr.bf16.mxu0 %v2438_v40  ;;  %1644 = vmatprep.mubr.bf16.mxu1 %v2441_v41 }
 0x127   : > { %v1447_v49 = vadd.f32 %v2975_v55, %v1446_v46  ;;  %1871 = vst [vmem:[%s2998_s9 + $0x210] sm:$0xff] %v2471_v47  ;;  %v1192_v50 = vpop.f32.mrf.mxu0 }
 0x128   : > { %v1448_v51 = vpop.f32.mrf.mxu1  ;;  %2484 = vtanh.f32 %v1191_v48 }
 0x129   : > { %v2473_v52 = vpop.eup %2472  ;;  %2486 = vtanh.f32 %v1447_v49  ;;  %v1193_v53 = vpop.f32.mrf.mxu0 }
 0x12a   : > { %v1449_v54 = vpop.f32.mrf.mxu1  ;;  %v2475_v58 = vpop.eup %2474  ;;  %1808 = vst [vmem:[%s2998_s9 + $0x18] sm:$0xff] %v2473_v52  ;;  %v1194_v59 = vadd.f32 %v2975_v55, %v1193_v53  ;;  %v2454_v52 = vld [vmem:[%s2811_s30 + $0x1f0] ss:$8 sps:$4 sm:$0xff]  }
 0x12b   : > { %v1450_v60 = vadd.f32 %v2975_v55, %v1449_v54  ;;  %1872 = vst [vmem:[%s2998_s9 + $0x218] sm:$0xff] %v2475_v58  ;;  %v1195_v63 = vpop.f32.mrf.mxu0  ;;  %v2457_v53 = vld [vmem:[%s2811_s30 + $0x3f0] ss:$8 sps:$4 sm:$0xff]  }
 0x12c   : > { %v1451_v0 = vpop.f32.mrf.mxu1  ;;  %2488 = vtanh.f32 %v1194_v59 }
 0x12d   : > { %v2477_v1 = vpop.eup %2476  ;;  %2490 = vtanh.f32 %v1450_v60  ;;  %v1198_v2 = vpop.f32.mrf.mxu0  ;;  %1389 = vmatmul.mubr.bf16.gmra.mxu0 %v2436_v56  ;;  %1645 = vmatmul.mubr.bf16.gmra.mxu1 %v2439_v57 }
 0x12e   : > { %v1454_v3 = vpop.f32.mrf.mxu1  ;;  %v2479_v4 = vpop.eup %2478  ;;  %1809 = vst [vmem:[%s2998_s9 + $0x20] sm:$0xff] %v2477_v1  ;;  %v1199_v5 = vadd.f32 %v2975_v55, %v1198_v2  ;;  %1396 = vmatprep.mubr.bf16.mxu0 %v2444_v61  ;;  %1652 = vmatprep.mubr.bf16.mxu1 %v2447_v62 }
 0x12f   : > { %v1455_v6 = vadd.f32 %v2975_v55, %v1454_v3  ;;  %1873 = vst [vmem:[%s2998_s9 + $0x220] sm:$0xff] %v2479_v4  ;;  %v1200_v7 = vpop.f32.mrf.mxu0 }
 0x130   : > { %v1456_v8 = vpop.f32.mrf.mxu1  ;;  %2492 = vtanh.f32 %v1199_v5 }
 0x131   : > { %v2481_v9 = vpop.eup %2480  ;;  %2494 = vtanh.f32 %v1455_v6  ;;  %v1201_v10 = vpop.f32.mrf.mxu0 }
 0x132   : > { %v1457_v11 = vpop.f32.mrf.mxu1  ;;  %v2483_v14 = vpop.eup %2482  ;;  %1810 = vst [vmem:[%s2998_s9 + $0x28] sm:$0xff] %v2481_v9  ;;  %v1202_v15 = vadd.f32 %v2975_v55, %v1201_v10 }
 0x133   : > { %v1458_v16 = vadd.f32 %v2975_v55, %v1457_v11  ;;  %1874 = vst [vmem:[%s2998_s9 + $0x228] sm:$0xff] %v2483_v14  ;;  %v1203_v19 = vpop.f32.mrf.mxu0 }
 0x134   : > { %v1459_v20 = vpop.f32.mrf.mxu1  ;;  %2496 = vtanh.f32 %v1202_v15 }
 0x135   : > { %v2485_v21 = vpop.eup %2484  ;;  %2498 = vtanh.f32 %v1458_v16  ;;  %v1206_v22 = vpop.f32.mrf.mxu0  ;;  %1397 = vmatmul.mubr.bf16.gmra.mxu0 %v2442_v12  ;;  %1653 = vmatmul.mubr.bf16.gmra.mxu1 %v2445_v13 }
 0x136   : > { %v1462_v23 = vpop.f32.mrf.mxu1  ;;  %v2487_v24 = vpop.eup %2486  ;;  %1811 = vst [vmem:[%s2998_s9 + $0x30] sm:$0xff] %v2485_v21  ;;  %v1207_v25 = vadd.f32 %v2975_v55, %v1206_v22  ;;  %1404 = vmatprep.mubr.bf16.mxu0 %v2450_v17  ;;  %1660 = vmatprep.mubr.bf16.mxu1 %v2453_v18 }
 0x137   : > { %v1463_v26 = vadd.f32 %v2975_v55, %v1462_v23  ;;  %1875 = vst [vmem:[%s2998_s9 + $0x230] sm:$0xff] %v2487_v24  ;;  %v1208_v27 = vpop.f32.mrf.mxu0 }
 0x138   : > { %v1464_v28 = vpop.f32.mrf.mxu1  ;;  %2500 = vtanh.f32 %v1207_v25 }
 0x139   : > { %v2489_v29 = vpop.eup %2488  ;;  %2502 = vtanh.f32 %v1463_v26  ;;  %v1209_v30 = vpop.f32.mrf.mxu0 }
 0x13a   : > { %v1465_v31 = vpop.f32.mrf.mxu1  ;;  %v2491_v34 = vpop.eup %2490  ;;  %1812 = vst [vmem:[%s2998_s9 + $0x38] sm:$0xff] %v2489_v29  ;;  %v1210_v35 = vadd.f32 %v2975_v55, %v1209_v30 }
 0x13b   : > { %v1466_v36 = vadd.f32 %v2975_v55, %v1465_v31  ;;  %1876 = vst [vmem:[%s2998_s9 + $0x238] sm:$0xff] %v2491_v34  ;;  %v1211_v39 = vpop.f32.mrf.mxu0 }
 0x13c   : > { %v1467_v40 = vpop.f32.mrf.mxu1  ;;  %2504 = vtanh.f32 %v1210_v35 }
 0x13d   : > { %v2493_v41 = vpop.eup %2492  ;;  %2506 = vtanh.f32 %v1466_v36  ;;  %v1214_v42 = vpop.f32.mrf.mxu0  ;;  %1405 = vmatmul.mubr.bf16.gmra.mxu0 %v2448_v32  ;;  %1661 = vmatmul.mubr.bf16.gmra.mxu1 %v2451_v33 }
 0x13e   : > { %v1470_v43 = vpop.f32.mrf.mxu1  ;;  %v2495_v44 = vpop.eup %2494  ;;  %1813 = vst [vmem:[%s2998_s9 + $0x40] sm:$0xff] %v2493_v41  ;;  %v1215_v45 = vadd.f32 %v2975_v55, %v1214_v42  ;;  %1412 = vmatprep.mubr.bf16.mxu0 %v2456_v37  ;;  %1668 = vmatprep.mubr.bf16.mxu1 %v2459_v38 }
 0x13f   : > { %v1471_v46 = vadd.f32 %v2975_v55, %v1470_v43  ;;  %1877 = vst [vmem:[%s2998_s9 + $0x240] sm:$0xff] %v2495_v44  ;;  %v1216_v47 = vpop.f32.mrf.mxu0 }
 0x140   : > { %v1472_v48 = vpop.f32.mrf.mxu1  ;;  %2508 = vtanh.f32 %v1215_v45 }
 0x141   : > { %v2497_v49 = vpop.eup %2496  ;;  %2510 = vtanh.f32 %v1471_v46  ;;  %v1217_v50 = vpop.f32.mrf.mxu0 }
 0x142   : > { %v1473_v51 = vpop.f32.mrf.mxu1  ;;  %v2499_v54 = vpop.eup %2498  ;;  %1814 = vst [vmem:[%s2998_s9 + $0x48] sm:$0xff] %v2497_v49  ;;  %v1218_v56 = vadd.f32 %v2975_v55, %v1217_v50 }
 0x143   : > { %v1474_v57 = vadd.f32 %v2975_v55, %v1473_v51  ;;  %1878 = vst [vmem:[%s2998_s9 + $0x248] sm:$0xff] %v2499_v54  ;;  %v1219_v58 = vpop.f32.mrf.mxu0 }
 0x144   : > { %v1475_v59 = vpop.f32.mrf.mxu1  ;;  %2512 = vtanh.f32 %v1218_v56 }
 0x145   : > { %v2501_v60 = vpop.eup %2500  ;;  %2514 = vtanh.f32 %v1474_v57  ;;  %v1222_v61 = vpop.f32.mrf.mxu0  ;;  %1413 = vmatmul.mubr.bf16.gmra.mxu0 %v2454_v52  ;;  %1669 = vmatmul.mubr.bf16.gmra.mxu1 %v2457_v53 }
 0x146   : > { %v1478_v62 = vpop.f32.mrf.mxu1  ;;  %v2503_v63 = vpop.eup %2502  ;;  %1815 = vst [vmem:[%s2998_s9 + $0x50] sm:$0xff] %v2501_v60  ;;  %v1223_v0 = vadd.f32 %v2975_v55, %v1222_v61 }
 0x147   : > { %v1479_v1 = vadd.f32 %v2975_v55, %v1478_v62  ;;  %1879 = vst [vmem:[%s2998_s9 + $0x250] sm:$0xff] %v2503_v63  ;;  %v1224_v2 = vpop.f32.mrf.mxu0 }
 0x148   : > { %v1480_v3 = vpop.f32.mrf.mxu1  ;;  %2516 = vtanh.f32 %v1223_v0 }
 0x149   : > { %v2505_v4 = vpop.eup %2504  ;;  %2518 = vtanh.f32 %v1479_v1  ;;  %v1225_v5 = vpop.f32.mrf.mxu0 }
 0x14a   : > { %v1481_v6 = vpop.f32.mrf.mxu1  ;;  %v2507_v7 = vpop.eup %2506  ;;  %1816 = vst [vmem:[%s2998_s9 + $0x58] sm:$0xff] %v2505_v4  ;;  %v1226_v8 = vadd.f32 %v2975_v55, %v1225_v5 }
 0x14b   : > { %v1482_v9 = vadd.f32 %v2975_v55, %v1481_v6  ;;  %1880 = vst [vmem:[%s2998_s9 + $0x258] sm:$0xff] %v2507_v7  ;;  %v1227_v10 = vpop.f32.mrf.mxu0 }
 0x14c   : > { %v1483_v11 = vpop.f32.mrf.mxu1  ;;  %2520 = vtanh.f32 %v1226_v8 }
 0x14d   : > { %v2509_v12 = vpop.eup %2508  ;;  %2522 = vtanh.f32 %v1482_v9  ;;  %v1230_v13 = vpop.f32.mrf.mxu0 }
 0x14e   : > { %v1486_v14 = vpop.f32.mrf.mxu1  ;;  %v2511_v15 = vpop.eup %2510  ;;  %1817 = vst [vmem:[%s2998_s9 + $0x60] sm:$0xff] %v2509_v12  ;;  %v1231_v16 = vadd.f32 %v2975_v55, %v1230_v13 }
 0x14f   : > { %v1487_v17 = vadd.f32 %v2975_v55, %v1486_v14  ;;  %1881 = vst [vmem:[%s2998_s9 + $0x260] sm:$0xff] %v2511_v15  ;;  %v1232_v18 = vpop.f32.mrf.mxu0 }
 0x150   : > { %v1488_v19 = vpop.f32.mrf.mxu1  ;;  %2524 = vtanh.f32 %v1231_v16 }
 0x151   : > { %v2513_v20 = vpop.eup %2512  ;;  %2526 = vtanh.f32 %v1487_v17  ;;  %v1233_v21 = vpop.f32.mrf.mxu0 }
 0x152   : > { %v1489_v22 = vpop.f32.mrf.mxu1  ;;  %v2515_v23 = vpop.eup %2514  ;;  %1818 = vst [vmem:[%s2998_s9 + $0x68] sm:$0xff] %v2513_v20  ;;  %v1234_v24 = vadd.f32 %v2975_v55, %v1233_v21 }
 0x153   : > { %v1490_v25 = vadd.f32 %v2975_v55, %v1489_v22  ;;  %1882 = vst [vmem:[%s2998_s9 + $0x268] sm:$0xff] %v2515_v23  ;;  %v1235_v26 = vpop.f32.mrf.mxu0 }
 0x154   : > { %v1491_v27 = vpop.f32.mrf.mxu1  ;;  %2528 = vtanh.f32 %v1234_v24 }
 0x155   : > { %v2517_v28 = vpop.eup %2516  ;;  %2530 = vtanh.f32 %v1490_v25  ;;  %v1238_v29 = vpop.f32.mrf.mxu0 }
 0x156   : > { %v1494_v30 = vpop.f32.mrf.mxu1  ;;  %v2519_v31 = vpop.eup %2518  ;;  %1819 = vst [vmem:[%s2998_s9 + $0x70] sm:$0xff] %v2517_v28  ;;  %v1239_v32 = vadd.f32 %v2975_v55, %v1238_v29 }
 0x157   : > { %v1495_v33 = vadd.f32 %v2975_v55, %v1494_v30  ;;  %1883 = vst [vmem:[%s2998_s9 + $0x270] sm:$0xff] %v2519_v31  ;;  %v1240_v34 = vpop.f32.mrf.mxu0 }
 0x158   : > { %v1496_v35 = vpop.f32.mrf.mxu1  ;;  %2532 = vtanh.f32 %v1239_v32 }
 0x159   : > { %v2521_v36 = vpop.eup %2520  ;;  %2534 = vtanh.f32 %v1495_v33  ;;  %v1241_v37 = vpop.f32.mrf.mxu0 }
 0x15a   : > { %v1497_v38 = vpop.f32.mrf.mxu1  ;;  %v2523_v39 = vpop.eup %2522  ;;  %1820 = vst [vmem:[%s2998_s9 + $0x78] sm:$0xff] %v2521_v36  ;;  %v1242_v40 = vadd.f32 %v2975_v55, %v1241_v37 }
 0x15b   : > { %v1498_v41 = vadd.f32 %v2975_v55, %v1497_v38  ;;  %1884 = vst [vmem:[%s2998_s9 + $0x278] sm:$0xff] %v2523_v39  ;;  %v1243_v42 = vpop.f32.mrf.mxu0 }
 0x15c   : > { %v1499_v43 = vpop.f32.mrf.mxu1  ;;  %2536 = vtanh.f32 %v1242_v40 }
 0x15d   : > { %v2525_v44 = vpop.eup %2524  ;;  %2538 = vtanh.f32 %v1498_v41  ;;  %v1246_v45 = vpop.f32.mrf.mxu0 }
 0x15e   : > { %v1502_v46 = vpop.f32.mrf.mxu1  ;;  %v2527_v47 = vpop.eup %2526  ;;  %1821 = vst [vmem:[%s2998_s9 + $0x80] sm:$0xff] %v2525_v44  ;;  %v1247_v48 = vadd.f32 %v2975_v55, %v1246_v45 }
 0x15f   : > { %v1503_v49 = vadd.f32 %v2975_v55, %v1502_v46  ;;  %1885 = vst [vmem:[%s2998_s9 + $0x280] sm:$0xff] %v2527_v47  ;;  %v1248_v50 = vpop.f32.mrf.mxu0 }
 0x160   : > { %v1504_v51 = vpop.f32.mrf.mxu1  ;;  %2540 = vtanh.f32 %v1247_v48 }
 0x161   : > { %v2529_v52 = vpop.eup %2528  ;;  %2542 = vtanh.f32 %v1503_v49  ;;  %v1249_v53 = vpop.f32.mrf.mxu0 }
 0x162   : > { %v1505_v54 = vpop.f32.mrf.mxu1  ;;  %v2531_v56 = vpop.eup %2530  ;;  %1822 = vst [vmem:[%s2998_s9 + $0x88] sm:$0xff] %v2529_v52  ;;  %v1250_v57 = vadd.f32 %v2975_v55, %v1249_v53 }
 0x163   : > { %v1506_v58 = vadd.f32 %v2975_v55, %v1505_v54  ;;  %1886 = vst [vmem:[%s2998_s9 + $0x288] sm:$0xff] %v2531_v56  ;;  %v1251_v59 = vpop.f32.mrf.mxu0 }
 0x164   : > { %v1507_v60 = vpop.f32.mrf.mxu1  ;;  %2544 = vtanh.f32 %v1250_v57 }
 0x165   : > { %v2533_v61 = vpop.eup %2532  ;;  %2546 = vtanh.f32 %v1506_v58  ;;  %v1254_v62 = vpop.f32.mrf.mxu0 }
 0x166   : > { %v1510_v63 = vpop.f32.mrf.mxu1  ;;  %v2535_v0 = vpop.eup %2534  ;;  %1823 = vst [vmem:[%s2998_s9 + $0x90] sm:$0xff] %v2533_v61  ;;  %v1255_v1 = vadd.f32 %v2975_v55, %v1254_v62 }
 0x167   : > { %v1511_v2 = vadd.f32 %v2975_v55, %v1510_v63  ;;  %1887 = vst [vmem:[%s2998_s9 + $0x290] sm:$0xff] %v2535_v0  ;;  %v1256_v3 = vpop.f32.mrf.mxu0 }
 0x168   : > { %v1512_v4 = vpop.f32.mrf.mxu1  ;;  %2548 = vtanh.f32 %v1255_v1 }
 0x169   : > { %v2537_v5 = vpop.eup %2536  ;;  %2550 = vtanh.f32 %v1511_v2  ;;  %v1257_v6 = vpop.f32.mrf.mxu0 }
 0x16a   : > { %v1513_v7 = vpop.f32.mrf.mxu1  ;;  %v2539_v8 = vpop.eup %2538  ;;  %1824 = vst [vmem:[%s2998_s9 + $0x98] sm:$0xff] %v2537_v5  ;;  %v1258_v9 = vadd.f32 %v2975_v55, %v1257_v6 }
 0x16b   : > { %v1514_v10 = vadd.f32 %v2975_v55, %v1513_v7  ;;  %1888 = vst [vmem:[%s2998_s9 + $0x298] sm:$0xff] %v2539_v8  ;;  %v1259_v11 = vpop.f32.mrf.mxu0 }
 0x16c   : > { %v1515_v12 = vpop.f32.mrf.mxu1  ;;  %2552 = vtanh.f32 %v1258_v9 }
 0x16d   : > { %v2541_v13 = vpop.eup %2540  ;;  %2554 = vtanh.f32 %v1514_v10  ;;  %v1262_v14 = vpop.f32.mrf.mxu0 }
 0x16e   : > { %v1518_v15 = vpop.f32.mrf.mxu1  ;;  %v2543_v16 = vpop.eup %2542  ;;  %1825 = vst [vmem:[%s2998_s9 + $0xa0] sm:$0xff] %v2541_v13  ;;  %v1263_v17 = vadd.f32 %v2975_v55, %v1262_v14 }
 0x16f   : > { %v1519_v18 = vadd.f32 %v2975_v55, %v1518_v15  ;;  %1889 = vst [vmem:[%s2998_s9 + $0x2a0] sm:$0xff] %v2543_v16  ;;  %v1264_v19 = vpop.f32.mrf.mxu0 }
 0x170   : > { %v1520_v20 = vpop.f32.mrf.mxu1  ;;  %2556 = vtanh.f32 %v1263_v17 }
 0x171   : > { %v2545_v21 = vpop.eup %2544  ;;  %2558 = vtanh.f32 %v1519_v18  ;;  %v1265_v22 = vpop.f32.mrf.mxu0 }
 0x172   : > { %v1521_v23 = vpop.f32.mrf.mxu1  ;;  %v2547_v24 = vpop.eup %2546  ;;  %1826 = vst [vmem:[%s2998_s9 + $0xa8] sm:$0xff] %v2545_v21  ;;  %v1266_v25 = vadd.f32 %v2975_v55, %v1265_v22 }
 0x173   : > { %v1522_v26 = vadd.f32 %v2975_v55, %v1521_v23  ;;  %1890 = vst [vmem:[%s2998_s9 + $0x2a8] sm:$0xff] %v2547_v24  ;;  %v1267_v27 = vpop.f32.mrf.mxu0 }
 0x174   : > { %v1523_v28 = vpop.f32.mrf.mxu1  ;;  %2560 = vtanh.f32 %v1266_v25 }
 0x175   : > { %v2549_v29 = vpop.eup %2548  ;;  %2562 = vtanh.f32 %v1522_v26  ;;  %v1270_v30 = vpop.f32.mrf.mxu0 }
 0x176   : > { %v1526_v31 = vpop.f32.mrf.mxu1  ;;  %v2551_v32 = vpop.eup %2550  ;;  %1827 = vst [vmem:[%s2998_s9 + $0xb0] sm:$0xff] %v2549_v29  ;;  %v1271_v33 = vadd.f32 %v2975_v55, %v1270_v30 }
 0x177   : > { %v1527_v34 = vadd.f32 %v2975_v55, %v1526_v31  ;;  %1891 = vst [vmem:[%s2998_s9 + $0x2b0] sm:$0xff] %v2551_v32  ;;  %v1272_v35 = vpop.f32.mrf.mxu0 }
 0x178   : > { %v1528_v36 = vpop.f32.mrf.mxu1  ;;  %2564 = vtanh.f32 %v1271_v33 }
 0x179   : > { %v2553_v37 = vpop.eup %2552  ;;  %2566 = vtanh.f32 %v1527_v34  ;;  %v1273_v38 = vpop.f32.mrf.mxu0 }
 0x17a   : > { %v1529_v39 = vpop.f32.mrf.mxu1  ;;  %v2555_v40 = vpop.eup %2554  ;;  %1828 = vst [vmem:[%s2998_s9 + $0xb8] sm:$0xff] %v2553_v37  ;;  %v1274_v41 = vadd.f32 %v2975_v55, %v1273_v38 }
 0x17b   : > { %v1530_v42 = vadd.f32 %v2975_v55, %v1529_v39  ;;  %1892 = vst [vmem:[%s2998_s9 + $0x2b8] sm:$0xff] %v2555_v40  ;;  %v1275_v43 = vpop.f32.mrf.mxu0 }
 0x17c   : > { %v1531_v44 = vpop.f32.mrf.mxu1  ;;  %2568 = vtanh.f32 %v1274_v41 }
 0x17d   : > { %v2557_v45 = vpop.eup %2556  ;;  %2570 = vtanh.f32 %v1530_v42  ;;  %v1278_v46 = vpop.f32.mrf.mxu0 }
 0x17e   : > { %v1534_v47 = vpop.f32.mrf.mxu1  ;;  %v2559_v48 = vpop.eup %2558  ;;  %1829 = vst [vmem:[%s2998_s9 + $0xc0] sm:$0xff] %v2557_v45  ;;  %v1279_v49 = vadd.f32 %v2975_v55, %v1278_v46 }
 0x17f   : > { %v1535_v50 = vadd.f32 %v2975_v55, %v1534_v47  ;;  %1893 = vst [vmem:[%s2998_s9 + $0x2c0] sm:$0xff] %v2559_v48  ;;  %v1280_v51 = vpop.f32.mrf.mxu0 }
 0x180   : > { %v1536_v52 = vpop.f32.mrf.mxu1  ;;  %2572 = vtanh.f32 %v1279_v49 }
 0x181   : > { %v2561_v53 = vpop.eup %2560  ;;  %2574 = vtanh.f32 %v1535_v50  ;;  %v1281_v54 = vpop.f32.mrf.mxu0 }
 0x182   : > { %v1537_v56 = vpop.f32.mrf.mxu1  ;;  %v2563_v57 = vpop.eup %2562  ;;  %1830 = vst [vmem:[%s2998_s9 + $0xc8] sm:$0xff] %v2561_v53  ;;  %v1282_v58 = vadd.f32 %v2975_v55, %v1281_v54 }
 0x183   : > { %v1538_v59 = vadd.f32 %v2975_v55, %v1537_v56  ;;  %1894 = vst [vmem:[%s2998_s9 + $0x2c8] sm:$0xff] %v2563_v57  ;;  %v1283_v60 = vpop.f32.mrf.mxu0 }
 0x184   : > { %v1539_v61 = vpop.f32.mrf.mxu1  ;;  %2576 = vtanh.f32 %v1282_v58 }
 0x185   : > { %v2565_v62 = vpop.eup %2564  ;;  %2578 = vtanh.f32 %v1538_v59  ;;  %v1286_v63 = vpop.f32.mrf.mxu0 }
 0x186   : > { %v1542_v0 = vpop.f32.mrf.mxu1  ;;  %v2567_v1 = vpop.eup %2566  ;;  %1831 = vst [vmem:[%s2998_s9 + $0xd0] sm:$0xff] %v2565_v62  ;;  %v1287_v2 = vadd.f32 %v2975_v55, %v1286_v63 }
 0x187   : > { %v1543_v3 = vadd.f32 %v2975_v55, %v1542_v0  ;;  %1895 = vst [vmem:[%s2998_s9 + $0x2d0] sm:$0xff] %v2567_v1  ;;  %v1288_v4 = vpop.f32.mrf.mxu0 }
 0x188   : > { %v1544_v5 = vpop.f32.mrf.mxu1  ;;  %2580 = vtanh.f32 %v1287_v2 }
 0x189   : > { %v2569_v6 = vpop.eup %2568  ;;  %2582 = vtanh.f32 %v1543_v3  ;;  %v1289_v7 = vpop.f32.mrf.mxu0 }
 0x18a   : > { %v1545_v8 = vpop.f32.mrf.mxu1  ;;  %v2571_v9 = vpop.eup %2570  ;;  %1832 = vst [vmem:[%s2998_s9 + $0xd8] sm:$0xff] %v2569_v6  ;;  %v1290_v10 = vadd.f32 %v2975_v55, %v1289_v7 }
 0x18b   : > { %v1546_v11 = vadd.f32 %v2975_v55, %v1545_v8  ;;  %1896 = vst [vmem:[%s2998_s9 + $0x2d8] sm:$0xff] %v2571_v9  ;;  %v1291_v12 = vpop.f32.mrf.mxu0 }
 0x18c   : > { %v1547_v13 = vpop.f32.mrf.mxu1  ;;  %2584 = vtanh.f32 %v1290_v10 }
 0x18d   : > { %v2573_v14 = vpop.eup %2572  ;;  %2586 = vtanh.f32 %v1546_v11  ;;  %v1294_v15 = vpop.f32.mrf.mxu0  ;;  %v3162_v11 = vld [vmem:[%s3282_s2] ss:$0 sm:$0xff] }
 0x18e   : > { %v1550_v16 = vpop.f32.mrf.mxu1  ;;  %v2575_v17 = vpop.eup %2574  ;;  %1833 = vst [vmem:[%s2998_s9 + $0xe0] sm:$0xff] %v2573_v14  ;;  %v1295_v18 = vadd.f32 %v2975_v55, %v1294_v15 }
 0x18f   : > { %v1551_v19 = vadd.f32 %v2975_v55, %v1550_v16  ;;  %1897 = vst [vmem:[%s2998_s9 + $0x2e0] sm:$0xff] %v2575_v17  ;;  %v1296_v20 = vpop.f32.mrf.mxu0 }
 0x190   : > { %v1552_v21 = vpop.f32.mrf.mxu1  ;;  %2588 = vtanh.f32 %v1295_v18 }
 0x191   : > { %v2577_v22 = vpop.eup %2576  ;;  %2590 = vtanh.f32 %v1551_v19  ;;  %v1297_v23 = vpop.f32.mrf.mxu0 }
 0x192   : > { %v1553_v24 = vpop.f32.mrf.mxu1  ;;  %v2579_v25 = vpop.eup %2578  ;;  %1834 = vst [vmem:[%s2998_s9 + $0xe8] sm:$0xff] %v2577_v22  ;;  %v1298_v26 = vadd.f32 %v2975_v55, %v1297_v23 }
 0x193   : > { %v1554_v27 = vadd.f32 %v2975_v55, %v1553_v24  ;;  %1898 = vst [vmem:[%s2998_s9 + $0x2e8] sm:$0xff] %v2579_v25  ;;  %v1299_v28 = vpop.f32.mrf.mxu0 }
 0x194   : > { %v1555_v29 = vpop.f32.mrf.mxu1  ;;  %2592 = vtanh.f32 %v1298_v26 }
 0x195   : > { %v2581_v30 = vpop.eup %2580  ;;  %2594 = vtanh.f32 %v1554_v27  ;;  %v1302_v31 = vpop.f32.mrf.mxu0 }
 0x196   : > { %v1558_v32 = vpop.f32.mrf.mxu1  ;;  %v2583_v33 = vpop.eup %2582  ;;  %1835 = vst [vmem:[%s2998_s9 + $0xf0] sm:$0xff] %v2581_v30  ;;  %v1303_v34 = vadd.f32 %v2975_v55, %v1302_v31 }
 0x197   : > { %v1559_v35 = vadd.f32 %v2975_v55, %v1558_v32  ;;  %1899 = vst [vmem:[%s2998_s9 + $0x2f0] sm:$0xff] %v2583_v33  ;;  %v1304_v36 = vpop.f32.mrf.mxu0 }
 0x198   : > { %v1560_v37 = vpop.f32.mrf.mxu1  ;;  %2596 = vtanh.f32 %v1303_v34 }
 0x199   : > { %v2585_v38 = vpop.eup %2584  ;;  %2598 = vtanh.f32 %v1559_v35  ;;  %v1305_v39 = vpop.f32.mrf.mxu0 }
 0x19a   : > { %v1561_v40 = vpop.f32.mrf.mxu1  ;;  %v2587_v41 = vpop.eup %2586  ;;  %1836 = vst [vmem:[%s2998_s9 + $0xf8] sm:$0xff] %v2585_v38  ;;  %v1306_v42 = vadd.f32 %v2975_v55, %v1305_v39 }
 0x19b   : > { %v1562_v43 = vadd.f32 %v2975_v55, %v1561_v40  ;;  %1900 = vst [vmem:[%s2998_s9 + $0x2f8] sm:$0xff] %v2587_v41  ;;  %v1307_v44 = vpop.f32.mrf.mxu0 }
 0x19c   : > { %v1563_v45 = vpop.f32.mrf.mxu1  ;;  %2600 = vtanh.f32 %v1306_v42 }
 0x19d   : > { %v2589_v46 = vpop.eup %2588  ;;  %2602 = vtanh.f32 %v1562_v43  ;;  %v1310_v47 = vpop.f32.mrf.mxu0 }
 0x19e   : > { %v1566_v48 = vpop.f32.mrf.mxu1  ;;  %v2591_v49 = vpop.eup %2590  ;;  %1837 = vst [vmem:[%s2998_s9 + $0x100] sm:$0xff] %v2589_v46  ;;  %v1311_v50 = vadd.f32 %v2975_v55, %v1310_v47 }
 0x19f   : > { %v1567_v51 = vadd.f32 %v2975_v55, %v1566_v48  ;;  %1901 = vst [vmem:[%s2998_s9 + $0x300] sm:$0xff] %v2591_v49  ;;  %v1312_v52 = vpop.f32.mrf.mxu0 }
 0x1a0   : > { %v1568_v53 = vpop.f32.mrf.mxu1  ;;  %2604 = vtanh.f32 %v1311_v50 }
 0x1a1   : > { %v2593_v54 = vpop.eup %2592  ;;  %2606 = vtanh.f32 %v1567_v51  ;;  %v1313_v56 = vpop.f32.mrf.mxu0 }
 0x1a2   : > { %v1569_v57 = vpop.f32.mrf.mxu1  ;;  %v2595_v58 = vpop.eup %2594  ;;  %1838 = vst [vmem:[%s2998_s9 + $0x108] sm:$0xff] %v2593_v54  ;;  %v1314_v59 = vadd.f32 %v2975_v55, %v1313_v56 }
 0x1a3   : > { %v1570_v60 = vadd.f32 %v2975_v55, %v1569_v57  ;;  %1902 = vst [vmem:[%s2998_s9 + $0x308] sm:$0xff] %v2595_v58  ;;  %v1315_v61 = vpop.f32.mrf.mxu0 }
 0x1a4   : > { %v1571_v62 = vpop.f32.mrf.mxu1  ;;  %2608 = vtanh.f32 %v1314_v59 }
 0x1a5   : > { %v2597_v63 = vpop.eup %2596  ;;  %2610 = vtanh.f32 %v1570_v60  ;;  %v1318_v0 = vpop.f32.mrf.mxu0 }
 0x1a6   : > { %v1574_v1 = vpop.f32.mrf.mxu1  ;;  %v2599_v2 = vpop.eup %2598  ;;  %1839 = vst [vmem:[%s2998_s9 + $0x110] sm:$0xff] %v2597_v63  ;;  %v1319_v3 = vadd.f32 %v2975_v55, %v1318_v0 }
 0x1a7   : > { %v1575_v4 = vadd.f32 %v2975_v55, %v1574_v1  ;;  %1903 = vst [vmem:[%s2998_s9 + $0x310] sm:$0xff] %v2599_v2  ;;  %v1320_v5 = vpop.f32.mrf.mxu0 }
 0x1a8   : > { %v1576_v6 = vpop.f32.mrf.mxu1  ;;  %2612 = vtanh.f32 %v1319_v3 }
 0x1a9   : > { %v2601_v7 = vpop.eup %2600  ;;  %2614 = vtanh.f32 %v1575_v4  ;;  %v1321_v8 = vpop.f32.mrf.mxu0 }
 0x1aa   : > { %v1577_v9 = vpop.f32.mrf.mxu1  ;;  %v2603_v10 = vpop.eup %2602  ;;  %1840 = vst [vmem:[%s2998_s9 + $0x118] sm:$0xff] %v2601_v7  ;;  %v1322_v12 = vadd.f32 %v3162_v11, %v1321_v8 }
 0x1ab   : > { %v1578_v55 = vadd.f32 %v3162_v11, %v1577_v9  ;;  %1904 = vst [vmem:[%s2998_s9 + $0x318] sm:$0xff] %v2603_v10  ;;  %v1323_v13 = vpop.f32.mrf.mxu0 }
 0x1ac   : > { %v1579_v14 = vpop.f32.mrf.mxu1  ;;  %2616 = vtanh.f32 %v1322_v12 }
 0x1ad   : > { %v2605_v15 = vpop.eup %2604  ;;  %2618 = vtanh.f32 %v1578_v55  ;;  %v1326_v16 = vpop.f32.mrf.mxu0 }
 0x1ae   : > { %v1582_v17 = vpop.f32.mrf.mxu1  ;;  %v2607_v18 = vpop.eup %2606  ;;  %1841 = vst [vmem:[%s2998_s9 + $0x120] sm:$0xff] %v2605_v15  ;;  %v1327_v19 = vadd.f32 %v3162_v11, %v1326_v16 }
 0x1af   : > { %v1583_v20 = vadd.f32 %v3162_v11, %v1582_v17  ;;  %1905 = vst [vmem:[%s2998_s9 + $0x320] sm:$0xff] %v2607_v18  ;;  %v1328_v21 = vpop.f32.mrf.mxu0 }
 0x1b0   : > { %v1584_v22 = vpop.f32.mrf.mxu1  ;;  %2620 = vtanh.f32 %v1327_v19 }
 0x1b1   : > { %v2609_v23 = vpop.eup %2608  ;;  %2622 = vtanh.f32 %v1583_v20  ;;  %v1329_v24 = vpop.f32.mrf.mxu0 }
 0x1b2   : > { %v1585_v25 = vpop.f32.mrf.mxu1  ;;  %v2611_v26 = vpop.eup %2610  ;;  %1842 = vst [vmem:[%s2998_s9 + $0x128] sm:$0xff] %v2609_v23  ;;  %v1330_v27 = vadd.f32 %v3162_v11, %v1329_v24 }
 0x1b3   : > { %v1586_v28 = vadd.f32 %v3162_v11, %v1585_v25  ;;  %1906 = vst [vmem:[%s2998_s9 + $0x328] sm:$0xff] %v2611_v26  ;;  %v1331_v29 = vpop.f32.mrf.mxu0 }
 0x1b4   : > { %v1587_v30 = vpop.f32.mrf.mxu1  ;;  %2624 = vtanh.f32 %v1330_v27 }
 0x1b5   : > { %v2613_v31 = vpop.eup %2612  ;;  %2626 = vtanh.f32 %v1586_v28  ;;  %v1334_v32 = vpop.f32.mrf.mxu0 }
 0x1b6   : > { %v1590_v33 = vpop.f32.mrf.mxu1  ;;  %v2615_v34 = vpop.eup %2614  ;;  %1843 = vst [vmem:[%s2998_s9 + $0x130] sm:$0xff] %v2613_v31  ;;  %v1335_v35 = vadd.f32 %v3162_v11, %v1334_v32 }
 0x1b7   : > { %v1591_v36 = vadd.f32 %v3162_v11, %v1590_v33  ;;  %1907 = vst [vmem:[%s2998_s9 + $0x330] sm:$0xff] %v2615_v34  ;;  %v1336_v37 = vpop.f32.mrf.mxu0 }
 0x1b8   : > { %v1592_v38 = vpop.f32.mrf.mxu1  ;;  %2628 = vtanh.f32 %v1335_v35 }
 0x1b9   : > { %v2617_v39 = vpop.eup %2616  ;;  %2630 = vtanh.f32 %v1591_v36  ;;  %v1337_v40 = vpop.f32.mrf.mxu0 }
 0x1ba   : > { %v1593_v41 = vpop.f32.mrf.mxu1  ;;  %v2619_v42 = vpop.eup %2618  ;;  %1844 = vst [vmem:[%s2998_s9 + $0x138] sm:$0xff] %v2617_v39  ;;  %v1338_v43 = vadd.f32 %v3162_v11, %v1337_v40 }
 0x1bb   : > { %v1594_v44 = vadd.f32 %v3162_v11, %v1593_v41  ;;  %1908 = vst [vmem:[%s2998_s9 + $0x338] sm:$0xff] %v2619_v42  ;;  %v1339_v45 = vpop.f32.mrf.mxu0 }
 0x1bc   : > { %v1595_v46 = vpop.f32.mrf.mxu1  ;;  %2632 = vtanh.f32 %v1338_v43 }
 0x1bd   : > { %v2621_v47 = vpop.eup %2620  ;;  %2634 = vtanh.f32 %v1594_v44  ;;  %v1342_v48 = vpop.f32.mrf.mxu0 }
 0x1be   : > { %v1598_v49 = vpop.f32.mrf.mxu1  ;;  %v2623_v50 = vpop.eup %2622  ;;  %1845 = vst [vmem:[%s2998_s9 + $0x140] sm:$0xff] %v2621_v47  ;;  %v1343_v51 = vadd.f32 %v3162_v11, %v1342_v48 }
 0x1bf   : > { %v1599_v52 = vadd.f32 %v3162_v11, %v1598_v49  ;;  %1909 = vst [vmem:[%s2998_s9 + $0x340] sm:$0xff] %v2623_v50  ;;  %v1344_v53 = vpop.f32.mrf.mxu0 }
 0x1c0   : > { %v1600_v54 = vpop.f32.mrf.mxu1  ;;  %2636 = vtanh.f32 %v1343_v51 }
 0x1c1   : > { %v2625_v56 = vpop.eup %2624  ;;  %2638 = vtanh.f32 %v1599_v52  ;;  %v1345_v57 = vpop.f32.mrf.mxu0 }
 0x1c2   : > { %v1601_v58 = vpop.f32.mrf.mxu1  ;;  %v2627_v59 = vpop.eup %2626  ;;  %1846 = vst [vmem:[%s2998_s9 + $0x148] sm:$0xff] %v2625_v56  ;;  %v1346_v60 = vadd.f32 %v3162_v11, %v1345_v57 }
 0x1c3   : > { %v1602_v61 = vadd.f32 %v3162_v11, %v1601_v58  ;;  %1910 = vst [vmem:[%s2998_s9 + $0x348] sm:$0xff] %v2627_v59  ;;  %v1347_v62 = vpop.f32.mrf.mxu0 }
 0x1c4   : > { %v1603_v63 = vpop.f32.mrf.mxu1  ;;  %2640 = vtanh.f32 %v1346_v60 }
 0x1c5   : > { %v2629_v0 = vpop.eup %2628  ;;  %2642 = vtanh.f32 %v1602_v61  ;;  %v1350_v1 = vpop.f32.mrf.mxu0 }
 0x1c6   : > { %v1606_v2 = vpop.f32.mrf.mxu1  ;;  %v2631_v3 = vpop.eup %2630  ;;  %1847 = vst [vmem:[%s2998_s9 + $0x150] sm:$0xff] %v2629_v0  ;;  %v1351_v4 = vadd.f32 %v3162_v11, %v1350_v1 }
 0x1c7   : > { %v1607_v5 = vadd.f32 %v3162_v11, %v1606_v2  ;;  %1911 = vst [vmem:[%s2998_s9 + $0x350] sm:$0xff] %v2631_v3  ;;  %v1352_v6 = vpop.f32.mrf.mxu0 }
 0x1c8   : > { %v1608_v7 = vpop.f32.mrf.mxu1  ;;  %2644 = vtanh.f32 %v1351_v4 }
 0x1c9   : > { %v2633_v8 = vpop.eup %2632  ;;  %2646 = vtanh.f32 %v1607_v5  ;;  %v1353_v9 = vpop.f32.mrf.mxu0 }
 0x1ca   : > { %v1609_v10 = vpop.f32.mrf.mxu1  ;;  %v2635_v12 = vpop.eup %2634  ;;  %1848 = vst [vmem:[%s2998_s9 + $0x158] sm:$0xff] %v2633_v8  ;;  %v1354_v55 = vadd.f32 %v3162_v11, %v1353_v9 }
 0x1cb   : > { %v1610_v13 = vadd.f32 %v3162_v11, %v1609_v10  ;;  %1912 = vst [vmem:[%s2998_s9 + $0x358] sm:$0xff] %v2635_v12  ;;  %v1355_v14 = vpop.f32.mrf.mxu0 }
 0x1cc   : > { %v1611_v15 = vpop.f32.mrf.mxu1  ;;  %2648 = vtanh.f32 %v1354_v55 }
 0x1cd   : > { %v2637_v16 = vpop.eup %2636  ;;  %2650 = vtanh.f32 %v1610_v13  ;;  %v1358_v17 = vpop.f32.mrf.mxu0 }
 0x1ce   : > { %v1614_v18 = vpop.f32.mrf.mxu1  ;;  %v2639_v19 = vpop.eup %2638  ;;  %1849 = vst [vmem:[%s2998_s9 + $0x160] sm:$0xff] %v2637_v16  ;;  %v1359_v20 = vadd.f32 %v3162_v11, %v1358_v17 }
 0x1cf   : > { %v1615_v21 = vadd.f32 %v3162_v11, %v1614_v18  ;;  %1913 = vst [vmem:[%s2998_s9 + $0x360] sm:$0xff] %v2639_v19  ;;  %v1360_v22 = vpop.f32.mrf.mxu0 }
 0x1d0   : > { %v1616_v23 = vpop.f32.mrf.mxu1  ;;  %2652 = vtanh.f32 %v1359_v20 }
 0x1d1   : > { %v2641_v24 = vpop.eup %2640  ;;  %2654 = vtanh.f32 %v1615_v21  ;;  %v1361_v25 = vpop.f32.mrf.mxu0 }
 0x1d2   : > { %v1617_v26 = vpop.f32.mrf.mxu1  ;;  %v2643_v27 = vpop.eup %2642  ;;  %1850 = vst [vmem:[%s2998_s9 + $0x168] sm:$0xff] %v2641_v24  ;;  %v1362_v28 = vadd.f32 %v3162_v11, %v1361_v25 }
 0x1d3   : > { %v1618_v29 = vadd.f32 %v3162_v11, %v1617_v26  ;;  %1914 = vst [vmem:[%s2998_s9 + $0x368] sm:$0xff] %v2643_v27  ;;  %v1363_v30 = vpop.f32.mrf.mxu0 }
 0x1d4   : > { %v1619_v31 = vpop.f32.mrf.mxu1  ;;  %2656 = vtanh.f32 %v1362_v28 }
 0x1d5   : > { %v2645_v32 = vpop.eup %2644  ;;  %2658 = vtanh.f32 %v1618_v29  ;;  %v1366_v33 = vpop.f32.mrf.mxu0 }
 0x1d6   : > { %v1622_v34 = vpop.f32.mrf.mxu1  ;;  %v2647_v35 = vpop.eup %2646  ;;  %1851 = vst [vmem:[%s2998_s9 + $0x170] sm:$0xff] %v2645_v32  ;;  %v1367_v36 = vadd.f32 %v3162_v11, %v1366_v33 }
 0x1d7   : > { %v1623_v37 = vadd.f32 %v3162_v11, %v1622_v34  ;;  %1915 = vst [vmem:[%s2998_s9 + $0x370] sm:$0xff] %v2647_v35  ;;  %v1368_v38 = vpop.f32.mrf.mxu0 }
 0x1d8   : > { %v1624_v39 = vpop.f32.mrf.mxu1  ;;  %2660 = vtanh.f32 %v1367_v36 }
 0x1d9   : > { %v2649_v40 = vpop.eup %2648  ;;  %2662 = vtanh.f32 %v1623_v37  ;;  %v1369_v41 = vpop.f32.mrf.mxu0 }
 0x1da   : > { %v1625_v42 = vpop.f32.mrf.mxu1  ;;  %v2651_v43 = vpop.eup %2650  ;;  %1852 = vst [vmem:[%s2998_s9 + $0x178] sm:$0xff] %v2649_v40  ;;  %v1370_v44 = vadd.f32 %v3162_v11, %v1369_v41 }
 0x1db   : > { %v1626_v45 = vadd.f32 %v3162_v11, %v1625_v42  ;;  %1916 = vst [vmem:[%s2998_s9 + $0x378] sm:$0xff] %v2651_v43  ;;  %v1371_v46 = vpop.f32.mrf.mxu0 }
 0x1dc   : > { %v1627_v47 = vpop.f32.mrf.mxu1  ;;  %2664 = vtanh.f32 %v1370_v44 }
 0x1dd   : > { %v2653_v48 = vpop.eup %2652  ;;  %2666 = vtanh.f32 %v1626_v45  ;;  %v1374_v49 = vpop.f32.mrf.mxu0 }
 0x1de   : > { %v1630_v50 = vpop.f32.mrf.mxu1  ;;  %v2655_v51 = vpop.eup %2654  ;;  %1853 = vst [vmem:[%s2998_s9 + $0x180] sm:$0xff] %v2653_v48  ;;  %v1375_v52 = vadd.f32 %v3162_v11, %v1374_v49 }
 0x1df   : > { %v1631_v53 = vadd.f32 %v3162_v11, %v1630_v50  ;;  %1917 = vst [vmem:[%s2998_s9 + $0x380] sm:$0xff] %v2655_v51  ;;  %v1376_v54 = vpop.f32.mrf.mxu0 }
 0x1e0   : > { %v1632_v56 = vpop.f32.mrf.mxu1  ;;  %2668 = vtanh.f32 %v1375_v52 }
 0x1e1   : > { %v2657_v57 = vpop.eup %2656  ;;  %2670 = vtanh.f32 %v1631_v53  ;;  %v1377_v58 = vpop.f32.mrf.mxu0 }
 0x1e2   : > { %v1633_v59 = vpop.f32.mrf.mxu1  ;;  %v2659_v60 = vpop.eup %2658  ;;  %1854 = vst [vmem:[%s2998_s9 + $0x188] sm:$0xff] %v2657_v57  ;;  %v1378_v61 = vadd.f32 %v3162_v11, %v1377_v58 }
 0x1e3   : > { %v1634_v62 = vadd.f32 %v3162_v11, %v1633_v59  ;;  %1918 = vst [vmem:[%s2998_s9 + $0x388] sm:$0xff] %v2659_v60  ;;  %v1379_v63 = vpop.f32.mrf.mxu0 }
 0x1e4   : > { %v1635_v0 = vpop.f32.mrf.mxu1  ;;  %2672 = vtanh.f32 %v1378_v61 }
 0x1e5   : > { %v2661_v1 = vpop.eup %2660  ;;  %2674 = vtanh.f32 %v1634_v62  ;;  %v1382_v2 = vpop.f32.mrf.mxu0 }
 0x1e6   : > { %v1638_v3 = vpop.f32.mrf.mxu1  ;;  %v2663_v4 = vpop.eup %2662  ;;  %1855 = vst [vmem:[%s2998_s9 + $0x190] sm:$0xff] %v2661_v1  ;;  %v1383_v5 = vadd.f32 %v3162_v11, %v1382_v2 }
 0x1e7   : > { %v1639_v6 = vadd.f32 %v3162_v11, %v1638_v3  ;;  %1919 = vst [vmem:[%s2998_s9 + $0x390] sm:$0xff] %v2663_v4  ;;  %v1384_v7 = vpop.f32.mrf.mxu0 }
 0x1e8   : > { %v1640_v8 = vpop.f32.mrf.mxu1  ;;  %2676 = vtanh.f32 %v1383_v5 }
 0x1e9   : > { %v2665_v9 = vpop.eup %2664  ;;  %2678 = vtanh.f32 %v1639_v6  ;;  %v1385_v10 = vpop.f32.mrf.mxu0 }
 0x1ea   : > { %v1641_v12 = vpop.f32.mrf.mxu1  ;;  %v2667_v55 = vpop.eup %2666  ;;  %1856 = vst [vmem:[%s2998_s9 + $0x198] sm:$0xff] %v2665_v9  ;;  %v1386_v13 = vadd.f32 %v3162_v11, %v1385_v10 }
 0x1eb   : > { %v1642_v14 = vadd.f32 %v3162_v11, %v1641_v12  ;;  %1920 = vst [vmem:[%s2998_s9 + $0x398] sm:$0xff] %v2667_v55  ;;  %v1387_v15 = vpop.f32.mrf.mxu0 }
 0x1ec   : > { %v1643_v16 = vpop.f32.mrf.mxu1  ;;  %2680 = vtanh.f32 %v1386_v13 }
 0x1ed   : > { %v2669_v17 = vpop.eup %2668  ;;  %2682 = vtanh.f32 %v1642_v14  ;;  %v1390_v18 = vpop.f32.mrf.mxu0 }
 0x1ee   : > { %v1646_v19 = vpop.f32.mrf.mxu1  ;;  %v2671_v20 = vpop.eup %2670  ;;  %1857 = vst [vmem:[%s2998_s9 + $0x1a0] sm:$0xff] %v2669_v17  ;;  %v1391_v21 = vadd.f32 %v3162_v11, %v1390_v18 }
 0x1ef   : > { %v1647_v22 = vadd.f32 %v3162_v11, %v1646_v19  ;;  %1921 = vst [vmem:[%s2998_s9 + $0x3a0] sm:$0xff] %v2671_v20  ;;  %v1392_v23 = vpop.f32.mrf.mxu0 }
 0x1f0   : > { %v1648_v24 = vpop.f32.mrf.mxu1  ;;  %2684 = vtanh.f32 %v1391_v21 }
 0x1f1   : > { %v2673_v25 = vpop.eup %2672  ;;  %2686 = vtanh.f32 %v1647_v22  ;;  %v1393_v26 = vpop.f32.mrf.mxu0 }
 0x1f2   : > { %v1649_v27 = vpop.f32.mrf.mxu1  ;;  %v2675_v28 = vpop.eup %2674  ;;  %1858 = vst [vmem:[%s2998_s9 + $0x1a8] sm:$0xff] %v2673_v25  ;;  %v1394_v29 = vadd.f32 %v3162_v11, %v1393_v26 }
 0x1f3   : > { %v1650_v30 = vadd.f32 %v3162_v11, %v1649_v27  ;;  %1922 = vst [vmem:[%s2998_s9 + $0x3a8] sm:$0xff] %v2675_v28  ;;  %v1395_v31 = vpop.f32.mrf.mxu0 }
 0x1f4   : > { %v1651_v32 = vpop.f32.mrf.mxu1  ;;  %2688 = vtanh.f32 %v1394_v29 }
 0x1f5   : > { %v2677_v33 = vpop.eup %2676  ;;  %2690 = vtanh.f32 %v1650_v30  ;;  %v1398_v34 = vpop.f32.mrf.mxu0 }
 0x1f6   : > { %v1654_v35 = vpop.f32.mrf.mxu1  ;;  %v2679_v36 = vpop.eup %2678  ;;  %1859 = vst [vmem:[%s2998_s9 + $0x1b0] sm:$0xff] %v2677_v33  ;;  %v1399_v37 = vadd.f32 %v3162_v11, %v1398_v34 }
 0x1f7   : > { %v1655_v38 = vadd.f32 %v3162_v11, %v1654_v35  ;;  %1923 = vst [vmem:[%s2998_s9 + $0x3b0] sm:$0xff] %v2679_v36  ;;  %v1400_v39 = vpop.f32.mrf.mxu0 }
 0x1f8   : > { %v1656_v40 = vpop.f32.mrf.mxu1  ;;  %2692 = vtanh.f32 %v1399_v37 }
 0x1f9   : > { %v2681_v41 = vpop.eup %2680  ;;  %2694 = vtanh.f32 %v1655_v38  ;;  %v1401_v42 = vpop.f32.mrf.mxu0 }
 0x1fa   : > { %v1657_v43 = vpop.f32.mrf.mxu1  ;;  %v2683_v44 = vpop.eup %2682  ;;  %1860 = vst [vmem:[%s2998_s9 + $0x1b8] sm:$0xff] %v2681_v41  ;;  %v1402_v45 = vadd.f32 %v3162_v11, %v1401_v42 }
 0x1fb   : > { %v1658_v46 = vadd.f32 %v3162_v11, %v1657_v43  ;;  %1924 = vst [vmem:[%s2998_s9 + $0x3b8] sm:$0xff] %v2683_v44  ;;  %v1403_v47 = vpop.f32.mrf.mxu0 }
 0x1fc   : > { %v1659_v48 = vpop.f32.mrf.mxu1  ;;  %2696 = vtanh.f32 %v1402_v45 }
 0x1fd   : > { %v2685_v49 = vpop.eup %2684  ;;  %2698 = vtanh.f32 %v1658_v46  ;;  %v1406_v50 = vpop.f32.mrf.mxu0 }
 0x1fe   : > { %v1662_v51 = vpop.f32.mrf.mxu1  ;;  %v2687_v52 = vpop.eup %2686  ;;  %1861 = vst [vmem:[%s2998_s9 + $0x1c0] sm:$0xff] %v2685_v49  ;;  %v1407_v53 = vadd.f32 %v3162_v11, %v1406_v50 }
 0x1ff   : > { %v1663_v54 = vadd.f32 %v3162_v11, %v1662_v51  ;;  %1925 = vst [vmem:[%s2998_s9 + $0x3c0] sm:$0xff] %v2687_v52  ;;  %v1408_v56 = vpop.f32.mrf.mxu0 }
 0x200   : > { %v1664_v57 = vpop.f32.mrf.mxu1  ;;  %2700 = vtanh.f32 %v1407_v53 }
 0x201   : > { %v2689_v58 = vpop.eup %2688  ;;  %2702 = vtanh.f32 %v1663_v54  ;;  %v1409_v59 = vpop.f32.mrf.mxu0 }
 0x202   : > { %v1665_v60 = vpop.f32.mrf.mxu1  ;;  %v2691_v61 = vpop.eup %2690  ;;  %1862 = vst [vmem:[%s2998_s9 + $0x1c8] sm:$0xff] %v2689_v58  ;;  %v1410_v62 = vadd.f32 %v3162_v11, %v1409_v59 }
 0x203   : > { %v1666_v63 = vadd.f32 %v3162_v11, %v1665_v60  ;;  %1926 = vst [vmem:[%s2998_s9 + $0x3c8] sm:$0xff] %v2691_v61  ;;  %v1411_v0 = vpop.f32.mrf.mxu0 }
 0x204   : > { %v1667_v1 = vpop.f32.mrf.mxu1  ;;  %2704 = vtanh.f32 %v1410_v62 }
 0x205   : > { %v2693_v2 = vpop.eup %2692  ;;  %2706 = vtanh.f32 %v1666_v63  ;;  %v1414_v3 = vpop.f32.mrf.mxu0 }
 0x206   : > { %v1670_v4 = vpop.f32.mrf.mxu1  ;;  %v2695_v5 = vpop.eup %2694  ;;  %1863 = vst [vmem:[%s2998_s9 + $0x1d0] sm:$0xff] %v2693_v2  ;;  %v1415_v6 = vadd.f32 %v3162_v11, %v1414_v3 }
 0x207   : > { %v1671_v7 = vadd.f32 %v3162_v11, %v1670_v4  ;;  %1927 = vst [vmem:[%s2998_s9 + $0x3d0] sm:$0xff] %v2695_v5  ;;  %v1416_v8 = vpop.f32.mrf.mxu0 }
 0x208   : > { %v1672_v9 = vpop.f32.mrf.mxu1  ;;  %2708 = vtanh.f32 %v1415_v6 }
 0x209   : > { %v2697_v10 = vpop.eup %2696  ;;  %2710 = vtanh.f32 %v1671_v7  ;;  %v1417_v12 = vpop.f32.mrf.mxu0 }
 0x20a   : > { %v1673_v55 = vpop.f32.mrf.mxu1  ;;  %v2699_v13 = vpop.eup %2698  ;;  %1864 = vst [vmem:[%s2998_s9 + $0x1d8] sm:$0xff] %v2697_v10  ;;  %v1418_v14 = vadd.f32 %v3162_v11, %v1417_v12 }
 0x20b   : > { %v1674_v15 = vadd.f32 %v3162_v11, %v1673_v55  ;;  %1928 = vst [vmem:[%s2998_s9 + $0x3d8] sm:$0xff] %v2699_v13  ;;  %v1419_v16 = vpop.f32.mrf.mxu0 }
 0x20c   : > { %v1675_v17 = vpop.f32.mrf.mxu1  ;;  %2712 = vtanh.f32 %v1418_v14 }
 0x20d   : > { %v2701_v18 = vpop.eup %2700  ;;  %2714 = vtanh.f32 %v1674_v15 }
 0x20e   : > { %v2703_v19 = vpop.eup %2702  ;;  %1865 = vst [vmem:[%s2998_s9 + $0x1e0] sm:$0xff] %v2701_v18 }
 0x20f   : > { %1929 = vst [vmem:[%s2998_s9 + $0x3e0] sm:$0xff] %v2703_v19 }
 0x211   : > { %v2705_v20 = vpop.eup %2704 }
 0x212   : > { %v2707_v21 = vpop.eup %2706  ;;  %1866 = vst [vmem:[%s2998_s9 + $0x1e8] sm:$0xff] %v2705_v20 }
 0x213   : > { %1930 = vst [vmem:[%s2998_s9 + $0x3e8] sm:$0xff] %v2707_v21 }
 0x215   : > { %v2709_v22 = vpop.eup %2708 }
 0x216   : > { %v2711_v23 = vpop.eup %2710  ;;  %1867 = vst [vmem:[%s2998_s9 + $0x1f0] sm:$0xff] %v2709_v22 }
 0x217   : > { %1931 = vst [vmem:[%s2998_s9 + $0x3f0] sm:$0xff] %v2711_v23 }
 0x219   : > { %v2713_v11 = vpop.eup %2712 }
 0x21a   : > { %v2715_v24 = vpop.eup %2714  ;;  %1868 = vst [vmem:[%s2998_s9 + $0x1f8] sm:$0xff] %v2713_v11 }
 0x21b   : > { %1932 = vst [vmem:[%s2998_s9 + $0x3f8] sm:$0xff] %v2715_v24 }
 0x21c PF: > { %s13_s14 = sadd.s32 1, %s2739_s14   ;;  %s3284_s12 = smov %s2735_s13 }
 0x21d   : > { %p10_p5 = scmp.ge.s32.totalorder %s13_s14, 4   ;;  %s3285_s13 = smov %s3287_s15 }
 0x21f   :  { %12 = sbr.rel (!%p10_p5) target bundleno = 2 (0x2), region = 68 }

</bundles_post_ra>
